<compile_context>
chip_gen: v7x
topology: tpu7x:2x2x1
jax: 0.10.0
libtpu: 0.0.40
codegen_flags: <defaults>
</compile_context>

<pallas_src>
import jax
import jax.numpy as jnp
from jax.experimental import pallas as pl
from jax.experimental.pallas import tpu as pltpu

# ----------------------------------------------------------------------------
# Static model / blocking configuration
# ----------------------------------------------------------------------------
IN_DIM, F1, F2, F3, K_TN, BN = 16, 64, 32, 16, 16, 16
N_PAD = 16                       # every graph is zero-padded to this node count (hard cap)
FF = F3 * F3                     # 256
P_PAIRS = 8                      # graph pairs per grid step (2P*N_PAD = 256 MXU rows)
GPB = 2 * P_PAIRS                # graphs per block
ROWS = GPB * N_PAD               # 256 node rows per block

# Packed-weight buffer: one (WP_ROWS, 64) f32 slab, one row-segment per parameter
# matrix (columns zero-padded to 64).  All row offsets are sublane (8) aligned.
WP_COLS = max(F1, F2, F3, K_TN, BN)
ROW_W1 = 0
ROW_W2 = ROW_W1 + IN_DIM          # 16
ROW_W3 = ROW_W2 + F1              # 80
ROW_WATT = ROW_W3 + F2            # 112
ROW_WNTN = ROW_WATT + F3          # 128
ROW_WB1 = ROW_WNTN + FF           # 384
ROW_WB2 = ROW_WB1 + F3            # 400
ROW_WFC1 = ROW_WB2 + F3           # 416
ROW_WSC = ROW_WFC1 + K_TN         # 432
WP_ROWS = ROW_WSC + BN            # 448
assert all(o % 8 == 0 for o in (ROW_W1, ROW_W2, ROW_W3, ROW_WATT, ROW_WNTN,
                                ROW_WB1, ROW_WB2, ROW_WFC1, ROW_WSC, WP_ROWS))

# Packed bias buffer: single (1, B_COLS) row, sliced in-kernel at static lane offsets.
COL_B1 = 0
COL_B2 = COL_B1 + F1              # 64
COL_B3 = COL_B2 + F2              # 96
COL_BNTN = COL_B3 + F3            # 112
COL_BFC1 = COL_BNTN + K_TN        # 128
COL_BSC = COL_BFC1 + BN           # 144
B_COLS = COL_BSC + 1              # 145


# ----------------------------------------------------------------------------
# Fused kernel: one grid step == one super-block of P_PAIRS graph pairs.
#   adj_ref : (1, ROWS, ROWS)  block-diagonal GCN-normalized adjacency (zero padded)
#   x_ref   : (1, ROWS, IN)    flattened node features (clean 16-lane layout)
#   s_ref   : (1, GPB, ROWS)   masked segment-pooling matrix S (1.0 at real nodes)
#   st_ref  : (1, ROWS, GPB)   S transposed (precomputed on host, avoids XLU transpose)
#   wp_ref  : (WP_ROWS, 64)    packed weights (constant index -> VMEM-resident)
#   b_ref   : (1, B_COLS)      packed biases
#   sel_ref : (2*F3, FF)       pre-transposed kron selection matrices [sel_i; sel_j]
#   out_ref : (1, P_PAIRS, 128) lane-dense tile, score[p] broadcast over its lanes
# ----------------------------------------------------------------------------
def simgnn_block_kernel(adj_ref, x_ref, s_ref, st_ref, wp_ref, b_ref, sel_ref, out_ref):
    f32 = jnp.float32
    dot = lambda a, b: jnp.dot(a, b, preferred_element_type=f32)

    # --- unpack parameters (static, sublane/lane-aligned slices) ---
    w1 = wp_ref[ROW_W1:ROW_W1 + IN_DIM, :F1]
    w2 = wp_ref[ROW_W2:ROW_W2 + F1, :F2]
    w3 = wp_ref[ROW_W3:ROW_W3 + F2, :F3]
    watt = wp_ref[ROW_WATT:ROW_WATT + F3, :F3]
    wntn = wp_ref[ROW_WNTN:ROW_WNTN + FF, :K_TN]         # W reshaped to (F3*F3, K)
    wb1 = wp_ref[ROW_WB1:ROW_WB1 + F3, :K_TN]
    wb2 = wp_ref[ROW_WB2:ROW_WB2 + F3, :K_TN]
    wfc1 = wp_ref[ROW_WFC1:ROW_WFC1 + K_TN, :BN]
    wsc = wp_ref[ROW_WSC:ROW_WSC + BN, :1]
    sel_i = sel_ref[:F3, :]                               # sel_i[i, i*F3+j] = 1
    sel_j = sel_ref[F3:2 * F3, :]                         # sel_j[j, i*F3+j] = 1

    b1 = b_ref[:, COL_B1:COL_B1 + F1]
    b2 = b_ref[:, COL_B2:COL_B2 + F2]
    b3 = b_ref[:, COL_B3:COL_B3 + F3]
    bntn = b_ref[:, COL_BNTN:COL_BNTN + K_TN]
    bfc1 = b_ref[:, COL_BFC1:COL_BFC1 + BN]
    bsc = b_ref[:, COL_BSC:COL_BSC + 1]

    adj = adj_ref[0]                                      # (ROWS, ROWS) block-diag
    x = x_ref[0]                                          # (ROWS, IN_DIM)
    s_mat = s_ref[0]                                      # (GPB, ROWS)
    st_mat = st_ref[0]                                    # (ROWS, GPB)

    # --- GCN x3 on the flattened slab: weight GEMMs fill 256 MXU rows, adjacency is
    #     one block-diagonal GEMM per layer (padded rows/cols are zero -> no leakage).
    h = dot(x, w1)
    h = jnp.maximum(dot(adj, h) + b1, 0.0)
    h = dot(h, w2)
    h = jnp.maximum(dot(adj, h) + b2, 0.0)
    h = dot(h, w3)
    h = dot(adj, h) + b3                                  # (ROWS, F3); padded rows == b3
    # dropout: eval-time no-op

    # --- attention pooling, batched over the GPB graphs via masked segment matmuls.
    # S has zeros at padded rows, so they are excluded from every per-graph sum.
    glob_sum = dot(s_mat, dot(h, watt))                   # (GPB, F3)
    n_real = jnp.maximum(jnp.sum(s_mat, axis=1, keepdims=True), 1.0)   # (GPB, 1)
    ctx = jnp.tanh(glob_sum / n_real)                     # (GPB, F3)
    ctx_node = dot(st_mat, ctx)                           # (ROWS, F3) per-node context
    att = jax.nn.sigmoid(jnp.sum(h * ctx_node, axis=1, keepdims=True))  # (ROWS, 1)
    pooled = dot(s_mat, att * h)                          # (GPB, F3) per-graph embedding

    # graphs were laid out [pair0.g1 .. pairP-1.g1, pair0.g2 .. pairP-1.g2]
    e1 = pooled[:P_PAIRS, :]                              # (P, F3)
    e2 = pooled[P_PAIRS:, :]                              # (P, F3)

    # --- NTN scoring on the MXU, batched over the P pairs:
    # kron(e1,e2)[p, i*F3+j] = e1[p,i]*e2[p,j] via pre-transposed 0/1 selection GEMMs,
    # then scoring[p,k] = sum_{i,j} kron * W[i,j,k] with W flattened to (FF, K).
    e1_exp = dot(e1, sel_i)                               # (P, FF)
    e2_til = dot(e2, sel_j)                               # (P, FF)
    scoring = dot(e1_exp * e2_til, wntn)                  # (P, K)

    blk = dot(e1, wb1) + dot(e2, wb2)                     # (P, K)
    sc = jnp.maximum(scoring + blk + bntn, 0.0)

    hid = jnp.maximum(dot(sc, wfc1) + bfc1, 0.0)          # (P, BN)
    score = jax.nn.sigmoid(dot(hid, wsc) + bsc)           # (P, 1)

    # Lane-dense output: all P scores of the block in one (8, 128) tile (unmasked vst).
    out_ref[0] = jnp.broadcast_to(score, (P_PAIRS, 128))


# ----------------------------------------------------------------------------
# Wrappers
# ----------------------------------------------------------------------------
def simgnn_scores(adj_bd, x_flat, pool_s, pool_st, w_packed, b_packed, sel_packed):
    """Returns (num_blocks * P_PAIRS,) similarity scores (padded pairs included)."""
    num_blocks = adj_bd.shape[0]
    out = pl.pallas_call(
        simgnn_block_kernel,
        out_shape=jax.ShapeDtypeStruct((num_blocks, P_PAIRS, 128), jnp.float32),
        grid_spec=pltpu.PrefetchScalarGridSpec(
            num_scalar_prefetch=0,
            grid=(num_blocks,),
            in_specs=[
                pl.BlockSpec((1, ROWS, ROWS), lambda b: (b, 0, 0)),
                pl.BlockSpec((1, ROWS, IN_DIM), lambda b: (b, 0, 0)),
                pl.BlockSpec((1, GPB, ROWS), lambda b: (b, 0, 0)),
                pl.BlockSpec((1, ROWS, GPB), lambda b: (b, 0, 0)),
                # constant block index -> weights/biases/selectors stay VMEM-resident
                pl.BlockSpec((WP_ROWS, WP_COLS), lambda b: (0, 0)),
                pl.BlockSpec((1, B_COLS), lambda b: (0, 0)),
                pl.BlockSpec((2 * F3, FF), lambda b: (0, 0)),
            ],
            out_specs=pl.BlockSpec((1, P_PAIRS, 128), lambda b: (b, 0, 0)),
        ),
        compiler_params=pltpu.CompilerParams(dimension_semantics=("parallel",)),
    )(adj_bd, x_flat, pool_s, pool_st, w_packed, b_packed, sel_packed)
    return out[:, :, 0].reshape(-1)


@jax.jit
def simgnn_forward(adj_bd, x_flat, pool_s, pool_st, w_packed, b_packed, sel_packed, avg_v):
    score = simgnn_scores(adj_bd, x_flat, pool_s, pool_st,
                          w_packed, b_packed, sel_packed)          # (num_blocks * P,)
    # target_mode == 'exp'; tiny clamp so an underflowed sigmoid cannot produce inf.
    pre_ged = -jnp.log(jnp.maximum(score, jnp.float32(1e-30))) * avg_v
    return score, pre_ged


# ----------------------------------------------------------------------------
# Glue: GCN normalization, super-block assembly, parameter init / packing, reference
# ----------------------------------------------------------------------------
def build_norm_adj(edge_index, n):
    """A_hat = D^-1/2 (A + I) D^-1/2, messages flow src -> dst (PyG GCNConv)."""
    src, dst = edge_index
    a = jnp.zeros((n, n), jnp.float32).at[dst, src].set(1.0)
    a = a.at[jnp.arange(n), jnp.arange(n)].set(1.0)
    deg = jnp.sum(a, axis=1)
    dinv = 1.0 / jnp.sqrt(deg)
    return a * dinv[:, None] * dinv[None, :]


def ring_edge_index(n):
    r = jnp.arange(n)
    return jnp.stack([jnp.concatenate([r, (r + 1) % n]),
                      jnp.concatenate([(r + 1) % n, r])])


def prepare_blocks(graph_pairs):
    """graph_pairs: list of ((adj1, x1), (adj2, x2)) with GCN-normalized, UNPADDED adj.

    Builds per-super-block (P_PAIRS pairs) inputs:
      adj_bd  (num_blocks, ROWS, ROWS)   block-diagonal adjacency
      x_flat  (num_blocks, ROWS, IN_DIM) flattened node features
      pool_s  (num_blocks, GPB, ROWS)    masked per-graph segment-pooling matrix
      pool_st (num_blocks, ROWS, GPB)    its transpose
    Graph layout inside a block: first the P graph-1s, then the P graph-2s.
    """
    b_real = len(graph_pairs)
    num_blocks = -(-b_real // P_PAIRS)

    adj_list, x_list, s_list = [], [], []
    for blk in range(num_blocks):
        a = jnp.zeros((ROWS, ROWS), jnp.float32)
        x = jnp.zeros((ROWS, IN_DIM), jnp.float32)
        s = jnp.zeros((GPB, ROWS), jnp.float32)
        for slot in range(P_PAIRS):
            pair_idx = blk * P_PAIRS + slot
            if pair_idx >= b_real:
                continue          # dummy pair: all zeros (handled by n_real clamp in-kernel)
            (a1, x1), (a2, x2) = graph_pairs[pair_idx]
            for which, (ag, xg) in enumerate(((a1, x1), (a2, x2))):
                n = ag.shape[0]
                assert n <= N_PAD, f"graph with {n} nodes exceeds N_PAD={N_PAD}"
                g = which * P_PAIRS + slot
                r0 = g * N_PAD
                a = a.at[r0:r0 + n, r0:r0 + n].set(ag)
                x = x.at[r0:r0 + n, :].set(xg)
                s = s.at[g, r0:r0 + n].set(1.0)
        adj_list.append(a)
        x_list.append(x)
        s_list.append(s)

    adj_bd = jnp.stack(adj_list)
    x_flat = jnp.stack(x_list)
    pool_s = jnp.stack(s_list)
    pool_st = jnp.transpose(pool_s, (0, 2, 1))
    return adj_bd, x_flat, pool_s, pool_st, b_real


def init_params(key, in_dim, f1, f2, f3, k_tn, bn):
    ks = jax.random.split(key, 16)
    s = 0.2
    wblock = s * jax.random.normal(ks[9], (k_tn, 2 * f3), jnp.float32)
    fc1_w = s * jax.random.normal(ks[11], (bn, k_tn), jnp.float32)   # torch Linear (out, in)
    sc_w = s * jax.random.normal(ks[13], (1, bn), jnp.float32)
    return dict(
        w1=s * jax.random.normal(ks[0], (in_dim, f1), jnp.float32),
        b1=s * jax.random.normal(ks[1], (1, f1), jnp.float32),
        w2=s * jax.random.normal(ks[2], (f1, f2), jnp.float32),
        b2=s * jax.random.normal(ks[3], (1, f2), jnp.float32),
        w3=s * jax.random.normal(ks[4], (f2, f3), jnp.float32),
        b3=s * jax.random.normal(ks[5], (1, f3), jnp.float32),
        watt=s * jax.random.normal(ks[6], (f3, f3), jnp.float32),
        # NTN weight (F3, F3, K) stored flattened as (F3, F3*K) (row-major == torch .view)
        wntn=(s * jax.random.normal(ks[8], (f3, f3, k_tn), jnp.float32)).reshape(f3, f3 * k_tn),
        wb1=wblock[:, :f3].T,            # (F3, K)
        wb2=wblock[:, f3:].T,            # (F3, K)
        bntn=(s * jax.random.normal(ks[10], (k_tn, 1), jnp.float32)).T,   # (1, K)
        wfc1=fc1_w.T,                    # (K, BN)
        bfc1=(s * jax.random.normal(ks[12], (bn,), jnp.float32))[None, :],
        wsc=sc_w.T,                      # (BN, 1)
        bsc=(s * jax.random.normal(ks[14], (1,), jnp.float32))[None, :],
    )


def pack_params(p):
    """Pack all parameters into one weight slab + one bias row + one selection buffer."""
    def padc(w):
        return jnp.pad(w, ((0, 0), (0, WP_COLS - w.shape[1])))

    # W[i, j, k] -> row i*F3 + j, col k  (row-major, matches torch .view semantics)
    wntn_col = p["wntn"].reshape(FF, K_TN)

    w_packed = jnp.concatenate([
        padc(p["w1"]), padc(p["w2"]), padc(p["w3"]), padc(p["watt"]),
        padc(wntn_col), padc(p["wb1"]), padc(p["wb2"]),
        padc(p["wfc1"]), padc(p["wsc"])], axis=0)
    assert w_packed.shape == (WP_ROWS, WP_COLS)

    b_packed = jnp.concatenate(
        [p["b1"], p["b2"], p["b3"], p["bntn"], p["bfc1"], p["bsc"]], axis=1)
    assert b_packed.shape == (1, B_COLS)

    # Pre-transposed constant 0/1 selection matrices for kron(e1, e2) on the MXU:
    #   sel_i[i, i*F3 + j] = 1 ; sel_j[j, i*F3 + j] = 1
    c = jnp.arange(FF)[None, :]
    r = jnp.arange(F3)[:, None]
    sel_i = (c // F3 == r).astype(jnp.float32)            # (F3, FF)
    sel_j = (c % F3 == r).astype(jnp.float32)             # (F3, FF)
    sel_packed = jnp.concatenate([sel_i, sel_j], axis=0)  # (2*F3, FF)
    return w_packed, b_packed, sel_packed


def reference_forward(adj1, x1, adj2, x2, p, avg_v, f3, k_tn):
    """Pure-JAX transliteration of the PyTorch forward (for validation)."""
    def gcn_pass(adj, x):
        h = jnp.maximum(adj @ (x @ p["w1"]) + p["b1"], 0.0)
        h = jnp.maximum(adj @ (h @ p["w2"]) + p["b2"], 0.0)
        return adj @ (h @ p["w3"]) + p["b3"]

    def attention(h):
        ctx = jnp.tanh(jnp.mean(h @ p["watt"], axis=0))
        sig = jax.nn.sigmoid(h @ ctx[:, None])
        return h.T @ sig                                          # (F3, 1)

    e1 = attention(gcn_pass(adj1, x1))
    e2 = attention(gcn_pass(adj2, x2))
    v = (e1.T @ p["wntn"]).reshape(f3, k_tn)
    scoring = v.T @ e2                                            # (K, 1)
    block = p["wb1"].T @ e1 + p["wb2"].T @ e2                     # (K, 1)
    s = jnp.maximum(scoring + block + p["bntn"].T, 0.0).T         # (1, K)
    hid = jnp.maximum(s @ p["wfc1"] + p["bfc1"], 0.0)
    score = jax.nn.sigmoid(hid @ p["wsc"] + p["bsc"])             # (1, 1)
    return score[:, 0], (-jnp.log(score) * avg_v)[0, 0]


if __name__ == "__main__":
    # 10 graph pairs (ring graphs of varying size, all <= N_PAD) -> 2 super-blocks of 8,
    # so the parallel grid has 2 steps (both v7x TensorCores get work).
    pair_sizes = [(8, 10), (6, 12), (16, 9), (5, 7), (11, 13),
                  (4, 14), (9, 9), (7, 15), (10, 6), (12, 8)]

    key = jax.random.PRNGKey(0)
    k_par, k_feat = jax.random.split(key)
    feat_keys = jax.random.split(k_feat, 2 * len(pair_sizes))

    graph_pairs, avg_vs = [], []
    for idx, (n1, n2) in enumerate(pair_sizes):
        a1 = build_norm_adj(ring_edge_index(n1), n1)
        a2 = build_norm_adj(ring_edge_index(n2), n2)
        x1 = jax.random.normal(feat_keys[2 * idx], (n1, IN_DIM), jnp.float32)
        x2 = jax.random.normal(feat_keys[2 * idx + 1], (n2, IN_DIM), jnp.float32)
        graph_pairs.append(((a1, x1), (a2, x2)))
        avg_vs.append(0.5 * (n1 + n2))

    params = init_params(k_par, IN_DIM, F1, F2, F3, K_TN, BN)
    w_packed, b_packed, sel_packed = pack_params(params)

    adj_bd, x_flat, pool_s, pool_st, b_real = prepare_blocks(graph_pairs)
    b_pad = adj_bd.shape[0] * P_PAIRS
    avg_v = jnp.array(avg_vs + [1.0] * (b_pad - b_real), jnp.float32)

    score, pre_ged = simgnn_forward(adj_bd, x_flat, pool_s, pool_st,
                                    w_packed, b_packed, sel_packed, avg_v)
    jax.block_until_ready((score, pre_ged))

    # validate every real pair against the pure-JAX reference (unpadded graphs)
    for idx, ((a1, x1), (a2, x2)) in enumerate(graph_pairs):
        score_ref, pre_ged_ref = reference_forward(a1, x1, a2, x2, params,
                                                   avg_vs[idx], F3, K_TN)
        assert jnp.allclose(score[idx], score_ref, rtol=1e-2, atol=1e-2), \
            (idx, score[idx], score_ref)
        assert jnp.allclose(pre_ged[idx], pre_ged_ref, rtol=1e-2, atol=1e-2), \
            (idx, pre_ged[idx], pre_ged_ref)

    _ = float(pre_ged[0])   # .item() in the PyTorch code
    print("KERNEL_OK")
</pallas_src>

<mosaic_0001>
module attributes {stable_mosaic.version = 11 : i64} {
  func.func @simgnn_block_kernel(%arg0: i32, %arg1: memref<1x256x256xf32, #tpu.memory_space<vmem>>, %arg2: memref<1x256x16xf32, #tpu.memory_space<vmem>>, %arg3: memref<1x16x256xf32, #tpu.memory_space<vmem>>, %arg4: memref<1x256x16xf32, #tpu.memory_space<vmem>>, %arg5: memref<448x64xf32, #tpu.memory_space<vmem>>, %arg6: memref<1x145xf32, #tpu.memory_space<vmem>>, %arg7: memref<32x256xf32, #tpu.memory_space<vmem>>, %arg8: memref<1x8x128xf32, #tpu.memory_space<vmem>>) attributes {dimension_semantics = [#tpu.dimension_semantics<parallel>], iteration_bounds = array<i64: 2>, scalar_prefetch = 0 : i64, scratch_operands = 0 : i64, tpu.core_type = #tpu.core_type<tc>, window_params = [{transform_indices = @transform_0, window_bounds = array<i64: 1, 256, 256>}, {transform_indices = @transform_1, window_bounds = array<i64: 1, 256, 16>}, {transform_indices = @transform_2, window_bounds = array<i64: 1, 16, 256>}, {transform_indices = @transform_3, window_bounds = array<i64: 1, 256, 16>}, {pipeline_mode = #tpu.pipeline_mode<synchronous>, transform_indices = @transform_4, window_bounds = array<i64: 448, 64>}, {pipeline_mode = #tpu.pipeline_mode<synchronous>, transform_indices = @transform_5, window_bounds = array<i64: 1, 145>}, {pipeline_mode = #tpu.pipeline_mode<synchronous>, transform_indices = @transform_6, window_bounds = array<i64: 32, 256>}, {transform_indices = @transform_7, window_bounds = array<i64: 1, 8, 128>}]} {
    %c0 = arith.constant 0 : index
    %c0_0 = arith.constant 0 : index
    %0 = vector.load %arg5[%c0, %c0_0] : memref<448x64xf32, #tpu.memory_space<vmem>>, vector<16x64xf32>
    %c16 = arith.constant 16 : index
    %c0_1 = arith.constant 0 : index
    %1 = vector.load %arg5[%c16, %c0_1] : memref<448x64xf32, #tpu.memory_space<vmem>>, vector<64x32xf32>
    %c80 = arith.constant 80 : index
    %c0_2 = arith.constant 0 : index
    %2 = vector.load %arg5[%c80, %c0_2] : memref<448x64xf32, #tpu.memory_space<vmem>>, vector<32x16xf32>
    %c112 = arith.constant 112 : index
    %c0_3 = arith.constant 0 : index
    %3 = vector.load %arg5[%c112, %c0_3] : memref<448x64xf32, #tpu.memory_space<vmem>>, vector<16x16xf32>
    %c128 = arith.constant 128 : index
    %c0_4 = arith.constant 0 : index
    %4 = vector.load %arg5[%c128, %c0_4] : memref<448x64xf32, #tpu.memory_space<vmem>>, vector<256x16xf32>
    %c384 = arith.constant 384 : index
    %c0_5 = arith.constant 0 : index
    %5 = vector.load %arg5[%c384, %c0_5] : memref<448x64xf32, #tpu.memory_space<vmem>>, vector<16x16xf32>
    %c400 = arith.constant 400 : index
    %c0_6 = arith.constant 0 : index
    %6 = vector.load %arg5[%c400, %c0_6] : memref<448x64xf32, #tpu.memory_space<vmem>>, vector<16x16xf32>
    %c416 = arith.constant 416 : index
    %c0_7 = arith.constant 0 : index
    %7 = vector.load %arg5[%c416, %c0_7] : memref<448x64xf32, #tpu.memory_space<vmem>>, vector<16x16xf32>
    %c432 = arith.constant 432 : index
    %c0_8 = arith.constant 0 : index
    %8 = vector.load %arg5[%c432, %c0_8] : memref<448x64xf32, #tpu.memory_space<vmem>>, vector<16x1xf32>
    %c0_9 = arith.constant 0 : index
    %c0_10 = arith.constant 0 : index
    %9 = vector.load %arg7[%c0_9, %c0_10] : memref<32x256xf32, #tpu.memory_space<vmem>>, vector<16x256xf32>
    %c16_11 = arith.constant 16 : index
    %c0_12 = arith.constant 0 : index
    %10 = vector.load %arg7[%c16_11, %c0_12] : memref<32x256xf32, #tpu.memory_space<vmem>>, vector<16x256xf32>
    %c0_13 = arith.constant 0 : index
    %c0_14 = arith.constant 0 : index
    %11 = vector.load %arg6[%c0_13, %c0_14] : memref<1x145xf32, #tpu.memory_space<vmem>>, vector<1x64xf32>
    %c0_15 = arith.constant 0 : index
    %c64 = arith.constant 64 : index
    %12 = vector.load %arg6[%c0_15, %c64] : memref<1x145xf32, #tpu.memory_space<vmem>>, vector<1x32xf32>
    %c0_16 = arith.constant 0 : index
    %c96 = arith.constant 96 : index
    %13 = vector.load %arg6[%c0_16, %c96] : memref<1x145xf32, #tpu.memory_space<vmem>>, vector<1x16xf32>
    %c0_17 = arith.constant 0 : index
    %c112_18 = arith.constant 112 : index
    %14 = vector.load %arg6[%c0_17, %c112_18] : memref<1x145xf32, #tpu.memory_space<vmem>>, vector<1x16xf32>
    %c0_19 = arith.constant 0 : index
    %c128_20 = arith.constant 128 : index
    %15 = vector.load %arg6[%c0_19, %c128_20] : memref<1x145xf32, #tpu.memory_space<vmem>>, vector<1x16xf32>
    %c0_21 = arith.constant 0 : index
    %c144 = arith.constant 144 : index
    %16 = vector.load %arg6[%c0_21, %c144] : memref<1x145xf32, #tpu.memory_space<vmem>>, vector<1x1xf32>
    %c0_22 = arith.constant 0 : index
    %c0_23 = arith.constant 0 : index
    %c0_24 = arith.constant 0 : index
    %17 = vector.load %arg1[%c0_22, %c0_23, %c0_24] : memref<1x256x256xf32, #tpu.memory_space<vmem>>, vector<1x256x256xf32>
    %18 = vector.shape_cast %17 : vector<1x256x256xf32> to vector<256x256xf32>
    %c0_25 = arith.constant 0 : index
    %c0_26 = arith.constant 0 : index
    %c0_27 = arith.constant 0 : index
    %19 = vector.load %arg2[%c0_25, %c0_26, %c0_27] : memref<1x256x16xf32, #tpu.memory_space<vmem>>, vector<1x256x16xf32>
    %20 = vector.shape_cast %19 : vector<1x256x16xf32> to vector<256x16xf32>
    %c0_28 = arith.constant 0 : index
    %c0_29 = arith.constant 0 : index
    %c0_30 = arith.constant 0 : index
    %21 = vector.load %arg3[%c0_28, %c0_29, %c0_30] : memref<1x16x256xf32, #tpu.memory_space<vmem>>, vector<1x16x256xf32>
    %22 = vector.shape_cast %21 : vector<1x16x256xf32> to vector<16x256xf32>
    %c0_31 = arith.constant 0 : index
    %c0_32 = arith.constant 0 : index
    %c0_33 = arith.constant 0 : index
    %23 = vector.load %arg4[%c0_31, %c0_32, %c0_33] : memref<1x256x16xf32, #tpu.memory_space<vmem>>, vector<1x256x16xf32>
    %24 = vector.shape_cast %23 : vector<1x256x16xf32> to vector<256x16xf32>
    %cst = arith.constant dense<0.000000e+00> : vector<256x64xf32>
    %25 = tpu.matmul %20, %0, %cst {dimension_numbers = #tpu.dot_dimension_numbers<[1], [0], [0], [1], [0, 0, 1, 1], [], []>} : vector<256x16xf32>, vector<16x64xf32>, vector<256x64xf32> -> vector<256x64xf32>
    %cst_34 = arith.constant dense<0.000000e+00> : vector<256x64xf32>
    %26 = tpu.matmul %18, %25, %cst_34 {dimension_numbers = #tpu.dot_dimension_numbers<[1], [0], [0], [1], [0, 0, 1, 1], [], []>} : vector<256x256xf32>, vector<256x64xf32>, vector<256x64xf32> -> vector<256x64xf32>
    %27 = vector.broadcast %11 : vector<1x64xf32> to vector<256x64xf32>
    %28 = arith.addf %26, %27 : vector<256x64xf32>
    %cst_35 = arith.constant 0.000000e+00 : f32
    %29 = vector.broadcast %cst_35 : f32 to vector<256x64xf32>
    %30 = arith.maximumf %28, %29 : vector<256x64xf32>
    %cst_36 = arith.constant dense<0.000000e+00> : vector<256x32xf32>
    %31 = tpu.matmul %30, %1, %cst_36 {dimension_numbers = #tpu.dot_dimension_numbers<[1], [0], [0], [1], [0, 0, 1, 1], [], []>} : vector<256x64xf32>, vector<64x32xf32>, vector<256x32xf32> -> vector<256x32xf32>
    %cst_37 = arith.constant dense<0.000000e+00> : vector<256x32xf32>
    %32 = tpu.matmul %18, %31, %cst_37 {dimension_numbers = #tpu.dot_dimension_numbers<[1], [0], [0], [1], [0, 0, 1, 1], [], []>} : vector<256x256xf32>, vector<256x32xf32>, vector<256x32xf32> -> vector<256x32xf32>
    %33 = vector.broadcast %12 : vector<1x32xf32> to vector<256x32xf32>
    %34 = arith.addf %32, %33 : vector<256x32xf32>
    %cst_38 = arith.constant 0.000000e+00 : f32
    %35 = vector.broadcast %cst_38 : f32 to vector<256x32xf32>
    %36 = arith.maximumf %34, %35 : vector<256x32xf32>
    %cst_39 = arith.constant dense<0.000000e+00> : vector<256x16xf32>
    %37 = tpu.matmul %36, %2, %cst_39 {dimension_numbers = #tpu.dot_dimension_numbers<[1], [0], [0], [1], [0, 0, 1, 1], [], []>} : vector<256x32xf32>, vector<32x16xf32>, vector<256x16xf32> -> vector<256x16xf32>
    %cst_40 = arith.constant dense<0.000000e+00> : vector<256x16xf32>
    %38 = tpu.matmul %18, %37, %cst_40 {dimension_numbers = #tpu.dot_dimension_numbers<[1], [0], [0], [1], [0, 0, 1, 1], [], []>} : vector<256x256xf32>, vector<256x16xf32>, vector<256x16xf32> -> vector<256x16xf32>
    %39 = vector.broadcast %13 : vector<1x16xf32> to vector<256x16xf32>
    %40 = arith.addf %38, %39 : vector<256x16xf32>
    %cst_41 = arith.constant dense<0.000000e+00> : vector<256x16xf32>
    %41 = tpu.matmul %40, %3, %cst_41 {dimension_numbers = #tpu.dot_dimension_numbers<[1], [0], [0], [1], [0, 0, 1, 1], [], []>} : vector<256x16xf32>, vector<16x16xf32>, vector<256x16xf32> -> vector<256x16xf32>
    %cst_42 = arith.constant dense<0.000000e+00> : vector<16x16xf32>
    %42 = tpu.matmul %22, %41, %cst_42 {dimension_numbers = #tpu.dot_dimension_numbers<[1], [0], [0], [1], [0, 0, 1, 1], [], []>} : vector<16x256xf32>, vector<256x16xf32>, vector<16x16xf32> -> vector<16x16xf32>
    %cst_43 = arith.constant dense<0.000000e+00> : vector<16xf32>
    %43 = vector.multi_reduction <add>, %22, %cst_43 [1] : vector<16x256xf32> to vector<16xf32>
    %44 = vector.shape_cast %43 : vector<16xf32> to vector<16x1xf32>
    %cst_44 = arith.constant 1.000000e+00 : f32
    %45 = vector.broadcast %cst_44 : f32 to vector<16x1xf32>
    %46 = arith.maximumf %44, %45 : vector<16x1xf32>
    %47 = vector.broadcast %46 : vector<16x1xf32> to vector<16x16xf32>
    %48 = arith.divf %42, %47 : vector<16x16xf32>
    %49 = math.tanh %48 : vector<16x16xf32>
    %cst_45 = arith.constant dense<0.000000e+00> : vector<256x16xf32>
    %50 = tpu.matmul %24, %49, %cst_45 {dimension_numbers = #tpu.dot_dimension_numbers<[1], [0], [0], [1], [0, 0, 1, 1], [], []>} : vector<256x16xf32>, vector<16x16xf32>, vector<256x16xf32> -> vector<256x16xf32>
    %51 = arith.mulf %40, %50 : vector<256x16xf32>
    %cst_46 = arith.constant dense<0.000000e+00> : vector<256xf32>
    %52 = vector.multi_reduction <add>, %51, %cst_46 [1] : vector<256x16xf32> to vector<256xf32>
    %53 = vector.shape_cast %52 : vector<256xf32> to vector<256x1xf32>
    %54 = arith.negf %53 : vector<256x1xf32>
    %55 = math.exp %54 : vector<256x1xf32>
    %cst_47 = arith.constant 1.000000e+00 : f32
    %56 = vector.broadcast %cst_47 : f32 to vector<256x1xf32>
    %57 = arith.addf %56, %55 : vector<256x1xf32>
    %58 = arith.divf %56, %57 : vector<256x1xf32>
    %59 = vector.broadcast %58 : vector<256x1xf32> to vector<256x16xf32>
    %60 = arith.mulf %59, %40 : vector<256x16xf32>
    %cst_48 = arith.constant dense<0.000000e+00> : vector<16x16xf32>
    %61 = tpu.matmul %22, %60, %cst_48 {dimension_numbers = #tpu.dot_dimension_numbers<[1], [0], [0], [1], [0, 0, 1, 1], [], []>} : vector<16x256xf32>, vector<256x16xf32>, vector<16x16xf32> -> vector<16x16xf32>
    %62 = vector.extract_strided_slice %61 {offsets = [0, 0], sizes = [8, 16], strides = [1, 1]} : vector<16x16xf32> to vector<8x16xf32>
    %63 = vector.extract_strided_slice %61 {offsets = [8, 0], sizes = [8, 16], strides = [1, 1]} : vector<16x16xf32> to vector<8x16xf32>
    %cst_49 = arith.constant dense<0.000000e+00> : vector<8x256xf32>
    %64 = tpu.matmul %62, %9, %cst_49 {dimension_numbers = #tpu.dot_dimension_numbers<[1], [0], [0], [1], [0, 0, 1, 1], [], []>} : vector<8x16xf32>, vector<16x256xf32>, vector<8x256xf32> -> vector<8x256xf32>
    %cst_50 = arith.constant dense<0.000000e+00> : vector<8x256xf32>
    %65 = tpu.matmul %63, %10, %cst_50 {dimension_numbers = #tpu.dot_dimension_numbers<[1], [0], [0], [1], [0, 0, 1, 1], [], []>} : vector<8x16xf32>, vector<16x256xf32>, vector<8x256xf32> -> vector<8x256xf32>
    %66 = arith.mulf %64, %65 : vector<8x256xf32>
    %cst_51 = arith.constant dense<0.000000e+00> : vector<8x16xf32>
    %67 = tpu.matmul %66, %4, %cst_51 {dimension_numbers = #tpu.dot_dimension_numbers<[1], [0], [0], [1], [0, 0, 1, 1], [], []>} : vector<8x256xf32>, vector<256x16xf32>, vector<8x16xf32> -> vector<8x16xf32>
    %cst_52 = arith.constant dense<0.000000e+00> : vector<8x16xf32>
    %68 = tpu.matmul %62, %5, %cst_52 {dimension_numbers = #tpu.dot_dimension_numbers<[1], [0], [0], [1], [0, 0, 1, 1], [], []>} : vector<8x16xf32>, vector<16x16xf32>, vector<8x16xf32> -> vector<8x16xf32>
    %cst_53 = arith.constant dense<0.000000e+00> : vector<8x16xf32>
    %69 = tpu.matmul %63, %6, %cst_53 {dimension_numbers = #tpu.dot_dimension_numbers<[1], [0], [0], [1], [0, 0, 1, 1], [], []>} : vector<8x16xf32>, vector<16x16xf32>, vector<8x16xf32> -> vector<8x16xf32>
    %70 = arith.addf %68, %69 : vector<8x16xf32>
    %71 = arith.addf %67, %70 : vector<8x16xf32>
    %72 = vector.broadcast %14 : vector<1x16xf32> to vector<8x16xf32>
    %73 = arith.addf %71, %72 : vector<8x16xf32>
    %cst_54 = arith.constant 0.000000e+00 : f32
    %74 = vector.broadcast %cst_54 : f32 to vector<8x16xf32>
    %75 = arith.maximumf %73, %74 : vector<8x16xf32>
    %cst_55 = arith.constant dense<0.000000e+00> : vector<8x16xf32>
    %76 = tpu.matmul %75, %7, %cst_55 {dimension_numbers = #tpu.dot_dimension_numbers<[1], [0], [0], [1], [0, 0, 1, 1], [], []>} : vector<8x16xf32>, vector<16x16xf32>, vector<8x16xf32> -> vector<8x16xf32>
    %77 = vector.broadcast %15 : vector<1x16xf32> to vector<8x16xf32>
    %78 = arith.addf %76, %77 : vector<8x16xf32>
    %cst_56 = arith.constant 0.000000e+00 : f32
    %79 = vector.broadcast %cst_56 : f32 to vector<8x16xf32>
    %80 = arith.maximumf %78, %79 : vector<8x16xf32>
    %cst_57 = arith.constant dense<0.000000e+00> : vector<8x1xf32>
    %81 = tpu.matmul %80, %8, %cst_57 {dimension_numbers = #tpu.dot_dimension_numbers<[1], [0], [0], [1], [0, 0, 1, 1], [], []>} : vector<8x16xf32>, vector<16x1xf32>, vector<8x1xf32> -> vector<8x1xf32>
    %82 = vector.broadcast %16 : vector<1x1xf32> to vector<8x1xf32>
    %83 = arith.addf %81, %82 : vector<8x1xf32>
    %84 = arith.negf %83 : vector<8x1xf32>
    %85 = math.exp %84 : vector<8x1xf32>
    %cst_58 = arith.constant 1.000000e+00 : f32
    %86 = vector.broadcast %cst_58 : f32 to vector<8x1xf32>
    %87 = arith.addf %86, %85 : vector<8x1xf32>
    %88 = arith.divf %86, %87 : vector<8x1xf32>
    %89 = vector.shape_cast %88 : vector<8x1xf32> to vector<8x1xf32>
    %90 = vector.broadcast %89 : vector<8x1xf32> to vector<8x128xf32>
    %c0_59 = arith.constant 0 : index
    %c0_60 = arith.constant 0 : index
    %c0_61 = arith.constant 0 : index
    %91 = vector.load %arg8[%c0_59, %c0_60, %c0_61] : memref<1x8x128xf32, #tpu.memory_space<vmem>>, vector<1x8x128xf32>
    %92 = vector.shape_cast %91 : vector<1x8x128xf32> to vector<8x128xf32>
    %93 = vector.shape_cast %90 : vector<8x128xf32> to vector<1x8x128xf32>
    tpu.vector_store %arg8[%c0_59, %c0_60, %c0_61], %93 {strides = array<i32>} : memref<1x8x128xf32, #tpu.memory_space<vmem>>, vector<1x8x128xf32>,
    return
  }
  func.func @transform_0(%arg0: i32) -> (i32, i32, i32) {
    %c0_i32 = arith.constant 0 : i32
    %c0_i32_0 = arith.constant 0 : i32
    %c0_i32_1 = arith.constant 0 : i32
    return %arg0, %c0_i32, %c0_i32_0 : i32, i32, i32
  }
  func.func @transform_1(%arg0: i32) -> (i32, i32, i32) {
    %c0_i32 = arith.constant 0 : i32
    %c0_i32_0 = arith.constant 0 : i32
    %c0_i32_1 = arith.constant 0 : i32
    return %arg0, %c0_i32, %c0_i32_0 : i32, i32, i32
  }
  func.func @transform_2(%arg0: i32) -> (i32, i32, i32) {
    %c0_i32 = arith.constant 0 : i32
    %c0_i32_0 = arith.constant 0 : i32
    %c0_i32_1 = arith.constant 0 : i32
    return %arg0, %c0_i32, %c0_i32_0 : i32, i32, i32
  }
  func.func @transform_3(%arg0: i32) -> (i32, i32, i32) {
    %c0_i32 = arith.constant 0 : i32
    %c0_i32_0 = arith.constant 0 : i32
    %c0_i32_1 = arith.constant 0 : i32
    return %arg0, %c0_i32, %c0_i32_0 : i32, i32, i32
  }
  func.func @transform_4(%arg0: i32) -> (i32, i32) {
    %c0_i32 = arith.constant 0 : i32
    %c0_i32_0 = arith.constant 0 : i32
    %c0_i32_1 = arith.constant 0 : i32
    return %c0_i32, %c0_i32_0 : i32, i32
  }
  func.func @transform_5(%arg0: i32) -> (i32, i32) {
    %c0_i32 = arith.constant 0 : i32
    %c0_i32_0 = arith.constant 0 : i32
    %c0_i32_1 = arith.constant 0 : i32
    return %c0_i32, %c0_i32_0 : i32, i32
  }
  func.func @transform_6(%arg0: i32) -> (i32, i32) {
    %c0_i32 = arith.constant 0 : i32
    %c0_i32_0 = arith.constant 0 : i32
    %c0_i32_1 = arith.constant 0 : i32
    return %c0_i32, %c0_i32_0 : i32, i32
  }
  func.func @transform_7(%arg0: i32) -> (i32, i32, i32) {
    %c0_i32 = arith.constant 0 : i32
    %c0_i32_0 = arith.constant 0 : i32
    %c0_i32_1 = arith.constant 0 : i32
    return %arg0, %c0_i32, %c0_i32_0 : i32, i32, i32
  }
}

</mosaic_0001>

<bundles_post_ra>
// kernel: squeeze.1
= control target key start
LH: loop header
LB: loop body
LE: loop exit
PB: predicated region body
PF: predicated region fallthrough
CT: control target
= control target key end

     0   :  { %vm7_vm0 = vcmask 64512   ;;  %vm13_vm1 = vcmask 130112   ;;  %s39_s0 = inlined_call_operand.vmem [shape: f32[2,8], index: 0, kind: input, shape index: {}]   ;;  %s40_s1 = inlined_call_operand.vmem [shape: f32[16], index: 1, kind: output, shape index: {}]  }
   0x1   :  { %v4_v0 = vld [vmem:[%s39_s0] sm:$0x3]  ;;  %s22_s0 = smov 8  }
   0x2   :  { %5 = vst [vmem:[#allocation1] sm:$0x3] %v4_v0 }
   0x9   :  { %v10_v1 = vld [vmem:[#allocation1 + $0x1] sm:$0x1]   ;;  %v6_v2 = vld [vmem:[#allocation1] sm:$0x1]  }
   0xa   :  { %11 = vrot.lane.b32.xlu0 %v10_v1, %s22_s0  ;;  %8 = vst.msk [vmem:[#allocation0] sm:$0x1] %vm7_vm0, %v6_v2  }
  0x7c   :  { %v12_v3 = vpop.permute.xlu0 %11  }
  0x7d   :  { %14 = vst.msk [vmem:[#allocation0] sm:$0x1] %vm13_vm1, %v12_v3  }
  0x84   :  { %v18_v4 = vld [vmem:[#allocation0] sm:$0x1] }
  0x85   :  { %20 = vst [vmem:[%s40_s1] sm:$0x1] %v18_v4 }

// kernel: simgnn_forward.1
= control target key start
LH: loop header
LB: loop body
LE: loop exit
PB: predicated region body
PF: predicated region fallthrough
CT: control target
= control target key end

     0   :  { %s5469_s24 = smov 0   ;;  %s6768_s0 = inlined_call_operand.vmem [shape: f32[2,256,256], index: 0, kind: input, shape index: {}]   ;;  %s6769_s1 = inlined_call_operand.vmem [shape: f32[2,256,16], index: 1, kind: input, shape index: {}]   ;;  %s6770_s2 = inlined_call_operand.vmem [shape: f32[2,16,256], index: 2, kind: input, shape index: {}]   ;;  %s6771_s3 = inlined_call_operand.vmem [shape: f32[2,256,16], index: 3, kind: input, shape index: {}]   ;;  %s6772_s4 = inlined_call_operand.vmem [shape: f32[448,64], index: 4, kind: input, shape index: {}]   ;;  %s6773_s5 = inlined_call_operand.vmem [shape: f32[1,145], index: 5, kind: input, shape index: {}]   ;;  %s6774_s6 = inlined_call_operand.vmem [shape: f32[32,256], index: 6, kind: input, shape index: {}]   ;;  %s6775_s7 = inlined_call_operand.vmem [shape: f32[2,8,128], index: 7, kind: output, shape index: {}]  }
   0x1 LB: > { %s4032_s25 = sadd.s32 4294967295, %s5419_s24   ;;  %p4036_p0 = scmp.ge.s32.totalorder %s5419_s24, 1  ;;  %s5419_s24 = sphi %s5469_s24, %s17_s24  }
   0x2   : > { %p267_p1 = scmp.lt.s32.totalorder %s5419_s24, 3 }
   0x4   : > { %p268_p2 = pnand %p4036_p0, %p267_p1 }
   0x6   : > { %271 = sbr.rel (%p268_p2) target bundleno = 3904 (0xf40), region = 48 }
   0xd   : > { %v337_v0 = vld [vmem:[%s6772_s4] sm:$0xff]  ;;  %v338_v1 = vld [vmem:[%s6772_s4 + $0x8] sm:$0xff]  ;;  %p313_p3 = scmp.lt.s32.totalorder %s4032_s25, 1  ;;  %vm535_vm0 = vcmask 130048   ;;  %v6776_v35 = vmov 0.0|0.0   ;;  %vm1120_vm1 = vcmask 523264  }
   0xe   : > { %v4858_v2 = vpack.c.bf16 %v338_v1, %v337_v0  ;;  %4862 = vmatprep.subr.bf16.mxu1 %v6776_v35  ;;  %s5422_s13 = smov 64   ;;  %vm1702_vm2 = vcmask 261120   ;;  %s5423_s27 = smov 32   ;;  %vm5425_vm3 = vmmov 0  }
   0xf   : > { %s6827_s25 = smov (!%p313_p3, %s4032_s25), 1  ;;  %s5426_s22 = smov 16  }
  0x10   : > { %4859 = vmatprep.subr.bf16.mxu0 %v4858_v2  ;;  %s4250_s30 = sshll.u32 %s6827_s25, 8  ;;  %s4249_s11 = sshll.u32 %s6827_s25, 9 }
  0x11   : > { %4861 = vmatpush3.bf16.msra.mxu0 %v4858_v2  ;;  %s5491_s10 = scalar_lea.vmem %s6769_s1, %s4250_s30  ;;  %s5562_s14 = scalar_lea.vmem %s6768_s0, %s4249_s11 }
  0x12   : > { %v467_v3 = vld [vmem:[%s5491_s10] sm:$0xff]  ;;  %v468_v4 = vld [vmem:[%s5491_s10 + $0x8] sm:$0xff]  ;;  %v469_v5 = vld [vmem:[%s5491_s10 + $0x10] sm:$0xff]  ;;  %s6381_s16 = scalar_lea.vmem %s6771_s3, %s4250_s30 }
  0x13   : > { %4558 = vmatprep.mubr.msk.f32.mxu0 %vm535_vm0, %v467_v3  ;;  %v470_v6 = vld [vmem:[%s5491_s10 + $0x18] sm:$0xff]  ;;  %v471_v7 = vld [vmem:[%s5491_s10 + $0x20] sm:$0xff]  ;;  %v472_v8 = vld [vmem:[%s5491_s10 + $0x28] sm:$0xff] }
  0x14   : > { %4559 = vmatmul.mubr.msk.f32.vlgmr.msra.gmra.mrb[0].mxu0 %vm535_vm0, %v468_v4  ;;  %v473_v9 = vld [vmem:[%s5491_s10 + $0x30] sm:$0xff]  ;;  %v474_v10 = vld [vmem:[%s5491_s10 + $0x38] sm:$0xff]  ;;  %v475_v11 = vld [vmem:[%s5491_s10 + $0x40] sm:$0xff] }
  0x15   : > { %4561 = vmatprep.mubr.msk.f32.mxu0 %vm535_vm0, %v469_v5  ;;  %v476_v12 = vld [vmem:[%s5491_s10 + $0x48] sm:$0xff]  ;;  %v477_v13 = vld [vmem:[%s5491_s10 + $0x50] sm:$0xff]  ;;  %v478_v14 = vld [vmem:[%s5491_s10 + $0x58] sm:$0xff] }
  0x16   : > { %v479_v15 = vld [vmem:[%s5491_s10 + $0x60] sm:$0xff]  ;;  %v480_v16 = vld [vmem:[%s5491_s10 + $0x68] sm:$0xff]  ;;  %v481_v17 = vld [vmem:[%s5491_s10 + $0x70] sm:$0xff] }
  0x17   : > { %v482_v18 = vld [vmem:[%s5491_s10 + $0x78] sm:$0xff]  ;;  %v483_v19 = vld [vmem:[%s5491_s10 + $0x80] sm:$0xff]  ;;  %v484_v20 = vld [vmem:[%s5491_s10 + $0x88] sm:$0xff] }
  0x18   : > { %4562 = vmatmul.mubr.msk.f32.gmra.mrb[2].mxu0 %vm535_vm0, %v470_v6  ;;  %v485_v21 = vld [vmem:[%s5491_s10 + $0x90] sm:$0xff]  ;;  %v486_v22 = vld [vmem:[%s5491_s10 + $0x98] sm:$0xff]  ;;  %v487_v23 = vld [vmem:[%s5491_s10 + $0xa0] sm:$0xff] }
  0x19   : > { %4564 = vmatprep.mubr.msk.f32.mxu0 %vm535_vm0, %v471_v7  ;;  %v488_v24 = vld [vmem:[%s5491_s10 + $0xa8] sm:$0xff]  ;;  %v489_v25 = vld [vmem:[%s5491_s10 + $0xb0] sm:$0xff]  ;;  %v490_v26 = vld [vmem:[%s5491_s10 + $0xb8] sm:$0xff] }
  0x1a   : > { %v491_v27 = vld [vmem:[%s5491_s10 + $0xc0] sm:$0xff]  ;;  %v492_v28 = vld [vmem:[%s5491_s10 + $0xc8] sm:$0xff]  ;;  %v493_v29 = vld [vmem:[%s5491_s10 + $0xd0] sm:$0xff] }
  0x1b   : > { %v494_v30 = vld [vmem:[%s5491_s10 + $0xd8] sm:$0xff]  ;;  %v495_v31 = vld [vmem:[%s5491_s10 + $0xe0] sm:$0xff]  ;;  %v496_v32 = vld [vmem:[%s5491_s10 + $0xe8] sm:$0xff] }
  0x1c   : > { %4565 = vmatmul.mubr.msk.f32.gmra.mrb[4].mxu0 %vm535_vm0, %v472_v8  ;;  %v497_v33 = vld [vmem:[%s5491_s10 + $0xf0] sm:$0xff]  ;;  %v498_v34 = vld [vmem:[%s5491_s10 + $0xf8] sm:$0xff]  ;;  %v5565_v36 = vld [vmem:[%s5562_s14 + $0x8] sm:$0xff] }
  0x1d   : > { %4567 = vmatprep.mubr.msk.f32.mxu0 %vm535_vm0, %v473_v9  ;;  %927 = vmatprep.mubr.f32.mxu1 %v5565_v36 }
  0x20   : > { %4568 = vmatmul.mubr.msk.f32.gmra.mrb[6].mxu0 %vm535_vm0, %v474_v10 }
  0x21   : > { %4570 = vmatprep.mubr.msk.f32.mxu0 %vm535_vm0, %v475_v11 }
  0x24   : > { %4571 = vmatmul.mubr.msk.f32.gmra.mrb[8].mxu0 %vm535_vm0, %v476_v12 }
  0x25   : > { %4573 = vmatprep.mubr.msk.f32.mxu0 %vm535_vm0, %v477_v13 }
  0x28   : > { %4574 = vmatmul.mubr.msk.f32.gmra.mrb[10].mxu0 %vm535_vm0, %v478_v14 }
  0x29   : > { %4576 = vmatprep.mubr.msk.f32.mxu0 %vm535_vm0, %v479_v15 }
  0x2c   : > { %4577 = vmatmul.mubr.msk.f32.gmra.mrb[12].mxu0 %vm535_vm0, %v480_v16 }
  0x2d   : > { %4579 = vmatprep.mubr.msk.f32.mxu0 %vm535_vm0, %v481_v17 }
  0x30   : > { %4580 = vmatmul.mubr.msk.f32.gmra.mrb[14].mxu0 %vm535_vm0, %v482_v18 }
  0x31   : > { %4582 = vmatprep.mubr.msk.f32.mxu0 %vm535_vm0, %v483_v19 }
  0x34   : > { %4583 = vmatmul.mubr.msk.f32.gmra.mrb[16].mxu0 %vm535_vm0, %v484_v20 }
  0x35   : > { %4585 = vmatprep.mubr.msk.f32.mxu0 %vm535_vm0, %v485_v21  ;;  %v339_v21 = vld [vmem:[%s6772_s4 + $0x10] sm:$0xff] }
  0x38   : > { %4586 = vmatmul.mubr.msk.f32.gmra.mrb[18].mxu0 %vm535_vm0, %v486_v22  ;;  %v340_v22 = vld [vmem:[%s6772_s4 + $0x18] sm:$0xff] }
  0x39   : > { %4588 = vmatprep.mubr.msk.f32.mxu0 %vm535_vm0, %v487_v23  ;;  %v341_v23 = vld [vmem:[%s6772_s4 + $0x20] sm:$0xff] }
  0x3c   : > { %4589 = vmatmul.mubr.msk.f32.gmra.mrb[20].mxu0 %vm535_vm0, %v488_v24  ;;  %v5593_v24 = vld [vmem:[%s5562_s14] sm:$0xff] }
  0x3d   : > { %4591 = vmatprep.mubr.msk.f32.mxu0 %vm535_vm0, %v489_v25  ;;  %v4910_v25 = vpack.c.bf16 %v340_v22, %v339_v21  ;;  %v5809_v21 = vld [vmem:[%s5562_s14 + $0x190] sm:$0xff]  ;;  %v5812_v22 = vld [vmem:[%s5562_s14 + $0x1a8] sm:$0xff] }
  0x3e   : > { %6796 = vst [vmem:[#allocation4_spill] sm:$0xff] %v5809_v21  ;;  %6797 = vst [vmem:[#allocation5_spill] sm:$0xff] %v5812_v22 }
  0x3f   : > { %4911 = vmatprep.subr.bf16.mxu0 %v4910_v25 }
  0x40   : > { %4592 = vmatmul.mubr.msk.f32.gmra.mrb[22].mxu0 %vm535_vm0, %v490_v26  ;;  %v342_v26 = vld [vmem:[%s6772_s4 + $0x28] sm:$0xff] }
  0x41   : > { %4594 = vmatprep.mubr.msk.f32.mxu0 %vm535_vm0, %v491_v27  ;;  %v5599_v27 = vld [vmem:[%s5562_s14 + $0x18] sm:$0xff]  ;;  %4913 = vmatpush3.bf16.msra.mxu0 %v4910_v25 }
  0x42   : > { %v5820_v25 = vld [vmem:[%s5562_s14 + $0x1b8] sm:$0xff] }
  0x43   : > { %6799 = vst [vmem:[#allocation7_spill] sm:$0xff] %v5820_v25 }
  0x44   : > { %4595 = vmatmul.mubr.msk.f32.gmra.mrb[24].mxu0 %vm535_vm0, %v492_v28  ;;  %v4914_v28 = vpack.c.bf16 %v342_v26, %v341_v23  ;;  %v5817_v23 = vld [vmem:[%s5562_s14 + $0x1a0] sm:$0xff]  ;;  %v5825_v26 = vld [vmem:[%s5562_s14 + $0x1b0] sm:$0xff] }
  0x45   : > { %4597 = vmatprep.mubr.msk.f32.mxu0 %vm535_vm0, %v493_v29  ;;  %v5604_v29 = vld [vmem:[%s5562_s14 + $0x10] sm:$0xff]  ;;  %6798 = vst [vmem:[#allocation6_spill] sm:$0xff] %v5817_v23  ;;  %6800 = vst [vmem:[#allocation8_spill] sm:$0xff] %v5825_v26 }
  0x46   : > { %4915 = vmatprep.subr.bf16.mxu0 %v4914_v28 }
  0x47   : > { %4917 = vmatpush3.bf16.msra.mxu0 %v4914_v28  ;;  %v5828_v28 = vld [vmem:[%s5562_s14 + $0x1c8] sm:$0xff] }
  0x48   : > { %4598 = vmatmul.mubr.msk.f32.gmra.mrb[26].mxu0 %vm535_vm0, %v494_v30  ;;  %v5607_v30 = vld [vmem:[%s5562_s14 + $0x28] sm:$0xff]  ;;  %6801 = vst [vmem:[#allocation9_spill] sm:$0xff] %v5828_v28 }
  0x49   : > { %4600 = vmatprep.mubr.msk.f32.mxu0 %vm535_vm0, %v495_v31  ;;  %v5612_v31 = vld [vmem:[%s5562_s14 + $0x20] sm:$0xff] }
  0x4c   : > { %4601 = vmatmul.mubr.msk.f32.gmra.mrb[28].mxu0 %vm535_vm0, %v496_v32  ;;  %v5615_v32 = vld [vmem:[%s5562_s14 + $0x38] sm:$0xff] }
  0x4d   : > { %4603 = vmatprep.mubr.msk.f32.mxu0 %vm535_vm0, %v497_v33  ;;  %v5620_v33 = vld [vmem:[%s5562_s14 + $0x30] sm:$0xff] }
  0x50   : > { %4604 = vmatmul.mubr.msk.f32.gmra.mrb[30].mxu0 %vm535_vm0, %v498_v34  ;;  %v5623_v34 = vld [vmem:[%s5562_s14 + $0x48] sm:$0xff] }
  0xe7   : > { %v4560_v37 = vpop.f32.mrb[0].mxu0 }
  0xe8   : > { %v698_v38 = vpop.f32.mrb[1].mxu0 }
  0xe9   : > { %v4863_v39 = vpack.c.bf16 %v4560_v37, %v698_v38  ;;  %v5628_v37 = vld [vmem:[%s5562_s14 + $0x40] sm:$0xff]  ;;  %v5631_v38 = vld [vmem:[%s5562_s14 + $0x58] sm:$0xff] }
  0xeb   : > { %v4563_v40 = vpop.f32.mrb[2].mxu0  ;;  %4864 = vmatpush1.bf16.msra.mxu1 %v4863_v39  ;;  %v5636_v39 = vld [vmem:[%s5562_s14 + $0x50] sm:$0xff] }
  0xec   : > { %v708_v41 = vpop.f32.mrb[3].mxu0  ;;  %4865 = vmatprep.subr.bf16.mxu1 %v6776_v35 }
  0xed   : > { %v4866_v42 = vpack.c.bf16 %v4563_v40, %v708_v41  ;;  %v5639_v40 = vld [vmem:[%s5562_s14 + $0x68] sm:$0xff]  ;;  %v5644_v41 = vld [vmem:[%s5562_s14 + $0x60] sm:$0xff] }
  0xef   : > { %v4566_v43 = vpop.f32.mrb[4].mxu0  ;;  %4867 = vmatpush1.bf16.msra.mxu1 %v4866_v42  ;;  %v5647_v42 = vld [vmem:[%s5562_s14 + $0x78] sm:$0xff] }
  0xf0   : > { %v718_v44 = vpop.f32.mrb[5].mxu0  ;;  %4868 = vmatprep.subr.bf16.mxu1 %v6776_v35 }
  0xf1   : > { %v4869_v45 = vpack.c.bf16 %v4566_v43, %v718_v44  ;;  %v5652_v43 = vld [vmem:[%s5562_s14 + $0x70] sm:$0xff]  ;;  %v5655_v44 = vld [vmem:[%s5562_s14 + $0x88] sm:$0xff] }
  0xf3   : > { %v4569_v46 = vpop.f32.mrb[6].mxu0  ;;  %4870 = vmatpush1.bf16.msra.mxu1 %v4869_v45  ;;  %v5660_v45 = vld [vmem:[%s5562_s14 + $0x80] sm:$0xff] }
  0xf4   : > { %v728_v47 = vpop.f32.mrb[7].mxu0  ;;  %4871 = vmatprep.subr.bf16.mxu1 %v6776_v35 }
  0xf5   : > { %v4872_v48 = vpack.c.bf16 %v4569_v46, %v728_v47  ;;  %v5663_v46 = vld [vmem:[%s5562_s14 + $0x98] sm:$0xff]  ;;  %v5668_v47 = vld [vmem:[%s5562_s14 + $0x90] sm:$0xff] }
  0xf7   : > { %v4572_v49 = vpop.f32.mrb[8].mxu0  ;;  %4873 = vmatpush1.bf16.msra.mxu1 %v4872_v48  ;;  %v5671_v48 = vld [vmem:[%s5562_s14 + $0xa8] sm:$0xff] }
  0xf8   : > { %v738_v50 = vpop.f32.mrb[9].mxu0  ;;  %4874 = vmatprep.subr.bf16.mxu1 %v6776_v35 }
  0xf9   : > { %v4875_v51 = vpack.c.bf16 %v4572_v49, %v738_v50  ;;  %v5676_v49 = vld [vmem:[%s5562_s14 + $0xa0] sm:$0xff]  ;;  %v5679_v50 = vld [vmem:[%s5562_s14 + $0xb8] sm:$0xff] }
  0xfb   : > { %v4575_v52 = vpop.f32.mrb[10].mxu0  ;;  %4876 = vmatpush1.bf16.msra.mxu1 %v4875_v51  ;;  %v5684_v51 = vld [vmem:[%s5562_s14 + $0xb0] sm:$0xff] }
  0xfc   : > { %v748_v53 = vpop.f32.mrb[11].mxu0  ;;  %4877 = vmatprep.subr.bf16.mxu1 %v6776_v35 }
  0xfd   : > { %v4878_v54 = vpack.c.bf16 %v4575_v52, %v748_v53  ;;  %v5687_v52 = vld [vmem:[%s5562_s14 + $0xc8] sm:$0xff]  ;;  %v5692_v53 = vld [vmem:[%s5562_s14 + $0xc0] sm:$0xff] }
  0xff   : > { %v4578_v55 = vpop.f32.mrb[12].mxu0  ;;  %4879 = vmatpush1.bf16.msra.mxu1 %v4878_v54  ;;  %v5695_v54 = vld [vmem:[%s5562_s14 + $0xd8] sm:$0xff] }
 0x100   : > { %v758_v56 = vpop.f32.mrb[13].mxu0  ;;  %4880 = vmatprep.subr.bf16.mxu1 %v6776_v35 }
 0x101   : > { %v4881_v57 = vpack.c.bf16 %v4578_v55, %v758_v56  ;;  %v5700_v55 = vld [vmem:[%s5562_s14 + $0xd0] sm:$0xff]  ;;  %v5703_v56 = vld [vmem:[%s5562_s14 + $0xe8] sm:$0xff] }
 0x103   : > { %v4581_v58 = vpop.f32.mrb[14].mxu0  ;;  %4882 = vmatpush1.bf16.msra.mxu1 %v4881_v57  ;;  %v5708_v57 = vld [vmem:[%s5562_s14 + $0xe0] sm:$0xff] }
 0x104   : > { %v768_v59 = vpop.f32.mrb[15].mxu0  ;;  %4883 = vmatprep.subr.bf16.mxu1 %v6776_v35 }
 0x105   : > { %v4884_v60 = vpack.c.bf16 %v4581_v58, %v768_v59  ;;  %v5711_v58 = vld [vmem:[%s5562_s14 + $0xf8] sm:$0xff]  ;;  %v5716_v59 = vld [vmem:[%s5562_s14 + $0xf0] sm:$0xff] }
 0x107   : > { %v4584_v61 = vpop.f32.mrb[16].mxu0  ;;  %4885 = vmatpush1.bf16.msra.mxu1 %v4884_v60  ;;  %v5719_v60 = vld [vmem:[%s5562_s14 + $0x108] sm:$0xff] }
 0x108   : > { %v778_v62 = vpop.f32.mrb[17].mxu0  ;;  %4886 = vmatprep.subr.bf16.mxu1 %v6776_v35 }
 0x109   : > { %v4887_v63 = vpack.c.bf16 %v4584_v61, %v778_v62  ;;  %v5724_v61 = vld [vmem:[%s5562_s14 + $0x100] sm:$0xff]  ;;  %v5727_v62 = vld [vmem:[%s5562_s14 + $0x118] sm:$0xff] }
 0x10b   : > { %v4587_v0 = vpop.f32.mrb[18].mxu0  ;;  %4888 = vmatpush1.bf16.msra.mxu1 %v4887_v63  ;;  %v5732_v63 = vld [vmem:[%s5562_s14 + $0x110] sm:$0xff] }
 0x10c   : > { %v788_v1 = vpop.f32.mrb[19].mxu0  ;;  %4889 = vmatprep.subr.bf16.mxu1 %v6776_v35 }
 0x10d   : > { %v4890_v2 = vpack.c.bf16 %v4587_v0, %v788_v1  ;;  %v5735_v0 = vld [vmem:[%s5562_s14 + $0x128] sm:$0xff]  ;;  %v5740_v1 = vld [vmem:[%s5562_s14 + $0x120] sm:$0xff] }
 0x10f   : > { %v4590_v3 = vpop.f32.mrb[20].mxu0  ;;  %4891 = vmatpush1.bf16.msra.mxu1 %v4890_v2  ;;  %v5743_v2 = vld [vmem:[%s5562_s14 + $0x138] sm:$0xff] }
 0x110   : > { %v798_v4 = vpop.f32.mrb[21].mxu0  ;;  %4892 = vmatprep.subr.bf16.mxu1 %v6776_v35 }
 0x111   : > { %v4893_v5 = vpack.c.bf16 %v4590_v3, %v798_v4  ;;  %v5748_v3 = vld [vmem:[%s5562_s14 + $0x130] sm:$0xff]  ;;  %v5751_v4 = vld [vmem:[%s5562_s14 + $0x148] sm:$0xff] }
 0x113   : > { %v4593_v6 = vpop.f32.mrb[22].mxu0  ;;  %4894 = vmatpush1.bf16.msra.mxu1 %v4893_v5  ;;  %v5756_v5 = vld [vmem:[%s5562_s14 + $0x140] sm:$0xff] }
 0x114   : > { %v808_v7 = vpop.f32.mrb[23].mxu0  ;;  %4895 = vmatprep.subr.bf16.mxu1 %v6776_v35 }
 0x115   : > { %v4896_v8 = vpack.c.bf16 %v4593_v6, %v808_v7  ;;  %v5759_v6 = vld [vmem:[%s5562_s14 + $0x158] sm:$0xff]  ;;  %v5764_v7 = vld [vmem:[%s5562_s14 + $0x150] sm:$0xff] }
 0x117   : > { %v4596_v9 = vpop.f32.mrb[24].mxu0  ;;  %4897 = vmatpush1.bf16.msra.mxu1 %v4896_v8  ;;  %v343_v8 = vld [vmem:[%s6772_s4 + $0x30] sm:$0xff] }
 0x118   : > { %v818_v10 = vpop.f32.mrb[25].mxu0  ;;  %4898 = vmatprep.subr.bf16.mxu1 %v6776_v35 }
 0x119   : > { %v4899_v11 = vpack.c.bf16 %v4596_v9, %v818_v10  ;;  %v344_v9 = vld [vmem:[%s6772_s4 + $0x38] sm:$0xff]  ;;  %v5773_v10 = vld [vmem:[%s5562_s14 + $0x168] sm:$0xff] }
 0x11b   : > { %v4599_v12 = vpop.f32.mrb[26].mxu0  ;;  %4900 = vmatpush1.bf16.msra.mxu1 %v4899_v11  ;;  %v4918_v11 = vpack.c.bf16 %v344_v9, %v343_v8  ;;  %v5833_v8 = vld [vmem:[%s5562_s14 + $0x1c0] sm:$0xff]  ;;  %v5836_v9 = vld [vmem:[%s5562_s14 + $0x1d8] sm:$0xff] }
 0x11c   : > { %v828_v13 = vpop.f32.mrb[27].mxu0  ;;  %4901 = vmatprep.subr.bf16.mxu1 %v6776_v35  ;;  %6802 = vst [vmem:[#allocation10_spill] sm:$0xff] %v5833_v8  ;;  %6803 = vst [vmem:[#allocation11_spill] sm:$0xff] %v5836_v9 }
 0x11d   : > { %v4902_v14 = vpack.c.bf16 %v4599_v12, %v828_v13  ;;  %4919 = vmatprep.subr.bf16.mxu0 %v4918_v11  ;;  %v5778_v12 = vld [vmem:[%s5562_s14 + $0x160] sm:$0xff] }
 0x11e   : > { %4921 = vmatpush3.bf16.msra.mxu0 %v4918_v11  ;;  %v345_v13 = vld [vmem:[%s6772_s4 + $0x40] sm:$0xff]  ;;  %v5841_v11 = vld [vmem:[%s5562_s14 + $0x1d0] sm:$0xff] }
 0x11f   : > { %v4602_v15 = vpop.f32.mrb[28].mxu0  ;;  %4903 = vmatpush1.bf16.msra.mxu1 %v4902_v14  ;;  %v346_v14 = vld [vmem:[%s6772_s4 + $0x48] sm:$0xff]  ;;  %6804 = vst [vmem:[#allocation12_spill] sm:$0xff] %v5841_v11 }
 0x120   : > { %v838_v16 = vpop.f32.mrb[29].mxu0  ;;  %4904 = vmatprep.subr.bf16.mxu1 %v6776_v35 }
 0x121   : > { %v4905_v17 = vpack.c.bf16 %v4602_v15, %v838_v16  ;;  %v5787_v15 = vld [vmem:[%s5562_s14 + $0x178] sm:$0xff]  ;;  %v4922_v16 = vpack.c.bf16 %v346_v14, %v345_v13  ;;  %v5844_v13 = vld [vmem:[%s5562_s14 + $0x1e8] sm:$0xff]  ;;  %v5849_v14 = vld [vmem:[%s5562_s14 + $0x1e0] sm:$0xff] }
 0x122   : > { %6805 = vst [vmem:[#allocation13_spill] sm:$0xff] %v5844_v13  ;;  %6806 = vst [vmem:[#allocation14_spill] sm:$0xff] %v5849_v14 }
 0x123   : > { %v4605_v18 = vpop.f32.mrb[30].mxu0  ;;  %4906 = vmatpush1.bf16.msra.mxu1 %v4905_v17  ;;  %4923 = vmatprep.subr.bf16.mxu0 %v4922_v16  ;;  %v5792_v17 = vld [vmem:[%s5562_s14 + $0x170] sm:$0xff] }
 0x124   : > { %v848_v19 = vpop.f32.mrb[31].mxu0  ;;  %4907 = vmatprep.subr.bf16.mxu1 %v6776_v35  ;;  %4925 = vmatpush3.bf16.msra.mxu0 %v4922_v16  ;;  %v5852_v16 = vld [vmem:[%s5562_s14 + $0x1f8] sm:$0xff] }
 0x125   : > { %v4908_v20 = vpack.c.bf16 %v4605_v18, %v848_v19  ;;  %v5795_v18 = vld [vmem:[%s5562_s14 + $0x188] sm:$0xff]  ;;  %4926 = vmatprep.subr.bf16.mxu0 %v6776_v35  ;;  %v5801_v19 = vld [vmem:[%s5562_s14 + $0x180] sm:$0xff]  ;;  %6807 = vst [vmem:[#allocation15_spill] sm:$0xff] %v5852_v16  ;;  %v5857_v35 = vld [vmem:[%s5562_s14 + $0x1f0] sm:$0xff] }
 0x126   : > { %6794 = vst [vmem:[#allocation2_spill] sm:$0xff] %v5801_v19  ;;  %6808 = vst [vmem:[#allocation16_spill] sm:$0xff] %v5857_v35 }
 0x127   : > { %4909 = vmatpush1.bf16.msra.mxu1 %v4908_v20  ;;  %v5804_v20 = vld [vmem:[%s5562_s14 + $0x198] sm:$0xff] }
 0x128   : > { %6795 = vst [vmem:[#allocation3_spill] sm:$0xff] %v5804_v20 }
 0x12a   : > { %928 = vmatmul.mubr.f32.vlgmr.msra.gmra.mrb[0].mxu1 %v5593_v24 }
 0x12b   : > { %932 = vmatprep.mubr.f32.mxu1 %v5599_v27 }
 0x12e   : > { %933 = vmatmul.mubr.f32.gmra.mrb[2].mxu1 %v5604_v29 }
 0x12f   : > { %937 = vmatprep.mubr.f32.mxu1 %v5607_v30 }
 0x132   : > { %938 = vmatmul.mubr.f32.gmra.mrb[4].mxu1 %v5612_v31 }
 0x133   : > { %942 = vmatprep.mubr.f32.mxu1 %v5615_v32 }
 0x136   : > { %943 = vmatmul.mubr.f32.gmra.mrb[6].mxu1 %v5620_v33 }
 0x137   : > { %947 = vmatprep.mubr.f32.mxu1 %v5623_v34 }
 0x13a   : > { %948 = vmatmul.mubr.f32.gmra.mrb[8].mxu1 %v5628_v37 }
 0x13b   : > { %952 = vmatprep.mubr.f32.mxu1 %v5631_v38 }
 0x13e   : > { %953 = vmatmul.mubr.f32.gmra.mrb[10].mxu1 %v5636_v39 }
 0x13f   : > { %957 = vmatprep.mubr.f32.mxu1 %v5639_v40 }
 0x142   : > { %958 = vmatmul.mubr.f32.gmra.mrb[12].mxu1 %v5644_v41 }
 0x143   : > { %962 = vmatprep.mubr.f32.mxu1 %v5647_v42 }
 0x146   : > { %963 = vmatmul.mubr.f32.gmra.mrb[14].mxu1 %v5652_v43 }
 0x147   : > { %967 = vmatprep.mubr.f32.mxu1 %v5655_v44 }
 0x14a   : > { %968 = vmatmul.mubr.f32.gmra.mrb[16].mxu1 %v5660_v45 }
 0x14b   : > { %972 = vmatprep.mubr.f32.mxu1 %v5663_v46 }
 0x14e   : > { %973 = vmatmul.mubr.f32.gmra.mrb[18].mxu1 %v5668_v47 }
 0x14f   : > { %977 = vmatprep.mubr.f32.mxu1 %v5671_v48 }
 0x152   : > { %978 = vmatmul.mubr.f32.gmra.mrb[20].mxu1 %v5676_v49 }
 0x153   : > { %982 = vmatprep.mubr.f32.mxu1 %v5679_v50 }
 0x156   : > { %983 = vmatmul.mubr.f32.gmra.mrb[22].mxu1 %v5684_v51 }
 0x157   : > { %987 = vmatprep.mubr.f32.mxu1 %v5687_v52 }
 0x15a   : > { %988 = vmatmul.mubr.f32.gmra.mrb[24].mxu1 %v5692_v53 }
 0x15b   : > { %992 = vmatprep.mubr.f32.mxu1 %v5695_v54 }
 0x15e   : > { %993 = vmatmul.mubr.f32.gmra.mrb[26].mxu1 %v5700_v55 }
 0x15f   : > { %997 = vmatprep.mubr.f32.mxu1 %v5703_v56 }
 0x162   : > { %998 = vmatmul.mubr.f32.gmra.mrb[28].mxu1 %v5708_v57 }
 0x163   : > { %1002 = vmatprep.mubr.f32.mxu1 %v5711_v58 }
 0x166   : > { %1003 = vmatmul.mubr.f32.gmra.mrb[30].mxu1 %v5716_v59 }
 0x167   : > { %1007 = vmatprep.mubr.f32.mxu1 %v5719_v60 }
 0x16a   : > { %1008 = vmatmul.mubr.f32.gmra.mrb[32].mxu1 %v5724_v61 }
 0x16b   : > { %1012 = vmatprep.mubr.f32.mxu1 %v5727_v62 }
 0x16e   : > { %1013 = vmatmul.mubr.f32.gmra.mrb[34].mxu1 %v5732_v63 }
 0x16f   : > { %1017 = vmatprep.mubr.f32.mxu1 %v5735_v0 }
 0x172   : > { %1018 = vmatmul.mubr.f32.gmra.mrb[36].mxu1 %v5740_v1 }
 0x173   : > { %1022 = vmatprep.mubr.f32.mxu1 %v5743_v2 }
 0x176   : > { %1023 = vmatmul.mubr.f32.gmra.mrb[38].mxu1 %v5748_v3 }
 0x177   : > { %1027 = vmatprep.mubr.f32.mxu1 %v5751_v4 }
 0x17a   : > { %1028 = vmatmul.mubr.f32.gmra.mrb[40].mxu1 %v5756_v5 }
 0x17b   : > { %1032 = vmatprep.mubr.f32.mxu1 %v5759_v6 }
 0x17e   : > { %1033 = vmatmul.mubr.f32.gmra.mrb[42].mxu1 %v5764_v7 }
 0x17f   : > { %1037 = vmatprep.mubr.f32.mxu1 %v5773_v10 }
 0x182   : > { %1038 = vmatmul.mubr.f32.gmra.mrb[44].mxu1 %v5778_v12 }
 0x183   : > { %1042 = vmatprep.mubr.f32.mxu1 %v5787_v15 }
 0x186   : > { %1043 = vmatmul.mubr.f32.gmra.mrb[46].mxu1 %v5792_v17 }
 0x187   : > { %1047 = vmatprep.mubr.f32.mxu1 %v5795_v18 }
 0x18a   : > { %1048 = vmatmul.mubr.f32.gmra.mrb[48].mxu1 %v5801_v19 }
 0x18b   : > { %1052 = vmatprep.mubr.f32.mxu1 %v5804_v20 }
 0x18e   : > { %1053 = vmatmul.mubr.f32.gmra.mrb[50].mxu1 %v5809_v21 }
 0x18f   : > { %1057 = vmatprep.mubr.f32.mxu1 %v5812_v22 }
 0x192   : > { %1058 = vmatmul.mubr.f32.gmra.mrb[52].mxu1 %v5817_v23 }
 0x193   : > { %1062 = vmatprep.mubr.f32.mxu1 %v5820_v25 }
 0x196   : > { %1063 = vmatmul.mubr.f32.gmra.mrb[54].mxu1 %v5825_v26 }
 0x197   : > { %1067 = vmatprep.mubr.f32.mxu1 %v5828_v28 }
 0x19a   : > { %1068 = vmatmul.mubr.f32.gmra.mrb[56].mxu1 %v5833_v8 }
 0x19b   : > { %1072 = vmatprep.mubr.f32.mxu1 %v5836_v9  ;;  %v5863_v9 = vld [vmem:[%s6773_s5] ss:$0 sm:$0xff] }
 0x19c   : > { %1442 = vrot.lane.b32.xlu0 %v5863_v9, %s5422_s13  ;;  %s4045_s13 = sshll.u32 %s6827_s25, 3 }
 0x19d   : > { %s336_s30 = scalar_lea.vmem %s6775_s7, %s4045_s13 }
 0x19e   : > { %1073 = vmatmul.mubr.f32.gmra.mrb[58].mxu1 %v5841_v11 }
 0x19f   : > { %1077 = vmatprep.mubr.f32.mxu1 %v5844_v13 }
 0x1a2   : > { %1078 = vmatmul.mubr.f32.gmra.mrb[60].mxu1 %v5849_v14 }
 0x1a3   : > { %1082 = vmatprep.mubr.f32.mxu1 %v5852_v16 }
 0x1a6   : > { %1083 = vmatmul.mubr.f32.gmra.mrb[62].mxu1 %v5857_v35 }
 0x1fd   : > { %v929_v11 = vpop.f32.mrb[0].mxu1 }
 0x1fe   : > { %v930_v13 = vadd.f32 %v5863_v9, %v929_v11  ;;  %v931_v8 = vpop.f32.mrb[1].mxu1 }
 0x200   : > { %v1088_v28 = vmax.f32 %v930_v13, 0.0 }
 0x201   : > { %v934_v26 = vpop.f32.mrb[2].mxu1 }
 0x202   : > { %v935_v14 = vadd.f32 %v5863_v9, %v934_v26  ;;  %v936_v25 = vpop.f32.mrb[3].mxu1  ;;  %4622 = vmatprep.mubr.msk.f32.mxu0 %vm1120_vm1, %v1088_v28 }
 0x204   : > { %v1089_v16 = vmax.f32 %v935_v14, 0.0 }
 0x205   : > { %v939_v23 = vpop.f32.mrb[4].mxu1 }
 0x206   : > { %v940_v35 = vadd.f32 %v5863_v9, %v939_v23  ;;  %v941_v22 = vpop.f32.mrb[5].mxu1  ;;  %4623 = vmatmul.mubr.msk.f32.vlgmr.msra.gmra.mrb[32].mxu0 %vm1120_vm1, %v1089_v16 }
 0x208   : > { %v1090_v21 = vmax.f32 %v940_v35, 0.0 }
 0x209   : > { %v944_v20 = vpop.f32.mrb[6].mxu1 }
 0x20a   : > { %v945_v11 = vadd.f32 %v5863_v9, %v944_v20  ;;  %v946_v8 = vpop.f32.mrb[7].mxu1  ;;  %4625 = vmatprep.mubr.msk.f32.mxu0 %vm1120_vm1, %v1090_v21 }
 0x20c   : > { %v1091_v13 = vmax.f32 %v945_v11, 0.0 }
 0x20d   : > { %v949_v19 = vpop.f32.mrb[8].mxu1 }
 0x20e   : > { %v950_v25 = vadd.f32 %v5863_v9, %v949_v19  ;;  %v951_v26 = vpop.f32.mrb[9].mxu1  ;;  %4626 = vmatmul.mubr.msk.f32.gmra.mrb[34].mxu0 %vm1120_vm1, %v1091_v13 }
 0x210   : > { %v1092_v28 = vmax.f32 %v950_v25, 0.0 }
 0x211   : > { %v954_v14 = vpop.f32.mrb[10].mxu1 }
 0x212   : > { %v955_v22 = vadd.f32 %v5863_v9, %v954_v14  ;;  %v956_v23 = vpop.f32.mrb[11].mxu1  ;;  %4628 = vmatprep.mubr.msk.f32.mxu0 %vm1120_vm1, %v1092_v28 }
 0x214   : > { %v1093_v35 = vmax.f32 %v955_v22, 0.0 }
 0x215   : > { %v959_v16 = vpop.f32.mrb[12].mxu1 }
 0x216   : > { %v960_v20 = vadd.f32 %v5863_v9, %v959_v16  ;;  %v961_v8 = vpop.f32.mrb[13].mxu1  ;;  %4629 = vmatmul.mubr.msk.f32.gmra.mrb[36].mxu0 %vm1120_vm1, %v1093_v35 }
 0x218   : > { %v1094_v21 = vmax.f32 %v960_v20, 0.0 }
 0x219   : > { %v964_v11 = vpop.f32.mrb[14].mxu1 }
 0x21a   : > { %v965_v19 = vadd.f32 %v5863_v9, %v964_v11  ;;  %v966_v26 = vpop.f32.mrb[15].mxu1  ;;  %4631 = vmatprep.mubr.msk.f32.mxu0 %vm1120_vm1, %v1094_v21 }
 0x21c   : > { %v1095_v13 = vmax.f32 %v965_v19, 0.0 }
 0x21d   : > { %v969_v25 = vpop.f32.mrb[16].mxu1 }
 0x21e   : > { %v970_v14 = vadd.f32 %v5863_v9, %v969_v25  ;;  %v971_v23 = vpop.f32.mrb[17].mxu1  ;;  %4632 = vmatmul.mubr.msk.f32.gmra.mrb[38].mxu0 %vm1120_vm1, %v1095_v13 }
 0x220   : > { %v1096_v28 = vmax.f32 %v970_v14, 0.0 }
 0x221   : > { %v974_v22 = vpop.f32.mrb[18].mxu1 }
 0x222   : > { %v975_v16 = vadd.f32 %v5863_v9, %v974_v22  ;;  %v976_v8 = vpop.f32.mrb[19].mxu1  ;;  %4634 = vmatprep.mubr.msk.f32.mxu0 %vm1120_vm1, %v1096_v28 }
 0x224   : > { %v1097_v35 = vmax.f32 %v975_v16, 0.0 }
 0x225   : > { %v979_v20 = vpop.f32.mrb[20].mxu1 }
 0x226   : > { %v980_v11 = vadd.f32 %v5863_v9, %v979_v20  ;;  %v981_v26 = vpop.f32.mrb[21].mxu1  ;;  %4635 = vmatmul.mubr.msk.f32.gmra.mrb[40].mxu0 %vm1120_vm1, %v1097_v35 }
 0x228   : > { %v1098_v21 = vmax.f32 %v980_v11, 0.0 }
 0x229   : > { %v984_v19 = vpop.f32.mrb[22].mxu1 }
 0x22a   : > { %v985_v25 = vadd.f32 %v5863_v9, %v984_v19  ;;  %v986_v23 = vpop.f32.mrb[23].mxu1  ;;  %4637 = vmatprep.mubr.msk.f32.mxu0 %vm1120_vm1, %v1098_v21 }
 0x22c   : > { %v1099_v13 = vmax.f32 %v985_v25, 0.0 }
 0x22d   : > { %v989_v14 = vpop.f32.mrb[24].mxu1 }
 0x22e   : > { %v990_v22 = vadd.f32 %v5863_v9, %v989_v14  ;;  %v991_v8 = vpop.f32.mrb[25].mxu1  ;;  %4638 = vmatmul.mubr.msk.f32.gmra.mrb[42].mxu0 %vm1120_vm1, %v1099_v13 }
 0x230   : > { %v1100_v28 = vmax.f32 %v990_v22, 0.0 }
 0x231   : > { %v994_v16 = vpop.f32.mrb[26].mxu1 }
 0x232   : > { %v995_v20 = vadd.f32 %v5863_v9, %v994_v16  ;;  %v996_v26 = vpop.f32.mrb[27].mxu1  ;;  %4640 = vmatprep.mubr.msk.f32.mxu0 %vm1120_vm1, %v1100_v28 }
 0x234   : > { %v1101_v35 = vmax.f32 %v995_v20, 0.0 }
 0x235   : > { %v999_v11 = vpop.f32.mrb[28].mxu1 }
 0x236   : > { %v1000_v19 = vadd.f32 %v5863_v9, %v999_v11  ;;  %v1001_v23 = vpop.f32.mrb[29].mxu1  ;;  %4641 = vmatmul.mubr.msk.f32.gmra.mrb[44].mxu0 %vm1120_vm1, %v1101_v35 }
 0x238   : > { %v1102_v21 = vmax.f32 %v1000_v19, 0.0 }
 0x239   : > { %v1004_v25 = vpop.f32.mrb[30].mxu1 }
 0x23a   : > { %v1005_v14 = vadd.f32 %v5863_v9, %v1004_v25  ;;  %v1006_v8 = vpop.f32.mrb[31].mxu1  ;;  %4643 = vmatprep.mubr.msk.f32.mxu0 %vm1120_vm1, %v1102_v21 }
 0x23c   : > { %v1103_v13 = vmax.f32 %v1005_v14, 0.0 }
 0x23d   : > { %v1009_v22 = vpop.f32.mrb[32].mxu1 }
 0x23e   : > { %v1010_v16 = vadd.f32 %v5863_v9, %v1009_v22  ;;  %v1011_v26 = vpop.f32.mrb[33].mxu1  ;;  %4644 = vmatmul.mubr.msk.f32.gmra.mrb[46].mxu0 %vm1120_vm1, %v1103_v13 }
 0x240   : > { %v1104_v28 = vmax.f32 %v1010_v16, 0.0 }
 0x241   : > { %v1014_v20 = vpop.f32.mrb[34].mxu1 }
 0x242   : > { %v1015_v11 = vadd.f32 %v5863_v9, %v1014_v20  ;;  %v1016_v23 = vpop.f32.mrb[35].mxu1  ;;  %4646 = vmatprep.mubr.msk.f32.mxu0 %vm1120_vm1, %v1104_v28 }
 0x244   : > { %v1105_v35 = vmax.f32 %v1015_v11, 0.0 }
 0x245   : > { %v1019_v19 = vpop.f32.mrb[36].mxu1 }
 0x246   : > { %v1020_v25 = vadd.f32 %v5863_v9, %v1019_v19  ;;  %v1021_v8 = vpop.f32.mrb[37].mxu1  ;;  %4647 = vmatmul.mubr.msk.f32.gmra.mrb[48].mxu0 %vm1120_vm1, %v1105_v35 }
 0x248   : > { %v1106_v21 = vmax.f32 %v1020_v25, 0.0 }
 0x249   : > { %v1024_v14 = vpop.f32.mrb[38].mxu1 }
 0x24a   : > { %v1025_v22 = vadd.f32 %v5863_v9, %v1024_v14  ;;  %v1026_v26 = vpop.f32.mrb[39].mxu1  ;;  %4649 = vmatprep.mubr.msk.f32.mxu0 %vm1120_vm1, %v1106_v21 }
 0x24c   : > { %v1107_v13 = vmax.f32 %v1025_v22, 0.0 }
 0x24d   : > { %v1029_v16 = vpop.f32.mrb[40].mxu1 }
 0x24e   : > { %v1030_v20 = vadd.f32 %v5863_v9, %v1029_v16  ;;  %v1031_v23 = vpop.f32.mrb[41].mxu1  ;;  %4650 = vmatmul.mubr.msk.f32.gmra.mrb[50].mxu0 %vm1120_vm1, %v1107_v13 }
 0x250   : > { %v1108_v28 = vmax.f32 %v1030_v20, 0.0 }
 0x251   : > { %v1034_v11 = vpop.f32.mrb[42].mxu1 }
 0x252   : > { %v1035_v19 = vadd.f32 %v5863_v9, %v1034_v11  ;;  %v1036_v8 = vpop.f32.mrb[43].mxu1  ;;  %4652 = vmatprep.mubr.msk.f32.mxu0 %vm1120_vm1, %v1108_v28 }
 0x254   : > { %v1109_v35 = vmax.f32 %v1035_v19, 0.0 }
 0x255   : > { %v1039_v25 = vpop.f32.mrb[44].mxu1 }
 0x256   : > { %v1040_v14 = vadd.f32 %v5863_v9, %v1039_v25  ;;  %v1041_v26 = vpop.f32.mrb[45].mxu1  ;;  %4653 = vmatmul.mubr.msk.f32.gmra.mrb[52].mxu0 %vm1120_vm1, %v1109_v35 }
 0x258   : > { %v1110_v21 = vmax.f32 %v1040_v14, 0.0 }
 0x259   : > { %v1044_v22 = vpop.f32.mrb[46].mxu1 }
 0x25a   : > { %v1045_v16 = vadd.f32 %v5863_v9, %v1044_v22  ;;  %v1046_v23 = vpop.f32.mrb[47].mxu1  ;;  %4655 = vmatprep.mubr.msk.f32.mxu0 %vm1120_vm1, %v1110_v21 }
 0x25c   : > { %v1111_v13 = vmax.f32 %v1045_v16, 0.0 }
 0x25d   : > { %v1049_v20 = vpop.f32.mrb[48].mxu1 }
 0x25e   : > { %v1050_v11 = vadd.f32 %v5863_v9, %v1049_v20  ;;  %v1051_v8 = vpop.f32.mrb[49].mxu1  ;;  %4656 = vmatmul.mubr.msk.f32.gmra.mrb[54].mxu0 %vm1120_vm1, %v1111_v13 }
 0x260   : > { %v1112_v28 = vmax.f32 %v1050_v11, 0.0 }
 0x261   : > { %v1054_v19 = vpop.f32.mrb[50].mxu1 }
 0x262   : > { %v1055_v25 = vadd.f32 %v5863_v9, %v1054_v19  ;;  %v1056_v26 = vpop.f32.mrb[51].mxu1  ;;  %4658 = vmatprep.mubr.msk.f32.mxu0 %vm1120_vm1, %v1112_v28 }
 0x264   : > { %v1113_v35 = vmax.f32 %v1055_v25, 0.0 }
 0x265   : > { %v1059_v14 = vpop.f32.mrb[52].mxu1 }
 0x266   : > { %v1060_v22 = vadd.f32 %v5863_v9, %v1059_v14  ;;  %v1061_v23 = vpop.f32.mrb[53].mxu1  ;;  %4659 = vmatmul.mubr.msk.f32.gmra.mrb[56].mxu0 %vm1120_vm1, %v1113_v35 }
 0x268   : > { %v1114_v21 = vmax.f32 %v1060_v22, 0.0 }
 0x269   : > { %v1064_v16 = vpop.f32.mrb[54].mxu1 }
 0x26a   : > { %v1065_v20 = vadd.f32 %v5863_v9, %v1064_v16  ;;  %v1066_v8 = vpop.f32.mrb[55].mxu1  ;;  %4661 = vmatprep.mubr.msk.f32.mxu0 %vm1120_vm1, %v1114_v21 }
 0x26c   : > { %v1115_v13 = vmax.f32 %v1065_v20, 0.0 }
 0x26d   : > { %v1069_v11 = vpop.f32.mrb[56].mxu1 }
 0x26e   : > { %v1070_v19 = vadd.f32 %v5863_v9, %v1069_v11  ;;  %v1071_v26 = vpop.f32.mrb[57].mxu1  ;;  %4662 = vmatmul.mubr.msk.f32.gmra.mrb[58].mxu0 %vm1120_vm1, %v1115_v13 }
 0x270   : > { %v1116_v28 = vmax.f32 %v1070_v19, 0.0 }
 0x271   : > { %v1074_v25 = vpop.f32.mrb[58].mxu1 }
 0x272   : > { %v1075_v14 = vadd.f32 %v5863_v9, %v1074_v25  ;;  %v1076_v23 = vpop.f32.mrb[59].mxu1  ;;  %4664 = vmatprep.mubr.msk.f32.mxu0 %vm1120_vm1, %v1116_v28 }
 0x274   : > { %v1117_v35 = vmax.f32 %v1075_v14, 0.0  ;;  %v6809_v14 = vmov 0.0|0.0  }
 0x275   : > { %v1079_v22 = vpop.f32.mrb[60].mxu1 }
 0x276   : > { %v1080_v16 = vadd.f32 %v5863_v9, %v1079_v22  ;;  %v1081_v8 = vpop.f32.mrb[61].mxu1  ;;  %4665 = vmatmul.mubr.msk.f32.gmra.mrb[60].mxu0 %vm1120_vm1, %v1117_v35 }
 0x278   : > { %v1118_v21 = vmax.f32 %v1080_v16, 0.0 }
 0x279   : > { %v1084_v20 = vpop.f32.mrb[62].mxu1 }
 0x27a   : > { %v1085_v11 = vadd.f32 %v5863_v9, %v1084_v20  ;;  %v1086_v26 = vpop.f32.mrb[63].mxu1  ;;  %4667 = vmatprep.mubr.msk.f32.mxu0 %vm1120_vm1, %v1118_v21 }
 0x27c   : > { %v1119_v13 = vmax.f32 %v1085_v11, 0.0 }
 0x27e   : > { %4668 = vmatmul.mubr.msk.f32.gmra.mrb[62].mxu0 %vm1120_vm1, %v1119_v13 }
 0x27f   : > { %1509 = vmatprep.mubr.f32.mxu0 %v5565_v36 }
 0x2d9   : > { %v4624_v19 = vpop.f32.mrb[32].mxu0 }
 0x2da   : > { %v1283_v28 = vpop.f32.mrb[33].mxu0 }
 0x2db   : > { %v4927_v25 = vpack.c.bf16 %v4624_v19, %v1283_v28 }
 0x2dd   : > { %4928 = vmatpush1.bf16.msra.mxu0 %v4927_v25 }
 0x2de   : > { %4929 = vmatprep.subr.bf16.mxu0 %v6809_v14 }
 0x2e1   : > { %v4627_v23 = vpop.f32.mrb[34].mxu0 }
 0x2e2   : > { %v1293_v35 = vpop.f32.mrb[35].mxu0 }
 0x2e3   : > { %v4930_v22 = vpack.c.bf16 %v4627_v23, %v1293_v35 }
 0x2e5   : > { %4931 = vmatpush1.bf16.msra.mxu0 %v4930_v22 }
 0x2e6   : > { %4932 = vmatprep.subr.bf16.mxu0 %v6809_v14 }
 0x2e9   : > { %v4630_v16 = vpop.f32.mrb[36].mxu0 }
 0x2ea   : > { %v1303_v8 = vpop.f32.mrb[37].mxu0 }
 0x2eb   : > { %v4933_v21 = vpack.c.bf16 %v4630_v16, %v1303_v8 }
 0x2ed   : > { %4934 = vmatpush1.bf16.msra.mxu0 %v4933_v21 }
 0x2ee   : > { %4935 = vmatprep.subr.bf16.mxu0 %v6809_v14 }
 0x2f1   : > { %v4633_v20 = vpop.f32.mrb[38].mxu0 }
 0x2f2   : > { %v1313_v36 = vpop.f32.mrb[39].mxu0 }
 0x2f3   : > { %v4936_v11 = vpack.c.bf16 %v4633_v20, %v1313_v36 }
 0x2f5   : > { %4937 = vmatpush1.bf16.msra.mxu0 %v4936_v11 }
 0x2f6   : > { %4938 = vmatprep.subr.bf16.mxu0 %v6809_v14 }
 0x2f9   : > { %v4636_v26 = vpop.f32.mrb[40].mxu0 }
 0x2fa   : > { %v1323_v13 = vpop.f32.mrb[41].mxu0 }
 0x2fb   : > { %v4939_v19 = vpack.c.bf16 %v4636_v26, %v1323_v13 }
 0x2fd   : > { %4940 = vmatpush1.bf16.msra.mxu0 %v4939_v19 }
 0x2fe   : > { %4941 = vmatprep.subr.bf16.mxu0 %v6809_v14 }
 0x301   : > { %v4639_v28 = vpop.f32.mrb[42].mxu0 }
 0x302   : > { %v1333_v25 = vpop.f32.mrb[43].mxu0 }
 0x303   : > { %v4942_v23 = vpack.c.bf16 %v4639_v28, %v1333_v25 }
 0x305   : > { %4943 = vmatpush1.bf16.msra.mxu0 %v4942_v23 }
 0x306   : > { %4944 = vmatprep.subr.bf16.mxu0 %v6809_v14 }
 0x309   : > { %v4642_v35 = vpop.f32.mrb[44].mxu0 }
 0x30a   : > { %v1343_v22 = vpop.f32.mrb[45].mxu0 }
 0x30b   : > { %v4945_v16 = vpack.c.bf16 %v4642_v35, %v1343_v22 }
 0x30d   : > { %4946 = vmatpush1.bf16.msra.mxu0 %v4945_v16 }
 0x30e   : > { %4947 = vmatprep.subr.bf16.mxu0 %v6809_v14 }
 0x311   : > { %v4645_v8 = vpop.f32.mrb[46].mxu0 }
 0x312   : > { %v1353_v21 = vpop.f32.mrb[47].mxu0 }
 0x313   : > { %v4948_v20 = vpack.c.bf16 %v4645_v8, %v1353_v21 }
 0x315   : > { %4949 = vmatpush1.bf16.msra.mxu0 %v4948_v20 }
 0x316   : > { %4950 = vmatprep.subr.bf16.mxu0 %v6809_v14 }
 0x319   : > { %v4648_v36 = vpop.f32.mrb[48].mxu0 }
 0x31a   : > { %v1363_v11 = vpop.f32.mrb[49].mxu0 }
 0x31b   : > { %v4951_v26 = vpack.c.bf16 %v4648_v36, %v1363_v11 }
 0x31d   : > { %4952 = vmatpush1.bf16.msra.mxu0 %v4951_v26 }
 0x31e   : > { %4953 = vmatprep.subr.bf16.mxu0 %v6809_v14 }
 0x321   : > { %v4651_v13 = vpop.f32.mrb[50].mxu0 }
 0x322   : > { %v1373_v19 = vpop.f32.mrb[51].mxu0 }
 0x323   : > { %v4954_v28 = vpack.c.bf16 %v4651_v13, %v1373_v19 }
 0x325   : > { %4955 = vmatpush1.bf16.msra.mxu0 %v4954_v28 }
 0x326   : > { %4956 = vmatprep.subr.bf16.mxu0 %v6809_v14 }
 0x329   : > { %v4654_v25 = vpop.f32.mrb[52].mxu0 }
 0x32a   : > { %v1383_v23 = vpop.f32.mrb[53].mxu0 }
 0x32b   : > { %v4957_v35 = vpack.c.bf16 %v4654_v25, %v1383_v23 }
 0x32d   : > { %4958 = vmatpush1.bf16.msra.mxu0 %v4957_v35 }
 0x32e   : > { %4959 = vmatprep.subr.bf16.mxu0 %v6809_v14 }
 0x331   : > { %v4657_v22 = vpop.f32.mrb[54].mxu0 }
 0x332   : > { %v1393_v16 = vpop.f32.mrb[55].mxu0 }
 0x333   : > { %v4960_v8 = vpack.c.bf16 %v4657_v22, %v1393_v16 }
 0x335   : > { %4961 = vmatpush1.bf16.msra.mxu0 %v4960_v8 }
 0x336   : > { %4962 = vmatprep.subr.bf16.mxu0 %v6809_v14 }
 0x339   : > { %v4660_v21 = vpop.f32.mrb[56].mxu0 }
 0x33a   : > { %v1403_v20 = vpop.f32.mrb[57].mxu0 }
 0x33b   : > { %v4963_v36 = vpack.c.bf16 %v4660_v21, %v1403_v20 }
 0x33d   : > { %4964 = vmatpush1.bf16.msra.mxu0 %v4963_v36 }
 0x33e   : > { %4965 = vmatprep.subr.bf16.mxu0 %v6809_v14 }
 0x341   : > { %v4663_v11 = vpop.f32.mrb[58].mxu0 }
 0x342   : > { %v1413_v26 = vpop.f32.mrb[59].mxu0 }
 0x343   : > { %v4966_v13 = vpack.c.bf16 %v4663_v11, %v1413_v26 }
 0x345   : > { %4967 = vmatpush1.bf16.msra.mxu0 %v4966_v13 }
 0x346   : > { %4968 = vmatprep.subr.bf16.mxu0 %v6809_v14 }
 0x349   : > { %v4666_v19 = vpop.f32.mrb[60].mxu0 }
 0x34a   : > { %v1423_v28 = vpop.f32.mrb[61].mxu0 }
 0x34b   : > { %v4969_v25 = vpack.c.bf16 %v4666_v19, %v1423_v28 }
 0x34d   : > { %4970 = vmatpush1.bf16.msra.mxu0 %v4969_v25 }
 0x34e   : > { %4971 = vmatprep.subr.bf16.mxu0 %v6809_v14 }
 0x351   : > { %v4669_v23 = vpop.f32.mrb[62].mxu0 }
 0x352   : > { %v1433_v35 = vpop.f32.mrb[63].mxu0 }
 0x353   : > { %v4972_v9 = vpack.c.bf16 %v4669_v23, %v1433_v35 }
 0x355   : > { %4973 = vmatpush1.bf16.msra.mxu0 %v4972_v9 }
 0x356   : > { %4982 = vmatprep.subr.bf16.mxu0 %v6809_v14 }
 0x358   : > { %1510 = vmatmul.mubr.f32.vlgmr.msra.gmra.mrb[64].mxu0 %v5593_v24  ;;  %v347_v24 = vld [vmem:[%s6772_s4 + $0x50] sm:$0xff] }
 0x359   : > { %1514 = vmatprep.mubr.f32.mxu0 %v5599_v27  ;;  %v348_v27 = vld [vmem:[%s6772_s4 + $0x58] sm:$0xff] }
 0x35c   : > { %1515 = vmatmul.mubr.f32.gmra.mrb[66].mxu0 %v5604_v29  ;;  %v4974_v29 = vpack.c.bf16 %v348_v27, %v347_v24 }
 0x35d   : > { %1519 = vmatprep.mubr.f32.mxu0 %v5607_v30  ;;  %v349_v30 = vld [vmem:[%s6772_s4 + $0x60] sm:$0xff] }
 0x35e   : > { %4975 = vmatprep.subr.bf16.mxu1 %v4974_v29 }
 0x35f   : > { %4977 = vmatpush3.bf16.msra.mxu1 %v4974_v29 }
 0x360   : > { %1520 = vmatmul.mubr.f32.gmra.mrb[68].mxu0 %v5612_v31  ;;  %v350_v31 = vld [vmem:[%s6772_s4 + $0x68] sm:$0xff] }
 0x361   : > { %1524 = vmatprep.mubr.f32.mxu0 %v5615_v32  ;;  %v4978_v32 = vpack.c.bf16 %v350_v31, %v349_v30 }
 0x363   : > { %4979 = vmatprep.subr.bf16.mxu1 %v4978_v32 }
 0x364   : > { %1525 = vmatmul.mubr.f32.gmra.mrb[70].mxu0 %v5620_v33  ;;  %4981 = vmatpush3.bf16.msra.mxu1 %v4978_v32  ;;  %v6810_v33 = vld [vmem:[#allocation2_spill] sm:$0xff] }
 0x365   : > { %1529 = vmatprep.mubr.f32.mxu0 %v5623_v34  ;;  %5154 = vmatprep.subr.bf16.mxu1 %v6809_v14  ;;  %v6811_v34 = vld [vmem:[#allocation3_spill] sm:$0xff] }
 0x368   : > { %1530 = vmatmul.mubr.f32.gmra.mrb[72].mxu0 %v5628_v37  ;;  %v6812_v37 = vld [vmem:[#allocation4_spill] sm:$0xff] }
 0x369   : > { %1534 = vmatprep.mubr.f32.mxu0 %v5631_v38  ;;  %v6813_v38 = vld [vmem:[#allocation5_spill] sm:$0xff] }
 0x36c   : > { %1535 = vmatmul.mubr.f32.gmra.mrb[74].mxu0 %v5636_v39  ;;  %v6814_v39 = vld [vmem:[#allocation6_spill] sm:$0xff] }
 0x36d   : > { %1539 = vmatprep.mubr.f32.mxu0 %v5639_v40  ;;  %v6815_v40 = vld [vmem:[#allocation7_spill] sm:$0xff] }
 0x370   : > { %1540 = vmatmul.mubr.f32.gmra.mrb[76].mxu0 %v5644_v41  ;;  %v6816_v41 = vld [vmem:[#allocation8_spill] sm:$0xff] }
 0x371   : > { %1544 = vmatprep.mubr.f32.mxu0 %v5647_v42  ;;  %v6817_v42 = vld [vmem:[#allocation9_spill] sm:$0xff] }
 0x374   : > { %1545 = vmatmul.mubr.f32.gmra.mrb[78].mxu0 %v5652_v43  ;;  %v6818_v43 = vld [vmem:[#allocation10_spill] sm:$0xff] }
 0x375   : > { %1549 = vmatprep.mubr.f32.mxu0 %v5655_v44  ;;  %v6819_v44 = vld [vmem:[#allocation11_spill] sm:$0xff] }
 0x378   : > { %1550 = vmatmul.mubr.f32.gmra.mrb[80].mxu0 %v5660_v45  ;;  %v6820_v45 = vld [vmem:[#allocation12_spill] sm:$0xff] }
 0x379   : > { %1554 = vmatprep.mubr.f32.mxu0 %v5663_v46  ;;  %v6821_v46 = vld [vmem:[#allocation13_spill] sm:$0xff] }
 0x37c   : > { %1555 = vmatmul.mubr.f32.gmra.mrb[82].mxu0 %v5668_v47  ;;  %v6822_v47 = vld [vmem:[#allocation14_spill] sm:$0xff] }
 0x37d   : > { %1559 = vmatprep.mubr.f32.mxu0 %v5671_v48  ;;  %v6823_v48 = vld [vmem:[#allocation15_spill] sm:$0xff] }
 0x380   : > { %1560 = vmatmul.mubr.f32.gmra.mrb[84].mxu0 %v5676_v49  ;;  %v6824_v49 = vld [vmem:[#allocation16_spill] sm:$0xff] }
 0x381   : > { %1564 = vmatprep.mubr.f32.mxu0 %v5679_v50  ;;  %v5344_v50 = vld [vmem:[%s5562_s14 + $0x8] sm:$0xff] }
 0x384   : > { %1565 = vmatmul.mubr.f32.gmra.mrb[86].mxu0 %v5684_v51  ;;  %v6024_v51 = vpop.permute.xlu0 %1442 }
 0x385   : > { %1569 = vmatprep.mubr.f32.mxu0 %v5687_v52 }
 0x388   : > { %1570 = vmatmul.mubr.f32.gmra.mrb[88].mxu0 %v5692_v53 }
 0x389   : > { %1574 = vmatprep.mubr.f32.mxu0 %v5695_v54 }
 0x38c   : > { %1575 = vmatmul.mubr.f32.gmra.mrb[90].mxu0 %v5700_v55 }
 0x38d   : > { %1579 = vmatprep.mubr.f32.mxu0 %v5703_v56 }
 0x390   : > { %1580 = vmatmul.mubr.f32.gmra.mrb[92].mxu0 %v5708_v57 }
 0x391   : > { %1584 = vmatprep.mubr.f32.mxu0 %v5711_v58 }
 0x394   : > { %1585 = vmatmul.mubr.f32.gmra.mrb[94].mxu0 %v5716_v59 }
 0x395   : > { %1589 = vmatprep.mubr.f32.mxu0 %v5719_v60 }
 0x398   : > { %1590 = vmatmul.mubr.f32.gmra.mrb[96].mxu0 %v5724_v61 }
 0x399   : > { %1594 = vmatprep.mubr.f32.mxu0 %v5727_v62 }
 0x39c   : > { %1595 = vmatmul.mubr.f32.gmra.mrb[98].mxu0 %v5732_v63 }
 0x39d   : > { %1599 = vmatprep.mubr.f32.mxu0 %v5735_v0 }
 0x3a0   : > { %1600 = vmatmul.mubr.f32.gmra.mrb[100].mxu0 %v5740_v1 }
 0x3a1   : > { %1604 = vmatprep.mubr.f32.mxu0 %v5743_v2 }
 0x3a4   : > { %1605 = vmatmul.mubr.f32.gmra.mrb[102].mxu0 %v5748_v3 }
 0x3a5   : > { %1609 = vmatprep.mubr.f32.mxu0 %v5751_v4 }
 0x3a8   : > { %1610 = vmatmul.mubr.f32.gmra.mrb[104].mxu0 %v5756_v5 }
 0x3a9   : > { %1614 = vmatprep.mubr.f32.mxu0 %v5759_v6 }
 0x3ac   : > { %1615 = vmatmul.mubr.f32.gmra.mrb[106].mxu0 %v5764_v7 }
 0x3ad   : > { %1619 = vmatprep.mubr.f32.mxu0 %v5773_v10 }
 0x3b0   : > { %1620 = vmatmul.mubr.f32.gmra.mrb[108].mxu0 %v5778_v12 }
 0x3b1   : > { %1624 = vmatprep.mubr.f32.mxu0 %v5787_v15 }
 0x3b4   : > { %1625 = vmatmul.mubr.f32.gmra.mrb[110].mxu0 %v5792_v17 }
 0x3b5   : > { %1629 = vmatprep.mubr.f32.mxu0 %v5795_v18 }
 0x3b8   : > { %1630 = vmatmul.mubr.f32.gmra.mrb[112].mxu0 %v6810_v33 }
 0x3b9   : > { %1634 = vmatprep.mubr.f32.mxu0 %v6811_v34 }
 0x3bc   : > { %1635 = vmatmul.mubr.f32.gmra.mrb[114].mxu0 %v6812_v37 }
 0x3bd   : > { %1639 = vmatprep.mubr.f32.mxu0 %v6813_v38 }
 0x3c0   : > { %1640 = vmatmul.mubr.f32.gmra.mrb[116].mxu0 %v6814_v39 }
 0x3c1   : > { %1644 = vmatprep.mubr.f32.mxu0 %v6815_v40 }
 0x3c4   : > { %1645 = vmatmul.mubr.f32.gmra.mrb[118].mxu0 %v6816_v41 }
 0x3c5   : > { %1649 = vmatprep.mubr.f32.mxu0 %v6817_v42 }
 0x3c8   : > { %1650 = vmatmul.mubr.f32.gmra.mrb[120].mxu0 %v6818_v43 }
 0x3c9   : > { %1654 = vmatprep.mubr.f32.mxu0 %v6819_v44 }
 0x3cc   : > { %1655 = vmatmul.mubr.f32.gmra.mrb[122].mxu0 %v6820_v45 }
 0x3cd   : > { %1659 = vmatprep.mubr.f32.mxu0 %v6821_v46 }
 0x3d0   : > { %1660 = vmatmul.mubr.f32.gmra.mrb[124].mxu0 %v6822_v47 }
 0x3d1   : > { %1664 = vmatprep.mubr.f32.mxu0 %v6823_v48 }
 0x3d4   : > { %1665 = vmatmul.mubr.f32.gmra.mrb[126].mxu0 %v6824_v49 }
 0x3d5   : > { %2091 = vmatprep.mubr.f32.mxu0 %v5344_v50 }
 0x42b   : > { %v1511_v52 = vpop.f32.mrb[64].mxu0 }
 0x42c   : > { %v1512_v53 = vadd.f32 %v1511_v52, %v6024_v51  ;;  %v1513_v54 = vpop.f32.mrb[65].mxu0 }
 0x42e   : > { %v1670_v55 = vmax.f32 %v1512_v53, 0.0 }
 0x42f   : > { %v1516_v56 = vpop.f32.mrb[66].mxu0 }
 0x430   : > { %v1517_v57 = vadd.f32 %v1516_v56, %v6024_v51  ;;  %v1518_v58 = vpop.f32.mrb[67].mxu0  ;;  %4678 = vmatprep.mubr.msk.f32.mxu1 %vm1702_vm2, %v1670_v55 }
 0x432   : > { %v1671_v59 = vmax.f32 %v1517_v57, 0.0 }
 0x433   : > { %v1521_v60 = vpop.f32.mrb[68].mxu0 }
 0x434   : > { %v1522_v61 = vadd.f32 %v1521_v60, %v6024_v51  ;;  %v1523_v62 = vpop.f32.mrb[69].mxu0  ;;  %4679 = vmatmul.mubr.msk.f32.vlgmr.msra.gmra.mrb[64].mxu1 %vm1702_vm2, %v1671_v59 }
 0x436   : > { %v1672_v63 = vmax.f32 %v1522_v61, 0.0 }
 0x437   : > { %v1526_v0 = vpop.f32.mrb[70].mxu0 }
 0x438   : > { %v1527_v1 = vadd.f32 %v1526_v0, %v6024_v51  ;;  %v1528_v2 = vpop.f32.mrb[71].mxu0  ;;  %4681 = vmatprep.mubr.msk.f32.mxu1 %vm1702_vm2, %v1672_v63 }
 0x43a   : > { %v1673_v3 = vmax.f32 %v1527_v1, 0.0 }
 0x43b   : > { %v1531_v4 = vpop.f32.mrb[72].mxu0 }
 0x43c   : > { %v1532_v5 = vadd.f32 %v1531_v4, %v6024_v51  ;;  %v1533_v6 = vpop.f32.mrb[73].mxu0  ;;  %4682 = vmatmul.mubr.msk.f32.gmra.mrb[66].mxu1 %vm1702_vm2, %v1673_v3 }
 0x43e   : > { %v1674_v7 = vmax.f32 %v1532_v5, 0.0 }
 0x43f   : > { %v1536_v10 = vpop.f32.mrb[74].mxu0 }
 0x440   : > { %v1537_v12 = vadd.f32 %v1536_v10, %v6024_v51  ;;  %v1538_v15 = vpop.f32.mrb[75].mxu0  ;;  %4684 = vmatprep.mubr.msk.f32.mxu1 %vm1702_vm2, %v1674_v7 }
 0x442   : > { %v1675_v17 = vmax.f32 %v1537_v12, 0.0 }
 0x443   : > { %v1541_v18 = vpop.f32.mrb[76].mxu0 }
 0x444   : > { %v1542_v22 = vadd.f32 %v1541_v18, %v6024_v51  ;;  %v1543_v16 = vpop.f32.mrb[77].mxu0  ;;  %4685 = vmatmul.mubr.msk.f32.gmra.mrb[68].mxu1 %vm1702_vm2, %v1675_v17 }
 0x446   : > { %v1676_v8 = vmax.f32 %v1542_v22, 0.0 }
 0x447   : > { %v1546_v21 = vpop.f32.mrb[78].mxu0 }
 0x448   : > { %v1547_v20 = vadd.f32 %v1546_v21, %v6024_v51  ;;  %v1548_v36 = vpop.f32.mrb[79].mxu0  ;;  %4687 = vmatprep.mubr.msk.f32.mxu1 %vm1702_vm2, %v1676_v8 }
 0x44a   : > { %v1677_v11 = vmax.f32 %v1547_v20, 0.0 }
 0x44b   : > { %v1551_v26 = vpop.f32.mrb[80].mxu0 }
 0x44c   : > { %v1552_v13 = vadd.f32 %v1551_v26, %v6024_v51  ;;  %v1553_v19 = vpop.f32.mrb[81].mxu0  ;;  %4688 = vmatmul.mubr.msk.f32.gmra.mrb[70].mxu1 %vm1702_vm2, %v1677_v11 }
 0x44e   : > { %v1678_v28 = vmax.f32 %v1552_v13, 0.0 }
 0x44f   : > { %v1556_v25 = vpop.f32.mrb[82].mxu0 }
 0x450   : > { %v1557_v23 = vadd.f32 %v1556_v25, %v6024_v51  ;;  %v1558_v35 = vpop.f32.mrb[83].mxu0  ;;  %4690 = vmatprep.mubr.msk.f32.mxu1 %vm1702_vm2, %v1678_v28 }
 0x452   : > { %v1679_v9 = vmax.f32 %v1557_v23, 0.0 }
 0x453   : > { %v1561_v24 = vpop.f32.mrb[84].mxu0 }
 0x454   : > { %v1562_v27 = vadd.f32 %v1561_v24, %v6024_v51  ;;  %v1563_v29 = vpop.f32.mrb[85].mxu0  ;;  %4691 = vmatmul.mubr.msk.f32.gmra.mrb[72].mxu1 %vm1702_vm2, %v1679_v9 }
 0x456   : > { %v1680_v30 = vmax.f32 %v1562_v27, 0.0 }
 0x457   : > { %v1566_v31 = vpop.f32.mrb[86].mxu0 }
 0x458   : > { %v1567_v32 = vadd.f32 %v1566_v31, %v6024_v51  ;;  %v1568_v33 = vpop.f32.mrb[87].mxu0  ;;  %4693 = vmatprep.mubr.msk.f32.mxu1 %vm1702_vm2, %v1680_v30 }
 0x45a   : > { %v1681_v34 = vmax.f32 %v1567_v32, 0.0 }
 0x45b   : > { %v1571_v37 = vpop.f32.mrb[88].mxu0 }
 0x45c   : > { %v1572_v38 = vadd.f32 %v1571_v37, %v6024_v51  ;;  %v1573_v39 = vpop.f32.mrb[89].mxu0  ;;  %4694 = vmatmul.mubr.msk.f32.gmra.mrb[74].mxu1 %vm1702_vm2, %v1681_v34 }
 0x45e   : > { %v1682_v40 = vmax.f32 %v1572_v38, 0.0 }
 0x45f   : > { %v1576_v41 = vpop.f32.mrb[90].mxu0 }
 0x460   : > { %v1577_v42 = vadd.f32 %v1576_v41, %v6024_v51  ;;  %v1578_v43 = vpop.f32.mrb[91].mxu0  ;;  %4696 = vmatprep.mubr.msk.f32.mxu1 %vm1702_vm2, %v1682_v40 }
 0x462   : > { %v1683_v44 = vmax.f32 %v1577_v42, 0.0 }
 0x463   : > { %v1581_v45 = vpop.f32.mrb[92].mxu0 }
 0x464   : > { %v1582_v46 = vadd.f32 %v1581_v45, %v6024_v51  ;;  %v1583_v47 = vpop.f32.mrb[93].mxu0  ;;  %4697 = vmatmul.mubr.msk.f32.gmra.mrb[76].mxu1 %vm1702_vm2, %v1683_v44 }
 0x466   : > { %v1684_v48 = vmax.f32 %v1582_v46, 0.0 }
 0x467   : > { %v1586_v49 = vpop.f32.mrb[94].mxu0 }
 0x468   : > { %v1587_v50 = vadd.f32 %v1586_v49, %v6024_v51  ;;  %v1588_v52 = vpop.f32.mrb[95].mxu0  ;;  %4699 = vmatprep.mubr.msk.f32.mxu1 %vm1702_vm2, %v1684_v48 }
 0x46a   : > { %v1685_v53 = vmax.f32 %v1587_v50, 0.0 }
 0x46b   : > { %v1591_v54 = vpop.f32.mrb[96].mxu0 }
 0x46c   : > { %v1592_v55 = vadd.f32 %v1591_v54, %v6024_v51  ;;  %v1593_v56 = vpop.f32.mrb[97].mxu0  ;;  %4700 = vmatmul.mubr.msk.f32.gmra.mrb[78].mxu1 %vm1702_vm2, %v1685_v53 }
 0x46d   : > { %v5345_v56 = vld [vmem:[%s5562_s14 + $0x28] sm:$0xff] }
 0x46e   : > { %v1686_v57 = vmax.f32 %v1592_v55, 0.0 }
 0x46f   : > { %v1596_v58 = vpop.f32.mrb[98].mxu0 }
 0x470   : > { %v1597_v59 = vadd.f32 %v1596_v58, %v6024_v51  ;;  %v1598_v60 = vpop.f32.mrb[99].mxu0  ;;  %4702 = vmatprep.mubr.msk.f32.mxu1 %vm1702_vm2, %v1686_v57 }
 0x472   : > { %v1687_v61 = vmax.f32 %v1597_v59, 0.0 }
 0x473   : > { %v1601_v62 = vpop.f32.mrb[100].mxu0 }
 0x474   : > { %v1602_v63 = vadd.f32 %v1601_v62, %v6024_v51  ;;  %v1603_v0 = vpop.f32.mrb[101].mxu0  ;;  %4703 = vmatmul.mubr.msk.f32.gmra.mrb[80].mxu1 %vm1702_vm2, %v1687_v61 }
 0x476   : > { %v1688_v1 = vmax.f32 %v1602_v63, 0.0 }
 0x477   : > { %v1606_v2 = vpop.f32.mrb[102].mxu0 }
 0x478   : > { %v1607_v3 = vadd.f32 %v1606_v2, %v6024_v51  ;;  %v1608_v4 = vpop.f32.mrb[103].mxu0  ;;  %4705 = vmatprep.mubr.msk.f32.mxu1 %vm1702_vm2, %v1688_v1 }
 0x47a   : > { %v1689_v5 = vmax.f32 %v1607_v3, 0.0 }
 0x47b   : > { %v1611_v6 = vpop.f32.mrb[104].mxu0 }
 0x47c   : > { %v1612_v7 = vadd.f32 %v1611_v6, %v6024_v51  ;;  %v1613_v10 = vpop.f32.mrb[105].mxu0  ;;  %4706 = vmatmul.mubr.msk.f32.gmra.mrb[82].mxu1 %vm1702_vm2, %v1689_v5 }
 0x47e   : > { %v1690_v12 = vmax.f32 %v1612_v7, 0.0 }
 0x47f   : > { %v1616_v15 = vpop.f32.mrb[106].mxu0 }
 0x480   : > { %v1617_v17 = vadd.f32 %v1616_v15, %v6024_v51  ;;  %v1618_v18 = vpop.f32.mrb[107].mxu0  ;;  %4708 = vmatprep.mubr.msk.f32.mxu1 %vm1702_vm2, %v1690_v12 }
 0x482   : > { %v1691_v22 = vmax.f32 %v1617_v17, 0.0 }
 0x483   : > { %v1621_v16 = vpop.f32.mrb[108].mxu0 }
 0x484   : > { %v1622_v8 = vadd.f32 %v1621_v16, %v6024_v51  ;;  %v1623_v21 = vpop.f32.mrb[109].mxu0  ;;  %4709 = vmatmul.mubr.msk.f32.gmra.mrb[84].mxu1 %vm1702_vm2, %v1691_v22 }
 0x486   : > { %v1692_v20 = vmax.f32 %v1622_v8, 0.0 }
 0x487   : > { %v1626_v36 = vpop.f32.mrb[110].mxu0 }
 0x488   : > { %v1627_v11 = vadd.f32 %v1626_v36, %v6024_v51  ;;  %v1628_v26 = vpop.f32.mrb[111].mxu0  ;;  %4711 = vmatprep.mubr.msk.f32.mxu1 %vm1702_vm2, %v1692_v20 }
 0x48a   : > { %v1693_v13 = vmax.f32 %v1627_v11, 0.0 }
 0x48b   : > { %v1631_v19 = vpop.f32.mrb[112].mxu0 }
 0x48c   : > { %v1632_v28 = vadd.f32 %v1631_v19, %v6024_v51  ;;  %v1633_v25 = vpop.f32.mrb[113].mxu0  ;;  %4712 = vmatmul.mubr.msk.f32.gmra.mrb[86].mxu1 %vm1702_vm2, %v1693_v13 }
 0x48e   : > { %v1694_v23 = vmax.f32 %v1632_v28, 0.0 }
 0x48f   : > { %v1636_v35 = vpop.f32.mrb[114].mxu0 }
 0x490   : > { %v1637_v9 = vadd.f32 %v1636_v35, %v6024_v51  ;;  %v1638_v24 = vpop.f32.mrb[115].mxu0  ;;  %4714 = vmatprep.mubr.msk.f32.mxu1 %vm1702_vm2, %v1694_v23 }
 0x492   : > { %v1695_v27 = vmax.f32 %v1637_v9, 0.0 }
 0x493   : > { %v1641_v29 = vpop.f32.mrb[116].mxu0 }
 0x494   : > { %v1642_v30 = vadd.f32 %v1641_v29, %v6024_v51  ;;  %v1643_v31 = vpop.f32.mrb[117].mxu0  ;;  %4715 = vmatmul.mubr.msk.f32.gmra.mrb[88].mxu1 %vm1702_vm2, %v1695_v27  ;;  %v5346_v27 = vld [vmem:[%s6773_s5] ss:$0 sm:$0xff] }
 0x495   : > { %2024 = vrot.lane.b32.xlu0 %v5346_v27, %s5423_s27  ;;  %v5395_v27 = vld [vmem:[%s5562_s14 + $0x198] sm:$0xff] }
 0x496   : > { %v1696_v32 = vmax.f32 %v1642_v30, 0.0 }
 0x497   : > { %v1646_v33 = vpop.f32.mrb[118].mxu0 }
 0x498   : > { %v1647_v34 = vadd.f32 %v1646_v33, %v6024_v51  ;;  %v1648_v37 = vpop.f32.mrb[119].mxu0  ;;  %4717 = vmatprep.mubr.msk.f32.mxu1 %vm1702_vm2, %v1696_v32 }
 0x49a   : > { %v1697_v38 = vmax.f32 %v1647_v34, 0.0 }
 0x49b   : > { %v1651_v39 = vpop.f32.mrb[120].mxu0 }
 0x49c   : > { %v1652_v40 = vadd.f32 %v1651_v39, %v6024_v51  ;;  %v1653_v41 = vpop.f32.mrb[121].mxu0  ;;  %4718 = vmatmul.mubr.msk.f32.gmra.mrb[90].mxu1 %vm1702_vm2, %v1697_v38 }
 0x49e   : > { %v1698_v42 = vmax.f32 %v1652_v40, 0.0 }
 0x49f   : > { %v1656_v43 = vpop.f32.mrb[122].mxu0 }
 0x4a0   : > { %v1657_v44 = vadd.f32 %v1656_v43, %v6024_v51  ;;  %v1658_v45 = vpop.f32.mrb[123].mxu0  ;;  %4720 = vmatprep.mubr.msk.f32.mxu1 %vm1702_vm2, %v1698_v42  ;;  %v5347_v42 = vld [vmem:[%s5562_s14] sm:$0xff] }
 0x4a1   : > { %v5348_v43 = vld [vmem:[%s5562_s14 + $0x20] sm:$0xff]  ;;  %v5350_v45 = vld [vmem:[%s5562_s14 + $0x38] sm:$0xff] }
 0x4a2   : > { %v1699_v46 = vmax.f32 %v1657_v44, 0.0  ;;  %v5349_v44 = vld [vmem:[%s5562_s14 + $0x18] sm:$0xff] }
 0x4a3   : > { %v1661_v47 = vpop.f32.mrb[124].mxu0 }
 0x4a4   : > { %v1662_v48 = vadd.f32 %v1661_v47, %v6024_v51  ;;  %v1663_v49 = vpop.f32.mrb[125].mxu0  ;;  %4721 = vmatmul.mubr.msk.f32.gmra.mrb[92].mxu1 %vm1702_vm2, %v1699_v46  ;;  %v5351_v46 = vld [vmem:[%s5562_s14 + $0x10] sm:$0xff] }
 0x4a5   : > { %v5352_v47 = vld [vmem:[%s5562_s14 + $0x30] sm:$0xff]  ;;  %v5354_v49 = vld [vmem:[%s5562_s14 + $0x40] sm:$0xff] }
 0x4a6   : > { %v1700_v50 = vmax.f32 %v1662_v48, 0.0  ;;  %v5353_v48 = vld [vmem:[%s5562_s14 + $0x48] sm:$0xff] }
 0x4a7   : > { %v1666_v52 = vpop.f32.mrb[126].mxu0 }
 0x4a8   : > { %v1667_v53 = vadd.f32 %v1666_v52, %v6024_v51  ;;  %v1668_v54 = vpop.f32.mrb[127].mxu0  ;;  %4723 = vmatprep.mubr.msk.f32.mxu1 %vm1702_vm2, %v1700_v50  ;;  %v5355_v50 = vld [vmem:[%s5562_s14 + $0x58] sm:$0xff]  ;;  %v5356_v52 = vld [vmem:[%s5562_s14 + $0x50] sm:$0xff] }
 0x4a9   : > { %v5358_v54 = vld [vmem:[%s5562_s14 + $0x60] sm:$0xff] }
 0x4aa   : > { %v1701_v55 = vmax.f32 %v1667_v53, 0.0  ;;  %v5357_v53 = vld [vmem:[%s5562_s14 + $0x68] sm:$0xff] }
 0x4ac   : > { %4724 = vmatmul.mubr.msk.f32.gmra.mrb[94].mxu1 %vm1702_vm2, %v1701_v55  ;;  %v5359_v55 = vld [vmem:[%s5562_s14 + $0x78] sm:$0xff] }
 0x4ad   : > { %2101 = vmatprep.mubr.f32.mxu1 %v5345_v56  ;;  %v5360_v56 = vld [vmem:[%s5562_s14 + $0x70] sm:$0xff] }
 0x507   : > { %v4680_v57 = vpop.f32.mrb[64].mxu1 }
 0x508   : > { %v1865_v58 = vpop.f32.mrb[65].mxu1 }
 0x509   : > { %v4983_v59 = vpack.c.bf16 %v4680_v57, %v1865_v58  ;;  %v5361_v57 = vld [vmem:[%s5562_s14 + $0x88] sm:$0xff]  ;;  %v5362_v58 = vld [vmem:[%s5562_s14 + $0x80] sm:$0xff] }
 0x50b   : > { %4984 = vmatpush1.bf16.msra.mxu0 %v4983_v59  ;;  %5170 = vmatpush1.bf16.msra.mxu1 %v4983_v59  ;;  %v5363_v59 = vld [vmem:[%s5562_s14 + $0x98] sm:$0xff] }
 0x50c   : > { %4985 = vmatprep.subr.bf16.mxu0 %v6809_v14  ;;  %5155 = vmatprep.subr.bf16.mxu1 %v6809_v14 }
 0x50f   : > { %v4683_v60 = vpop.f32.mrb[66].mxu1 }
 0x510   : > { %v1875_v61 = vpop.f32.mrb[67].mxu1 }
 0x511   : > { %v4986_v51 = vpack.c.bf16 %v4683_v60, %v1875_v61  ;;  %v5364_v60 = vld [vmem:[%s5562_s14 + $0x90] sm:$0xff]  ;;  %v5365_v61 = vld [vmem:[%s5562_s14 + $0xa8] sm:$0xff] }
 0x513   : > { %4987 = vmatpush1.bf16.msra.mxu0 %v4986_v51  ;;  %5171 = vmatpush1.bf16.msra.mxu1 %v4986_v51  ;;  %v5366_v51 = vld [vmem:[%s5562_s14 + $0xa0] sm:$0xff] }
 0x514   : > { %4988 = vmatprep.subr.bf16.mxu0 %v6809_v14  ;;  %5156 = vmatprep.subr.bf16.mxu1 %v6809_v14 }
 0x517   : > { %v4686_v62 = vpop.f32.mrb[68].mxu1 }
 0x518   : > { %v1885_v63 = vpop.f32.mrb[69].mxu1 }
 0x519   : > { %v4989_v0 = vpack.c.bf16 %v4686_v62, %v1885_v63  ;;  %v5367_v62 = vld [vmem:[%s5562_s14 + $0xb8] sm:$0xff]  ;;  %v5368_v63 = vld [vmem:[%s5562_s14 + $0xb0] sm:$0xff] }
 0x51b   : > { %4990 = vmatpush1.bf16.msra.mxu0 %v4989_v0  ;;  %5172 = vmatpush1.bf16.msra.mxu1 %v4989_v0  ;;  %v5369_v0 = vld [vmem:[%s5562_s14 + $0xc8] sm:$0xff] }
 0x51c   : > { %4991 = vmatprep.subr.bf16.mxu0 %v6809_v14  ;;  %5157 = vmatprep.subr.bf16.mxu1 %v6809_v14 }
 0x51f   : > { %v4689_v1 = vpop.f32.mrb[70].mxu1 }
 0x520   : > { %v1895_v2 = vpop.f32.mrb[71].mxu1 }
 0x521   : > { %v4992_v3 = vpack.c.bf16 %v4689_v1, %v1895_v2  ;;  %v5370_v1 = vld [vmem:[%s5562_s14 + $0xc0] sm:$0xff]  ;;  %v5371_v2 = vld [vmem:[%s5562_s14 + $0xd8] sm:$0xff] }
 0x523   : > { %4993 = vmatpush1.bf16.msra.mxu0 %v4992_v3  ;;  %5173 = vmatpush1.bf16.msra.mxu1 %v4992_v3  ;;  %v5372_v3 = vld [vmem:[%s5562_s14 + $0xd0] sm:$0xff] }
 0x524   : > { %4994 = vmatprep.subr.bf16.mxu0 %v6809_v14  ;;  %5158 = vmatprep.subr.bf16.mxu1 %v6809_v14 }
 0x527   : > { %v4692_v4 = vpop.f32.mrb[72].mxu1 }
 0x528   : > { %v1905_v5 = vpop.f32.mrb[73].mxu1 }
 0x529   : > { %v4995_v6 = vpack.c.bf16 %v4692_v4, %v1905_v5  ;;  %v5373_v4 = vld [vmem:[%s5562_s14 + $0xe8] sm:$0xff]  ;;  %v5374_v5 = vld [vmem:[%s5562_s14 + $0xe0] sm:$0xff] }
 0x52b   : > { %4996 = vmatpush1.bf16.msra.mxu0 %v4995_v6  ;;  %5174 = vmatpush1.bf16.msra.mxu1 %v4995_v6  ;;  %v5375_v6 = vld [vmem:[%s5562_s14 + $0xf8] sm:$0xff] }
 0x52c   : > { %4997 = vmatprep.subr.bf16.mxu0 %v6809_v14  ;;  %5159 = vmatprep.subr.bf16.mxu1 %v6809_v14 }
 0x52f   : > { %v4695_v7 = vpop.f32.mrb[74].mxu1 }
 0x530   : > { %v1915_v10 = vpop.f32.mrb[75].mxu1 }
 0x531   : > { %v4998_v12 = vpack.c.bf16 %v4695_v7, %v1915_v10  ;;  %v5376_v7 = vld [vmem:[%s5562_s14 + $0xf0] sm:$0xff]  ;;  %v5377_v10 = vld [vmem:[%s5562_s14 + $0x108] sm:$0xff] }
 0x533   : > { %4999 = vmatpush1.bf16.msra.mxu0 %v4998_v12  ;;  %5175 = vmatpush1.bf16.msra.mxu1 %v4998_v12  ;;  %v5378_v12 = vld [vmem:[%s5562_s14 + $0x100] sm:$0xff] }
 0x534   : > { %5000 = vmatprep.subr.bf16.mxu0 %v6809_v14  ;;  %5160 = vmatprep.subr.bf16.mxu1 %v6809_v14 }
 0x537   : > { %v4698_v15 = vpop.f32.mrb[76].mxu1 }
 0x538   : > { %v1925_v17 = vpop.f32.mrb[77].mxu1 }
 0x539   : > { %v5001_v18 = vpack.c.bf16 %v4698_v15, %v1925_v17  ;;  %v5379_v15 = vld [vmem:[%s5562_s14 + $0x118] sm:$0xff]  ;;  %v5380_v17 = vld [vmem:[%s5562_s14 + $0x110] sm:$0xff] }
 0x53b   : > { %5002 = vmatpush1.bf16.msra.mxu0 %v5001_v18  ;;  %5176 = vmatpush1.bf16.msra.mxu1 %v5001_v18  ;;  %v5381_v18 = vld [vmem:[%s5562_s14 + $0x128] sm:$0xff] }
 0x53c   : > { %5003 = vmatprep.subr.bf16.mxu0 %v6809_v14  ;;  %5161 = vmatprep.subr.bf16.mxu1 %v6809_v14 }
 0x53f   : > { %v4701_v22 = vpop.f32.mrb[78].mxu1 }
 0x540   : > { %v1935_v16 = vpop.f32.mrb[79].mxu1 }
 0x541   : > { %v5004_v8 = vpack.c.bf16 %v4701_v22, %v1935_v16  ;;  %v5382_v22 = vld [vmem:[%s5562_s14 + $0x120] sm:$0xff]  ;;  %v5383_v16 = vld [vmem:[%s5562_s14 + $0x138] sm:$0xff] }
 0x543   : > { %5005 = vmatpush1.bf16.msra.mxu0 %v5004_v8  ;;  %5177 = vmatpush1.bf16.msra.mxu1 %v5004_v8  ;;  %v5384_v8 = vld [vmem:[%s5562_s14 + $0x130] sm:$0xff] }
 0x544   : > { %5006 = vmatprep.subr.bf16.mxu0 %v6809_v14  ;;  %5162 = vmatprep.subr.bf16.mxu1 %v6809_v14 }
 0x547   : > { %v4704_v21 = vpop.f32.mrb[80].mxu1 }
 0x548   : > { %v1945_v20 = vpop.f32.mrb[81].mxu1 }
 0x549   : > { %v5007_v36 = vpack.c.bf16 %v4704_v21, %v1945_v20  ;;  %v5385_v21 = vld [vmem:[%s5562_s14 + $0x148] sm:$0xff]  ;;  %v5386_v20 = vld [vmem:[%s5562_s14 + $0x140] sm:$0xff] }
 0x54b   : > { %5008 = vmatpush1.bf16.msra.mxu0 %v5007_v36  ;;  %5178 = vmatpush1.bf16.msra.mxu1 %v5007_v36  ;;  %v5387_v36 = vld [vmem:[%s5562_s14 + $0x158] sm:$0xff] }
 0x54c   : > { %5009 = vmatprep.subr.bf16.mxu0 %v6809_v14  ;;  %5163 = vmatprep.subr.bf16.mxu1 %v6809_v14 }
 0x54f   : > { %v4707_v11 = vpop.f32.mrb[82].mxu1 }
 0x550   : > { %v1955_v26 = vpop.f32.mrb[83].mxu1 }
 0x551   : > { %v5010_v13 = vpack.c.bf16 %v4707_v11, %v1955_v26  ;;  %v5388_v11 = vld [vmem:[%s5562_s14 + $0x150] sm:$0xff]  ;;  %v5389_v26 = vld [vmem:[%s5562_s14 + $0x168] sm:$0xff] }
 0x553   : > { %5011 = vmatpush1.bf16.msra.mxu0 %v5010_v13  ;;  %5179 = vmatpush1.bf16.msra.mxu1 %v5010_v13  ;;  %v5390_v13 = vld [vmem:[%s5562_s14 + $0x160] sm:$0xff] }
 0x554   : > { %5012 = vmatprep.subr.bf16.mxu0 %v6809_v14  ;;  %5164 = vmatprep.subr.bf16.mxu1 %v6809_v14 }
 0x557   : > { %v4710_v19 = vpop.f32.mrb[84].mxu1 }
 0x558   : > { %v1965_v28 = vpop.f32.mrb[85].mxu1 }
 0x559   : > { %v5013_v25 = vpack.c.bf16 %v4710_v19, %v1965_v28  ;;  %v5391_v19 = vld [vmem:[%s5562_s14 + $0x178] sm:$0xff]  ;;  %v351_v28 = vld [vmem:[%s6772_s4 + $0x70] sm:$0xff] }
 0x55b   : > { %5014 = vmatpush1.bf16.msra.mxu0 %v5013_v25  ;;  %5180 = vmatpush1.bf16.msra.mxu1 %v5013_v25  ;;  %v352_v25 = vld [vmem:[%s6772_s4 + $0x78] sm:$0xff] }
 0x55c   : > { %5015 = vmatprep.subr.bf16.mxu0 %v6809_v14  ;;  %5165 = vmatprep.subr.bf16.mxu1 %v6809_v14 }
 0x55f   : > { %v4713_v23 = vpop.f32.mrb[86].mxu1 }
 0x560   : > { %v1975_v35 = vpop.f32.mrb[87].mxu1 }
 0x561   : > { %v5016_v9 = vpack.c.bf16 %v4713_v23, %v1975_v35  ;;  %v5392_v23 = vld [vmem:[%s5562_s14 + $0x170] sm:$0xff]  ;;  %v5030_v35 = vpack.c.bf16 %v352_v25, %v351_v28 }
 0x563   : > { %5017 = vmatpush1.bf16.msra.mxu0 %v5016_v9  ;;  %5181 = vmatpush1.bf16.msra.mxu1 %v5016_v9  ;;  %v5393_v9 = vld [vmem:[%s5562_s14 + $0x188] sm:$0xff] }
 0x564   : > { %5018 = vmatprep.subr.bf16.mxu0 %v6809_v14  ;;  %5166 = vmatprep.subr.bf16.mxu1 %v6809_v14 }
 0x567   : > { %v4716_v24 = vpop.f32.mrb[88].mxu1 }
 0x568   : > { %v1985_v29 = vpop.f32.mrb[89].mxu1 }
 0x569   : > { %v5019_v30 = vpack.c.bf16 %v4716_v24, %v1985_v29  ;;  %v5394_v24 = vld [vmem:[%s5562_s14 + $0x180] sm:$0xff]  ;;  %v5396_v29 = vld [vmem:[%s5562_s14 + $0x190] sm:$0xff] }
 0x56b   : > { %5020 = vmatpush1.bf16.msra.mxu0 %v5019_v30  ;;  %5182 = vmatpush1.bf16.msra.mxu1 %v5019_v30  ;;  %v5397_v30 = vld [vmem:[%s5562_s14 + $0x1a8] sm:$0xff] }
 0x56c   : > { %5021 = vmatprep.subr.bf16.mxu0 %v6809_v14  ;;  %5167 = vmatprep.subr.bf16.mxu1 %v6809_v14 }
 0x56f   : > { %v4719_v31 = vpop.f32.mrb[90].mxu1 }
 0x570   : > { %v1995_v32 = vpop.f32.mrb[91].mxu1 }
 0x571   : > { %v5022_v33 = vpack.c.bf16 %v4719_v31, %v1995_v32  ;;  %v5398_v31 = vld [vmem:[%s5562_s14 + $0x1a0] sm:$0xff]  ;;  %v5399_v32 = vld [vmem:[%s5562_s14 + $0x1b8] sm:$0xff] }
 0x573   : > { %5023 = vmatpush1.bf16.msra.mxu0 %v5022_v33  ;;  %5183 = vmatpush1.bf16.msra.mxu1 %v5022_v33  ;;  %v5400_v33 = vld [vmem:[%s5562_s14 + $0x1b0] sm:$0xff] }
 0x574   : > { %5024 = vmatprep.subr.bf16.mxu0 %v6809_v14  ;;  %5168 = vmatprep.subr.bf16.mxu1 %v6809_v14 }
 0x577   : > { %v4722_v34 = vpop.f32.mrb[92].mxu1 }
 0x578   : > { %v2005_v37 = vpop.f32.mrb[93].mxu1 }
 0x579   : > { %v5025_v38 = vpack.c.bf16 %v4722_v34, %v2005_v37  ;;  %v5401_v34 = vld [vmem:[%s5562_s14 + $0x1c8] sm:$0xff]  ;;  %v5402_v37 = vld [vmem:[%s5562_s14 + $0x1c0] sm:$0xff] }
 0x57b   : > { %5026 = vmatpush1.bf16.msra.mxu0 %v5025_v38  ;;  %5184 = vmatpush1.bf16.msra.mxu1 %v5025_v38  ;;  %v5403_v38 = vld [vmem:[%s5562_s14 + $0x1d8] sm:$0xff] }
 0x57c   : > { %5027 = vmatprep.subr.bf16.mxu0 %v6809_v14  ;;  %5169 = vmatprep.subr.bf16.mxu1 %v6809_v14 }
 0x57f   : > { %v4725_v39 = vpop.f32.mrb[94].mxu1 }
 0x580   : > { %v2015_v40 = vpop.f32.mrb[95].mxu1 }
 0x581   : > { %v5028_v41 = vpack.c.bf16 %v4725_v39, %v2015_v40  ;;  %v5404_v39 = vld [vmem:[%s5562_s14 + $0x1d0] sm:$0xff]  ;;  %v5405_v40 = vld [vmem:[%s5562_s14 + $0x1e8] sm:$0xff] }
 0x583   : > { %5029 = vmatpush1.bf16.msra.mxu0 %v5028_v41  ;;  %5185 = vmatpush1.bf16.msra.mxu1 %v5028_v41  ;;  %v5406_v41 = vld [vmem:[%s5562_s14 + $0x1e0] sm:$0xff] }
 0x584   : > { %5031 = vmatprep.subr.bf16.mxu0 %v5030_v35 }
 0x586   : > { %2092 = vmatmul.mubr.f32.vlgmr.msra.gmra.mrb[128].mxu0 %v5347_v42  ;;  %2102 = vmatmul.mubr.f32.vlgmr.msra.gmra.mrb[96].mxu1 %v5348_v43  ;;  %v5407_v42 = vld [vmem:[%s5562_s14 + $0x1f8] sm:$0xff]  ;;  %v5408_v43 = vld [vmem:[%s5562_s14 + $0x1f0] sm:$0xff]  ;;  %s4251_s14 = sshll.u32 %s6827_s25, 5 }
 0x587   : > { %2096 = vmatprep.mubr.f32.mxu0 %v5349_v44  ;;  %2106 = vmatprep.mubr.f32.mxu1 %v5350_v45  ;;  %v6192_v44 = vpop.permute.xlu0 %2024  ;;  %s6358_s12 = scalar_lea.vmem %s6770_s2, %s4251_s14 }
 0x588   : > { %5033 = vmatpush3.bf16.msra.mxu0 %v5030_v35 }
 0x58a   : > { %2097 = vmatmul.mubr.f32.gmra.mrb[130].mxu0 %v5351_v46  ;;  %2107 = vmatmul.mubr.f32.gmra.mrb[98].mxu1 %v5352_v47 }
 0x58b   : > { %2111 = vmatprep.mubr.f32.mxu1 %v5353_v48 }
 0x58e   : > { %2112 = vmatmul.mubr.f32.gmra.mrb[100].mxu1 %v5354_v49 }
 0x58f   : > { %2116 = vmatprep.mubr.f32.mxu1 %v5355_v50 }
 0x592   : > { %2117 = vmatmul.mubr.f32.gmra.mrb[102].mxu1 %v5356_v52 }
 0x593   : > { %2121 = vmatprep.mubr.f32.mxu1 %v5357_v53 }
 0x596   : > { %2122 = vmatmul.mubr.f32.gmra.mrb[104].mxu1 %v5358_v54 }
 0x597   : > { %2126 = vmatprep.mubr.f32.mxu1 %v5359_v55 }
 0x59a   : > { %2127 = vmatmul.mubr.f32.gmra.mrb[106].mxu1 %v5360_v56 }
 0x59b   : > { %2131 = vmatprep.mubr.f32.mxu1 %v5361_v57 }
 0x59e   : > { %2132 = vmatmul.mubr.f32.gmra.mrb[108].mxu1 %v5362_v58 }
 0x59f   : > { %2136 = vmatprep.mubr.f32.mxu1 %v5363_v59 }
 0x5a2   : > { %2137 = vmatmul.mubr.f32.gmra.mrb[110].mxu1 %v5364_v60 }
 0x5a3   : > { %2141 = vmatprep.mubr.f32.mxu1 %v5365_v61 }
 0x5a6   : > { %2142 = vmatmul.mubr.f32.gmra.mrb[112].mxu1 %v5366_v51 }
 0x5a7   : > { %2146 = vmatprep.mubr.f32.mxu1 %v5367_v62 }
 0x5aa   : > { %2147 = vmatmul.mubr.f32.gmra.mrb[114].mxu1 %v5368_v63 }
 0x5ab   : > { %2151 = vmatprep.mubr.f32.mxu1 %v5369_v0 }
 0x5ae   : > { %2152 = vmatmul.mubr.f32.gmra.mrb[116].mxu1 %v5370_v1 }
 0x5af   : > { %2156 = vmatprep.mubr.f32.mxu1 %v5371_v2 }
 0x5b2   : > { %2157 = vmatmul.mubr.f32.gmra.mrb[118].mxu1 %v5372_v3 }
 0x5b3   : > { %2161 = vmatprep.mubr.f32.mxu1 %v5373_v4 }
 0x5b6   : > { %2162 = vmatmul.mubr.f32.gmra.mrb[120].mxu1 %v5374_v5 }
 0x5b7   : > { %2166 = vmatprep.mubr.f32.mxu1 %v5375_v6 }
 0x5ba   : > { %2167 = vmatmul.mubr.f32.gmra.mrb[122].mxu1 %v5376_v7 }
 0x5bb   : > { %2171 = vmatprep.mubr.f32.mxu1 %v5377_v10 }
 0x5be   : > { %2172 = vmatmul.mubr.f32.gmra.mrb[124].mxu1 %v5378_v12 }
 0x5bf   : > { %2176 = vmatprep.mubr.f32.mxu1 %v5379_v15 }
 0x5c2   : > { %2177 = vmatmul.mubr.f32.gmra.mrb[126].mxu1 %v5380_v17 }
 0x5c3   : > { %2181 = vmatprep.mubr.f32.mxu1 %v5381_v18 }
 0x5c6   : > { %2182 = vmatmul.mubr.f32.gmra.mrb[128].mxu1 %v5382_v22 }
 0x5c7   : > { %2186 = vmatprep.mubr.f32.mxu1 %v5383_v16 }
 0x5ca   : > { %2187 = vmatmul.mubr.f32.gmra.mrb[130].mxu1 %v5384_v8 }
 0x5cb   : > { %2191 = vmatprep.mubr.f32.mxu1 %v5385_v21 }
 0x5ce   : > { %2192 = vmatmul.mubr.f32.gmra.mrb[132].mxu1 %v5386_v20 }
 0x5cf   : > { %2196 = vmatprep.mubr.f32.mxu1 %v5387_v36 }
 0x5d2   : > { %2197 = vmatmul.mubr.f32.gmra.mrb[134].mxu1 %v5388_v11 }
 0x5d3   : > { %2201 = vmatprep.mubr.f32.mxu1 %v5389_v26 }
 0x5d6   : > { %2202 = vmatmul.mubr.f32.gmra.mrb[136].mxu1 %v5390_v13 }
 0x5d7   : > { %2206 = vmatprep.mubr.f32.mxu1 %v5391_v19 }
 0x5da   : > { %2207 = vmatmul.mubr.f32.gmra.mrb[138].mxu1 %v5392_v23 }
 0x5db   : > { %2211 = vmatprep.mubr.f32.mxu1 %v5393_v9 }
 0x5de   : > { %2212 = vmatmul.mubr.f32.gmra.mrb[140].mxu1 %v5394_v24 }
 0x5df   : > { %2216 = vmatprep.mubr.f32.mxu1 %v5395_v27 }
 0x5e2   : > { %2217 = vmatmul.mubr.f32.gmra.mrb[142].mxu1 %v5396_v29 }
 0x5e3   : > { %2221 = vmatprep.mubr.f32.mxu1 %v5397_v30 }
 0x5e6   : > { %2222 = vmatmul.mubr.f32.gmra.mrb[144].mxu1 %v5398_v31 }
 0x5e7   : > { %2226 = vmatprep.mubr.f32.mxu1 %v5399_v32 }
 0x5ea   : > { %2227 = vmatmul.mubr.f32.gmra.mrb[146].mxu1 %v5400_v33 }
 0x5eb   : > { %2231 = vmatprep.mubr.f32.mxu1 %v5401_v34 }
 0x5ee   : > { %2232 = vmatmul.mubr.f32.gmra.mrb[148].mxu1 %v5402_v37 }
 0x5ef   : > { %2236 = vmatprep.mubr.f32.mxu1 %v5403_v38 }
 0x5f2   : > { %2237 = vmatmul.mubr.f32.gmra.mrb[150].mxu1 %v5404_v39 }
 0x5f3   : > { %2241 = vmatprep.mubr.f32.mxu1 %v5405_v40 }
 0x5f6   : > { %2242 = vmatmul.mubr.f32.gmra.mrb[152].mxu1 %v5406_v41 }
 0x5f7   : > { %2246 = vmatprep.mubr.f32.mxu1 %v5407_v42 }
 0x5fa   : > { %2247 = vmatmul.mubr.f32.gmra.mrb[154].mxu1 %v5408_v43 }
 0x659   : > { %v2103_v45 = vpop.f32.mrb[96].mxu1  ;;  %v2093_v46 = vpop.f32.mrb[128].mxu0 }
 0x65a   : > { %v2105_v47 = vpop.f32.mrb[97].mxu1  ;;  %v6195_v48 = vadd.f32 %v2093_v46, %v6192_v44  ;;  %v2095_v49 = vpop.f32.mrb[129].mxu0  ;;  %v6203_v56 = vadd.f32 %v2103_v45, %v6192_v44 }
 0x65c   : > { %4730 = vmatprep.mubr.msk.f32.mxu0 %vm535_vm0, %v6195_v48 }
 0x65d   : > { %v2098_v50 = vpop.f32.mrb[130].mxu0  ;;  %v2108_v52 = vpop.f32.mrb[98].mxu1 }
 0x65e   : > { %v6200_v53 = vadd.f32 %v2098_v50, %v6192_v44  ;;  %v2110_v54 = vpop.f32.mrb[99].mxu1  ;;  %v2100_v55 = vpop.f32.mrb[131].mxu0  ;;  %v6210_v58 = vadd.f32 %v2108_v52, %v6192_v44 }
 0x660   : > { %4731 = vmatmul.mubr.msk.f32.vlgmr.msra.gmra.mrb[132].mxu0 %vm535_vm0, %v6200_v53 }
 0x661   : > { %v2113_v57 = vpop.f32.mrb[100].mxu1  ;;  %4733 = vmatprep.mubr.msk.f32.mxu0 %vm535_vm0, %v6203_v56 }
 0x662   : > { %v6213_v59 = vadd.f32 %v2113_v57, %v6192_v44  ;;  %v2115_v60 = vpop.f32.mrb[101].mxu1 }
 0x664   : > { %4734 = vmatmul.mubr.msk.f32.gmra.mrb[134].mxu0 %vm535_vm0, %v6210_v58 }
 0x665   : > { %v2118_v61 = vpop.f32.mrb[102].mxu1  ;;  %4736 = vmatprep.mubr.msk.f32.mxu0 %vm535_vm0, %v6213_v59 }
 0x666   : > { %v6220_v51 = vadd.f32 %v2118_v61, %v6192_v44  ;;  %v2120_v62 = vpop.f32.mrb[103].mxu1 }
 0x668   : > { %4737 = vmatmul.mubr.msk.f32.gmra.mrb[136].mxu0 %vm535_vm0, %v6220_v51 }
 0x669   : > { %v2123_v63 = vpop.f32.mrb[104].mxu1 }
 0x66a   : > { %v6225_v0 = vadd.f32 %v2123_v63, %v6192_v44  ;;  %v2125_v1 = vpop.f32.mrb[105].mxu1 }
 0x66c   : > { %4739 = vmatprep.mubr.msk.f32.mxu0 %vm535_vm0, %v6225_v0 }
 0x66d   : > { %v2128_v2 = vpop.f32.mrb[106].mxu1 }
 0x66e   : > { %v6230_v3 = vadd.f32 %v2128_v2, %v6192_v44  ;;  %v2130_v4 = vpop.f32.mrb[107].mxu1 }
 0x670   : > { %4740 = vmatmul.mubr.msk.f32.gmra.mrb[138].mxu0 %vm535_vm0, %v6230_v3 }
 0x671   : > { %v2133_v5 = vpop.f32.mrb[108].mxu1 }
 0x672   : > { %v6235_v6 = vadd.f32 %v2133_v5, %v6192_v44  ;;  %v2135_v7 = vpop.f32.mrb[109].mxu1 }
 0x674   : > { %4742 = vmatprep.mubr.msk.f32.mxu0 %vm535_vm0, %v6235_v6 }
 0x675   : > { %v2138_v10 = vpop.f32.mrb[110].mxu1 }
 0x676   : > { %v6240_v12 = vadd.f32 %v2138_v10, %v6192_v44  ;;  %v2140_v15 = vpop.f32.mrb[111].mxu1 }
 0x678   : > { %4743 = vmatmul.mubr.msk.f32.gmra.mrb[140].mxu0 %vm535_vm0, %v6240_v12 }
 0x679   : > { %v2143_v17 = vpop.f32.mrb[112].mxu1 }
 0x67a   : > { %v6245_v18 = vadd.f32 %v2143_v17, %v6192_v44  ;;  %v2145_v22 = vpop.f32.mrb[113].mxu1 }
 0x67c   : > { %4745 = vmatprep.mubr.msk.f32.mxu0 %vm535_vm0, %v6245_v18 }
 0x67d   : > { %v2148_v16 = vpop.f32.mrb[114].mxu1 }
 0x67e   : > { %v6250_v8 = vadd.f32 %v2148_v16, %v6192_v44  ;;  %v2150_v21 = vpop.f32.mrb[115].mxu1 }
 0x680   : > { %4746 = vmatmul.mubr.msk.f32.gmra.mrb[142].mxu0 %vm535_vm0, %v6250_v8 }
 0x681   : > { %v2153_v20 = vpop.f32.mrb[116].mxu1 }
 0x682   : > { %v6255_v36 = vadd.f32 %v2153_v20, %v6192_v44  ;;  %v2155_v11 = vpop.f32.mrb[117].mxu1 }
 0x684   : > { %4748 = vmatprep.mubr.msk.f32.mxu0 %vm535_vm0, %v6255_v36 }
 0x685   : > { %v2158_v26 = vpop.f32.mrb[118].mxu1 }
 0x686   : > { %v6260_v13 = vadd.f32 %v2158_v26, %v6192_v44  ;;  %v2160_v19 = vpop.f32.mrb[119].mxu1 }
 0x688   : > { %4749 = vmatmul.mubr.msk.f32.gmra.mrb[144].mxu0 %vm535_vm0, %v6260_v13 }
 0x689   : > { %v2163_v28 = vpop.f32.mrb[120].mxu1 }
 0x68a   : > { %v6265_v25 = vadd.f32 %v2163_v28, %v6192_v44  ;;  %v2165_v23 = vpop.f32.mrb[121].mxu1 }
 0x68c   : > { %4751 = vmatprep.mubr.msk.f32.mxu0 %vm535_vm0, %v6265_v25 }
 0x68d   : > { %v2168_v35 = vpop.f32.mrb[122].mxu1 }
 0x68e   : > { %v6270_v9 = vadd.f32 %v2168_v35, %v6192_v44  ;;  %v2170_v24 = vpop.f32.mrb[123].mxu1 }
 0x690   : > { %4752 = vmatmul.mubr.msk.f32.gmra.mrb[146].mxu0 %vm535_vm0, %v6270_v9 }
 0x691   : > { %v2173_v27 = vpop.f32.mrb[124].mxu1 }
 0x692   : > { %v6275_v29 = vadd.f32 %v2173_v27, %v6192_v44  ;;  %v2175_v30 = vpop.f32.mrb[125].mxu1 }
 0x694   : > { %4754 = vmatprep.mubr.msk.f32.mxu0 %vm535_vm0, %v6275_v29 }
 0x695   : > { %v2178_v31 = vpop.f32.mrb[126].mxu1 }
 0x696   : > { %v6280_v32 = vadd.f32 %v2178_v31, %v6192_v44  ;;  %v2180_v33 = vpop.f32.mrb[127].mxu1  ;;  %v500_v31 = vld [vmem:[%s6358_s12 + $0x8] sm:$0xff] }
 0x697   : > { %3399 = vmatprep.mubr.f32.mxu1 %v500_v31  ;;  %v6362_v33 = vld [vmem:[%s6358_s12] sm:$0xff] }
 0x698   : > { %4755 = vmatmul.mubr.msk.f32.gmra.mrb[148].mxu0 %vm535_vm0, %v6280_v32 }
 0x699   : > { %v2183_v34 = vpop.f32.mrb[128].mxu1 }
 0x69a   : > { %v6285_v37 = vadd.f32 %v2183_v34, %v6192_v44  ;;  %v2185_v38 = vpop.f32.mrb[129].mxu1  ;;  %v6366_v34 = vld [vmem:[%s6358_s12 + $0x18] sm:$0xff] }
 0x69b   : > { %v6369_v38 = vld [vmem:[%s6358_s12 + $0x10] sm:$0xff] }
 0x69c   : > { %4757 = vmatprep.mubr.msk.f32.mxu0 %vm535_vm0, %v6285_v37 }
 0x69d   : > { %v2188_v39 = vpop.f32.mrb[130].mxu1 }
 0x69e   : > { %v6290_v40 = vadd.f32 %v2188_v39, %v6192_v44  ;;  %v2190_v41 = vpop.f32.mrb[131].mxu1  ;;  %v2651_v39 = vadd.f32 %v6366_v34, %v6369_v38 }
 0x6a0   : > { %4758 = vmatmul.mubr.msk.f32.gmra.mrb[150].mxu0 %vm535_vm0, %v6290_v40 }
 0x6a1   : > { %v2193_v42 = vpop.f32.mrb[132].mxu1 }
 0x6a2   : > { %v6295_v43 = vadd.f32 %v2193_v42, %v6192_v44  ;;  %v2195_v45 = vpop.f32.mrb[133].mxu1 }
 0x6a4   : > { %4760 = vmatprep.mubr.msk.f32.mxu0 %vm535_vm0, %v6295_v43 }
 0x6a5   : > { %v2198_v46 = vpop.f32.mrb[134].mxu1 }
 0x6a6   : > { %v6300_v47 = vadd.f32 %v2198_v46, %v6192_v44  ;;  %v2200_v49 = vpop.f32.mrb[135].mxu1 }
 0x6a8   : > { %4761 = vmatmul.mubr.msk.f32.gmra.mrb[152].mxu0 %vm535_vm0, %v6300_v47 }
 0x6a9   : > { %v2203_v50 = vpop.f32.mrb[136].mxu1 }
 0x6aa   : > { %v6305_v52 = vadd.f32 %v2203_v50, %v6192_v44  ;;  %v2205_v54 = vpop.f32.mrb[137].mxu1 }
 0x6ac   : > { %4763 = vmatprep.mubr.msk.f32.mxu0 %vm535_vm0, %v6305_v52 }
 0x6ad   : > { %v2208_v55 = vpop.f32.mrb[138].mxu1 }
 0x6ae   : > { %v6310_v57 = vadd.f32 %v2208_v55, %v6192_v44  ;;  %v2210_v60 = vpop.f32.mrb[139].mxu1 }
 0x6b0   : > { %4764 = vmatmul.mubr.msk.f32.gmra.mrb[154].mxu0 %vm535_vm0, %v6310_v57 }
 0x6b1   : > { %v2213_v61 = vpop.f32.mrb[140].mxu1 }
 0x6b2   : > { %v6315_v62 = vadd.f32 %v2213_v61, %v6192_v44  ;;  %v2215_v63 = vpop.f32.mrb[141].mxu1 }
 0x6b4   : > { %4766 = vmatprep.mubr.msk.f32.mxu0 %vm535_vm0, %v6315_v62 }
 0x6b5   : > { %v2218_v1 = vpop.f32.mrb[142].mxu1 }
 0x6b6   : > { %v6320_v2 = vadd.f32 %v2218_v1, %v6192_v44  ;;  %v2220_v4 = vpop.f32.mrb[143].mxu1 }
 0x6b8   : > { %4767 = vmatmul.mubr.msk.f32.gmra.mrb[156].mxu0 %vm535_vm0, %v6320_v2 }
 0x6b9   : > { %v2223_v5 = vpop.f32.mrb[144].mxu1 }
 0x6ba   : > { %v6325_v7 = vadd.f32 %v2223_v5, %v6192_v44  ;;  %v2225_v10 = vpop.f32.mrb[145].mxu1 }
 0x6bc   : > { %4769 = vmatprep.mubr.msk.f32.mxu0 %vm535_vm0, %v6325_v7 }
 0x6bd   : > { %v2228_v15 = vpop.f32.mrb[146].mxu1 }
 0x6be   : > { %v6330_v17 = vadd.f32 %v2228_v15, %v6192_v44  ;;  %v2230_v22 = vpop.f32.mrb[147].mxu1 }
 0x6c0   : > { %4770 = vmatmul.mubr.msk.f32.gmra.mrb[158].mxu0 %vm535_vm0, %v6330_v17 }
 0x6c1   : > { %v2233_v16 = vpop.f32.mrb[148].mxu1 }
 0x6c2   : > { %v6335_v21 = vadd.f32 %v2233_v16, %v6192_v44  ;;  %v2235_v20 = vpop.f32.mrb[149].mxu1 }
 0x6c4   : > { %4772 = vmatprep.mubr.msk.f32.mxu0 %vm535_vm0, %v6335_v21 }
 0x6c5   : > { %v2238_v11 = vpop.f32.mrb[150].mxu1 }
 0x6c6   : > { %v6340_v26 = vadd.f32 %v2238_v11, %v6192_v44  ;;  %v2240_v19 = vpop.f32.mrb[151].mxu1 }
 0x6c8   : > { %4773 = vmatmul.mubr.msk.f32.gmra.mrb[160].mxu0 %vm535_vm0, %v6340_v26 }
 0x6c9   : > { %v2243_v28 = vpop.f32.mrb[152].mxu1 }
 0x6ca   : > { %v6345_v23 = vadd.f32 %v2243_v28, %v6192_v44  ;;  %v2245_v35 = vpop.f32.mrb[153].mxu1 }
 0x6cc   : > { %4775 = vmatprep.mubr.msk.f32.mxu0 %vm535_vm0, %v6345_v23 }
 0x6cd   : > { %v2248_v24 = vpop.f32.mrb[154].mxu1 }
 0x6ce   : > { %v6350_v27 = vadd.f32 %v2248_v24, %v6192_v44  ;;  %v2250_v30 = vpop.f32.mrb[155].mxu1  ;;  %v2648_v44 = vadd.f32 %v500_v31, %v6362_v33 }
 0x6d0   : > { %4776 = vmatmul.mubr.msk.f32.gmra.mrb[162].mxu0 %vm535_vm0, %v6350_v27  ;;  %2649 = vadd.xlane.f32.xlu1 %v2648_v44 }
 0x6d1   : > { %2637 = vmatprep.mubr.f32.mxu0 %v500_v31 }
 0x6d4   : > { %2652 = vadd.xlane.f32.xlu1 %v2651_v39 }
 0x733   : > { %v4732_v41 = vpop.f32.mrb[132].mxu0 }
 0x734   : > { %v2414_v42 = vpop.f32.mrb[133].mxu0 }
 0x735   : > { %v5036_v45 = vpack.c.bf16 %v4732_v41, %v2414_v42 }
 0x737   : > { %v4735_v46 = vpop.f32.mrb[134].mxu0 }
 0x738   : > { %v2424_v49 = vpop.f32.mrb[135].mxu0 }
 0x739   : > { %v5040_v50 = vpack.c.bf16 %v4735_v46, %v2424_v49 }
 0x73b   : > { %v4738_v54 = vpop.f32.mrb[136].mxu0 }
 0x73c   : > { %v2434_v55 = vpop.f32.mrb[137].mxu0 }
 0x73d   : > { %v5044_v60 = vpack.c.bf16 %v4738_v54, %v2434_v55 }
 0x743   : > { %v4741_v61 = vpop.f32.mrb[138].mxu0 }
 0x744   : > { %v2444_v63 = vpop.f32.mrb[139].mxu0 }
 0x745   : > { %v5048_v1 = vpack.c.bf16 %v4741_v61, %v2444_v63 }
 0x74b   : > { %v4744_v4 = vpop.f32.mrb[140].mxu0 }
 0x74c   : > { %v2454_v5 = vpop.f32.mrb[141].mxu0 }
 0x74d   : > { %v5052_v10 = vpack.c.bf16 %v4744_v4, %v2454_v5 }
 0x753   : > { %v4747_v15 = vpop.f32.mrb[142].mxu0 }
 0x754   : > { %v2464_v22 = vpop.f32.mrb[143].mxu0 }
 0x755   : > { %v5056_v16 = vpack.c.bf16 %v4747_v15, %v2464_v22 }
 0x75b   : > { %v4750_v20 = vpop.f32.mrb[144].mxu0 }
 0x75c   : > { %v2474_v11 = vpop.f32.mrb[145].mxu0 }
 0x75d   : > { %v5060_v19 = vpack.c.bf16 %v4750_v20, %v2474_v11 }
 0x763   : > { %v4753_v28 = vpop.f32.mrb[146].mxu0 }
 0x764   : > { %v2484_v35 = vpop.f32.mrb[147].mxu0 }
 0x765   : > { %v5064_v24 = vpack.c.bf16 %v4753_v28, %v2484_v35 }
 0x76b   : > { %v4756_v30 = vpop.f32.mrb[148].mxu0 }
 0x76c   : > { %v2494_v31 = vpop.f32.mrb[149].mxu0 }
 0x76d   : > { %v5034_v44 = vpack.c.bf16 %v4756_v30, %v2494_v31 }
 0x76f   : > { %5035 = vmatprep.subr.bf16.mxu0 %v5034_v44 }
 0x770   : > { %5037 = vmatpush3.bf16.msra.mxu0 %v5036_v45 }
 0x773   : > { %v4759_v39 = vpop.f32.mrb[150].mxu0 }
 0x774   : > { %v2504_v41 = vpop.f32.mrb[151].mxu0 }
 0x775   : > { %v5038_v42 = vpack.c.bf16 %v4759_v39, %v2504_v41 }
 0x777   : > { %5039 = vmatprep.subr.bf16.mxu0 %v5038_v42 }
 0x778   : > { %5041 = vmatpush3.bf16.msra.mxu0 %v5040_v50 }
 0x77b   : > { %v4762_v46 = vpop.f32.mrb[152].mxu0 }
 0x77c   : > { %v2514_v49 = vpop.f32.mrb[153].mxu0 }
 0x77d   : > { %v5042_v54 = vpack.c.bf16 %v4762_v46, %v2514_v49 }
 0x77f   : > { %5043 = vmatprep.subr.bf16.mxu0 %v5042_v54 }
 0x780   : > { %5045 = vmatpush3.bf16.msra.mxu0 %v5044_v60 }
 0x783   : > { %v4765_v55 = vpop.f32.mrb[154].mxu0 }
 0x784   : > { %v2524_v61 = vpop.f32.mrb[155].mxu0 }
 0x785   : > { %v5046_v63 = vpack.c.bf16 %v4765_v55, %v2524_v61 }
 0x787   : > { %5047 = vmatprep.subr.bf16.mxu0 %v5046_v63  ;;  %v504_v63 = vld [vmem:[%s6381_s16 + $0x8] sm:$0xff] }
 0x788   : > { %5049 = vmatpush3.bf16.msra.mxu0 %v5048_v1  ;;  %v503_v1 = vld [vmem:[%s6381_s16] sm:$0xff] }
 0x78b   : > { %v4768_v4 = vpop.f32.mrb[156].mxu0 }
 0x78c   : > { %v2534_v5 = vpop.f32.mrb[157].mxu0 }
 0x78d   : > { %v5050_v15 = vpack.c.bf16 %v4768_v4, %v2534_v5  ;;  %v505_v4 = vld [vmem:[%s6381_s16 + $0x10] sm:$0xff]  ;;  %v506_v5 = vld [vmem:[%s6381_s16 + $0x18] sm:$0xff] }
 0x78f   : > { %5051 = vmatprep.subr.bf16.mxu0 %v5050_v15  ;;  %v507_v15 = vld [vmem:[%s6381_s16 + $0x20] sm:$0xff] }
 0x790   : > { %5053 = vmatpush3.bf16.msra.mxu0 %v5052_v10  ;;  %v2650_v10 = vpop.xlane.xlu1 %2649 }
 0x793   : > { %v4771_v45 = vpop.f32.mrb[158].mxu0 }
 0x794   : > { %v2544_v22 = vpop.f32.mrb[159].mxu0 }
 0x795   : > { %v5054_v20 = vpack.c.bf16 %v4771_v45, %v2544_v22  ;;  %v508_v45 = vld [vmem:[%s6381_s16 + $0x28] sm:$0xff]  ;;  %v509_v22 = vld [vmem:[%s6381_s16 + $0x30] sm:$0xff] }
 0x797   : > { %5055 = vmatprep.subr.bf16.mxu0 %v5054_v20  ;;  %v510_v20 = vld [vmem:[%s6381_s16 + $0x38] sm:$0xff] }
 0x798   : > { %5057 = vmatpush3.bf16.msra.mxu0 %v5056_v16  ;;  %v2654_v16 = vmax.f32 %v2650_v10, 1.0  ;;  %v518_v10 = vld [vmem:[%s6381_s16 + $0x78] sm:$0xff] }
 0x79a   : > { %5204 = vrcp.f32 %v2654_v16  ;;  %v519_v16 = vld [vmem:[%s6381_s16 + $0x80] sm:$0xff] }
 0x79b   : > { %v4774_v50 = vpop.f32.mrb[160].mxu0 }
 0x79c   : > { %v2554_v11 = vpop.f32.mrb[161].mxu0 }
 0x79d   : > { %v5058_v28 = vpack.c.bf16 %v4774_v50, %v2554_v11  ;;  %v511_v50 = vld [vmem:[%s6381_s16 + $0x40] sm:$0xff]  ;;  %v512_v11 = vld [vmem:[%s6381_s16 + $0x48] sm:$0xff] }
 0x79f   : > { %5059 = vmatprep.subr.bf16.mxu0 %v5058_v28  ;;  %v513_v28 = vld [vmem:[%s6381_s16 + $0x50] sm:$0xff] }
 0x7a0   : > { %5061 = vmatpush3.bf16.msra.mxu0 %v5060_v19  ;;  %v2653_v19 = vpop.xlane.xlu1 %2652 }
 0x7a3   : > { %v4777_v60 = vpop.f32.mrb[162].mxu0 }
 0x7a4   : > { %v2564_v35 = vpop.f32.mrb[163].mxu0 }
 0x7a5   : > { %v5062_v30 = vpack.c.bf16 %v4777_v60, %v2564_v35  ;;  %v514_v60 = vld [vmem:[%s6381_s16 + $0x58] sm:$0xff]  ;;  %v515_v35 = vld [vmem:[%s6381_s16 + $0x60] sm:$0xff] }
 0x7a7   : > { %5063 = vmatprep.subr.bf16.mxu0 %v5062_v30  ;;  %v516_v30 = vld [vmem:[%s6381_s16 + $0x68] sm:$0xff] }
 0x7a8   : > { %5065 = vmatpush3.bf16.msra.mxu0 %v5064_v24  ;;  %v2655_v24 = vmax.f32 %v2653_v19, 1.0  ;;  %v520_v19 = vld [vmem:[%s6381_s16 + $0x88] sm:$0xff] }
 0x7aa   : > { %5206 = vrcp.f32 %v2655_v24  ;;  %v521_v24 = vld [vmem:[%s6381_s16 + $0x90] sm:$0xff] }
 0x7ab   : > { %2638 = vmatmul.mubr.f32.vlgmr.msra.gmra.mrb[164].mxu0 %v6362_v33 }
 0x7ac   : > { %2642 = vmatprep.mubr.f32.mxu0 %v6366_v34 }
 0x7af   : > { %2643 = vmatmul.mubr.f32.gmra.mrb[166].mxu0 %v6369_v38  ;;  %v5205_v38 = vpop.eup %5204 }
 0x7b0   : > { %4782 = vmatprep.mubr.msk.f32.mxu0 %vm535_vm0, %v503_v1  ;;  %v517_v1 = vld [vmem:[%s6381_s16 + $0x70] sm:$0xff] }
 0x7b4   : > { %v5207_v39 = vpop.eup %5206 }
 0x87e   : > { %v4429_v33 = vpop.f32.mrb[164].mxu0 }
 0x87f   : > { %v4430_v34 = vpop.f32.mrb[165].mxu0 }
 0x880   : > { %v4431_v31 = vadd.f32 %v4430_v34, %v4429_v33  ;;  %v522_v33 = vld [vmem:[%s6381_s16 + $0x98] sm:$0xff]  ;;  %v523_v34 = vld [vmem:[%s6381_s16 + $0xa0] sm:$0xff] }
 0x882   : > { %v4432_v44 = vpop.f32.mrb[166].mxu0  ;;  %v2657_v41 = vmul.f32 %v5205_v38, %v4431_v31  ;;  %v524_v38 = vld [vmem:[%s6381_s16 + $0xa8] sm:$0xff]  ;;  %v525_v31 = vld [vmem:[%s6381_s16 + $0xb0] sm:$0xff] }
 0x883   : > { %v4433_v42 = vpop.f32.mrb[167].mxu0 }
 0x884   : > { %v4434_v46 = vadd.f32 %v4433_v42, %v4432_v44  ;;  %5208 = vtanh.f32 %v2657_v41  ;;  %v526_v44 = vld [vmem:[%s6381_s16 + $0xb8] sm:$0xff]  ;;  %v528_v41 = vld [vmem:[%s6381_s16 + $0xc8] sm:$0xff]  ;;  %v529_v42 = vld [vmem:[%s6381_s16 + $0xd0] sm:$0xff] }
 0x886   : > { %v2659_v49 = vmul.f32 %v5207_v39, %v4434_v46  ;;  %v527_v39 = vld [vmem:[%s6381_s16 + $0xc0] sm:$0xff]  ;;  %v530_v46 = vld [vmem:[%s6381_s16 + $0xd8] sm:$0xff] }
 0x888   : > { %5210 = vtanh.f32 %v2659_v49  ;;  %v531_v49 = vld [vmem:[%s6381_s16 + $0xe0] sm:$0xff] }
 0x88e   : > { %v5209_v54 = vpop.eup %5208 }
 0x892   : > { %v5211_v55 = vpop.eup %5210 }
 0x893   : > { %v5066_v61 = vpack.c.bf16 %v5211_v55, %v5209_v54  ;;  %v532_v54 = vld [vmem:[%s6381_s16 + $0xe8] sm:$0xff]  ;;  %v533_v55 = vld [vmem:[%s6381_s16 + $0xf0] sm:$0xff] }
 0x895   : > { %5067 = vmatprep.subr.bf16.mxu0 %v5066_v61 }
 0x896   : > { %5069 = vmatpush3.bf16.msra.mxu0 %v5066_v61  ;;  %v534_v61 = vld [vmem:[%s6381_s16 + $0xf8] sm:$0xff] }
 0x899   : > { %4783 = vmatmul.mubr.msk.f32.vlgmr.msra.gmra.mrb[168].mxu0 %vm535_vm0, %v504_v63 }
 0x89a   : > { %4785 = vmatprep.mubr.msk.f32.mxu0 %vm535_vm0, %v505_v4 }
 0x89d   : > { %4786 = vmatmul.mubr.msk.f32.gmra.mrb[170].mxu0 %vm535_vm0, %v506_v5 }
 0x89e   : > { %4788 = vmatprep.mubr.msk.f32.mxu0 %vm535_vm0, %v507_v15 }
 0x8a1   : > { %4789 = vmatmul.mubr.msk.f32.gmra.mrb[172].mxu0 %vm535_vm0, %v508_v45 }
 0x8a2   : > { %4791 = vmatprep.mubr.msk.f32.mxu0 %vm535_vm0, %v509_v22 }
 0x8a5   : > { %4792 = vmatmul.mubr.msk.f32.gmra.mrb[174].mxu0 %vm535_vm0, %v510_v20 }
 0x8a6   : > { %4794 = vmatprep.mubr.msk.f32.mxu0 %vm535_vm0, %v511_v50 }
 0x8a9   : > { %4795 = vmatmul.mubr.msk.f32.gmra.mrb[176].mxu0 %vm535_vm0, %v512_v11 }
 0x8aa   : > { %4797 = vmatprep.mubr.msk.f32.mxu0 %vm535_vm0, %v513_v28 }
 0x8ad   : > { %4798 = vmatmul.mubr.msk.f32.gmra.mrb[178].mxu0 %vm535_vm0, %v514_v60 }
 0x8ae   : > { %4800 = vmatprep.mubr.msk.f32.mxu0 %vm535_vm0, %v515_v35 }
 0x8b1   : > { %4801 = vmatmul.mubr.msk.f32.gmra.mrb[180].mxu0 %vm535_vm0, %v516_v30 }
 0x8b2   : > { %4803 = vmatprep.mubr.msk.f32.mxu0 %vm535_vm0, %v517_v1 }
 0x8b5   : > { %4804 = vmatmul.mubr.msk.f32.gmra.mrb[182].mxu0 %vm535_vm0, %v518_v10 }
 0x8b6   : > { %4806 = vmatprep.mubr.msk.f32.mxu0 %vm535_vm0, %v519_v16 }
 0x8b9   : > { %4807 = vmatmul.mubr.msk.f32.gmra.mrb[184].mxu0 %vm535_vm0, %v520_v19 }
 0x8ba   : > { %4809 = vmatprep.mubr.msk.f32.mxu0 %vm535_vm0, %v521_v24 }
 0x8bd   : > { %4810 = vmatmul.mubr.msk.f32.gmra.mrb[186].mxu0 %vm535_vm0, %v522_v33 }
 0x8be   : > { %4812 = vmatprep.mubr.msk.f32.mxu0 %vm535_vm0, %v523_v34 }
 0x8c1   : > { %4813 = vmatmul.mubr.msk.f32.gmra.mrb[188].mxu0 %vm535_vm0, %v524_v38 }
 0x8c2   : > { %4815 = vmatprep.mubr.msk.f32.mxu0 %vm535_vm0, %v525_v31 }
 0x8c5   : > { %4816 = vmatmul.mubr.msk.f32.gmra.mrb[190].mxu0 %vm535_vm0, %v526_v44 }
 0x8c6   : > { %4818 = vmatprep.mubr.msk.f32.mxu0 %vm535_vm0, %v527_v39 }
 0x8c9   : > { %4819 = vmatmul.mubr.msk.f32.gmra.mrb[192].mxu0 %vm535_vm0, %v528_v41 }
 0x8ca   : > { %4821 = vmatprep.mubr.msk.f32.mxu0 %vm535_vm0, %v529_v42 }
 0x8cd   : > { %4822 = vmatmul.mubr.msk.f32.gmra.mrb[194].mxu0 %vm535_vm0, %v530_v46 }
 0x8ce   : > { %4824 = vmatprep.mubr.msk.f32.mxu0 %vm535_vm0, %v531_v49 }
 0x8d1   : > { %4825 = vmatmul.mubr.msk.f32.gmra.mrb[196].mxu0 %vm535_vm0, %v532_v54 }
 0x8d2   : > { %4827 = vmatprep.mubr.msk.f32.mxu0 %vm535_vm0, %v533_v55 }
 0x8d5   : > { %4828 = vmatmul.mubr.msk.f32.gmra.mrb[198].mxu0 %vm535_vm0, %v534_v61 }
 0x96c   : > { %v4784_v63 = vpop.f32.mrb[168].mxu0 }
 0x96d   : > { %v2984_v4 = vmul.f32 %v4784_v63, %v6200_v53  ;;  %v2824_v5 = vpop.f32.mrb[169].mxu0 }
 0x96e   : > { %v2983_v15 = vmul.f32 %v2824_v5, %v6195_v48 }
 0x96f   : > { %v3018_v45 = vsel %vm535_vm0, %v2984_v4, 0.0 }
 0x970   : > { %3019 = vadd.xlane.f32.xlu1 %v3018_v45  ;;  %v4787_v22 = vpop.f32.mrb[170].mxu0  ;;  %v3015_v11 = vsel %vm535_vm0, %v2983_v15, 0.0 }
 0x971   : > { %v2834_v20 = vpop.f32.mrb[171].mxu0  ;;  %v2986_v50 = vmul.f32 %v4787_v22, %v6210_v58 }
 0x972   : > { %v2985_v30 = vmul.f32 %v2834_v20, %v6203_v56 }
 0x973   : > { %v3024_v1 = vsel %vm535_vm0, %v2986_v50, 0.0 }
 0x974   : > { %3016 = vadd.xlane.f32.xlu1 %v3015_v11  ;;  %v4790_v28 = vpop.f32.mrb[172].mxu0  ;;  %v3021_v34 = vsel %vm535_vm0, %v2985_v30, 0.0 }
 0x975   : > { %v2988_v60 = vmul.f32 %v4790_v28, %v6220_v51  ;;  %v2844_v35 = vpop.f32.mrb[173].mxu0 }
 0x976   : > { %v2987_v33 = vmul.f32 %v2844_v35, %v6213_v59 }
 0x977   : > { %v3030_v10 = vsel %vm535_vm0, %v2988_v60, 0.0 }
 0x978   : > { %3025 = vadd.xlane.f32.xlu1 %v3024_v1  ;;  %3031 = vadd.xlane.f32.xlu0 %v3030_v10  ;;  %v4793_v16 = vpop.f32.mrb[174].mxu0  ;;  %v3027_v42 = vsel %vm535_vm0, %v2987_v33, 0.0 }
 0x979   : > { %v2990_v19 = vmul.f32 %v4793_v16, %v6230_v3  ;;  %v2854_v24 = vpop.f32.mrb[175].mxu0 }
 0x97a   : > { %v2989_v41 = vmul.f32 %v2854_v24, %v6225_v0 }
 0x97b   : > { %v3036_v38 = vsel %vm535_vm0, %v2990_v19, 0.0 }
 0x97c   : > { %3022 = vadd.xlane.f32.xlu1 %v3021_v34  ;;  %3037 = vadd.xlane.f32.xlu0 %v3036_v38  ;;  %v4796_v31 = vpop.f32.mrb[176].mxu0  ;;  %v3033_v63 = vsel %vm535_vm0, %v2989_v41, 0.0 }
 0x97d   : > { %v2992_v44 = vmul.f32 %v4796_v31, %v6240_v12  ;;  %v2864_v39 = vpop.f32.mrb[177].mxu0 }
 0x97e   : > { %v2991_v61 = vmul.f32 %v2864_v39, %v6235_v6 }
 0x97f   : > { %v3042_v46 = vsel %vm535_vm0, %v2992_v44, 0.0 }
 0x980   : > { %3028 = vadd.xlane.f32.xlu1 %v3027_v42  ;;  %3043 = vadd.xlane.f32.xlu0 %v3042_v46  ;;  %v4799_v49 = vpop.f32.mrb[178].mxu0  ;;  %v3039_v22 = vsel %vm535_vm0, %v2991_v61, 0.0 }
 0x981   : > { %v2994_v54 = vmul.f32 %v4799_v49, %v6250_v8  ;;  %v2874_v55 = vpop.f32.mrb[179].mxu0 }
 0x982   : > { %v2993_v45 = vmul.f32 %v2874_v55, %v6245_v18 }
 0x983   : > { %v3048_v4 = vsel %vm535_vm0, %v2994_v54, 0.0 }
 0x984   : > { %3034 = vadd.xlane.f32.xlu1 %v3033_v63  ;;  %3049 = vadd.xlane.f32.xlu0 %v3048_v4  ;;  %v4802_v5 = vpop.f32.mrb[180].mxu0  ;;  %v3045_v28 = vsel %vm535_vm0, %v2993_v45, 0.0 }
 0x985   : > { %v2884_v15 = vpop.f32.mrb[181].mxu0  ;;  %v2996_v16 = vmul.f32 %v4802_v5, %v6260_v13 }
 0x986   : > { %v2995_v11 = vmul.f32 %v2884_v15, %v6255_v36 }
 0x987   : > { %v3054_v44 = vsel %vm535_vm0, %v2996_v16, 0.0 }
 0x988   : > { %3040 = vadd.xlane.f32.xlu1 %v3039_v22  ;;  %v6470_v20 = vpop.f32.mrb[182].mxu0  ;;  %v3051_v10 = vsel %vm535_vm0, %v2995_v11, 0.0 }
 0x989   : > { %v6472_v50 = vpop.f32.mrb[183].mxu0 }
 0x98c   : > { %3046 = vadd.xlane.f32.xlu1 %v3045_v28  ;;  %v4808_v60 = vpop.f32.mrb[184].mxu0 }
 0x98d   : > { %v2904_v35 = vpop.f32.mrb[185].mxu0  ;;  %v3000_v1 = vmul.f32 %v4808_v60, %v6280_v32 }
 0x98e   : > { %v2999_v30 = vmul.f32 %v2904_v35, %v6275_v29 }
 0x98f   : > { %v3066_v38 = vsel %vm535_vm0, %v3000_v1, 0.0 }
 0x990   : > { %3052 = vadd.xlane.f32.xlu1 %v3051_v10  ;;  %v4811_v19 = vpop.f32.mrb[186].mxu0  ;;  %v3063_v24 = vsel %vm535_vm0, %v2999_v30, 0.0 }
 0x991   : > { %3064 = vadd.xlane.f32.xlu0 %v3063_v24  ;;  %v2914_v33 = vpop.f32.mrb[187].mxu0  ;;  %v3002_v34 = vmul.f32 %v4811_v19, %v6290_v40 }
 0x992   : > { %v3001_v42 = vmul.f32 %v2914_v33, %v6285_v37 }
 0x993   : > { %v3072_v46 = vsel %vm535_vm0, %v3002_v34, 0.0 }
 0x994   : > { %3067 = vadd.xlane.f32.xlu1 %v3066_v38  ;;  %v4814_v31 = vpop.f32.mrb[188].mxu0  ;;  %v3069_v4 = vsel %vm535_vm0, %v3001_v42, 0.0 }
 0x995   : > { %v3004_v39 = vmul.f32 %v4814_v31, %v6300_v47  ;;  %3055 = vadd.xlane.f32.xlu0 %v3054_v44  ;;  %v2924_v41 = vpop.f32.mrb[189].mxu0 }
 0x996   : > { %v3003_v63 = vmul.f32 %v2924_v41, %v6295_v43 }
 0x997   : > { %v3078_v49 = vsel %vm535_vm0, %v3004_v39, 0.0 }
 0x998   : > { %3073 = vadd.xlane.f32.xlu1 %v3072_v46  ;;  %v4817_v54 = vpop.f32.mrb[190].mxu0  ;;  %v3075_v28 = vsel %vm535_vm0, %v3003_v63, 0.0 }
 0x999   : > { %v3006_v55 = vmul.f32 %v4817_v54, %v6310_v57  ;;  %3079 = vadd.xlane.f32.xlu0 %v3078_v49  ;;  %v2934_v61 = vpop.f32.mrb[191].mxu0 }
 0x99a   : > { %v3005_v11 = vmul.f32 %v2934_v61, %v6305_v52 }
 0x99b   : > { %v3084_v5 = vsel %vm535_vm0, %v3006_v55, 0.0  ;;  %v2998_v55 = vmul.f32 %v6470_v20, %v6270_v9 }
 0x99c   : > { %3070 = vadd.xlane.f32.xlu1 %v3069_v4  ;;  %v4820_v15 = vpop.f32.mrb[192].mxu0  ;;  %v3081_v16 = vsel %vm535_vm0, %v3005_v11, 0.0 }
 0x99d   : > { %v3008_v45 = vmul.f32 %v4820_v15, %v6320_v2  ;;  %3085 = vadd.xlane.f32.xlu0 %v3084_v5  ;;  %v2944_v22 = vpop.f32.mrb[193].mxu0  ;;  %v3060_v4 = vsel %vm535_vm0, %v2998_v55, 0.0  ;;  %v2997_v5 = vmul.f32 %v6472_v50, %v6265_v25 }
 0x99e   : > { %v3007_v10 = vmul.f32 %v2944_v22, %v6315_v62 }
 0x99f   : > { %v3090_v60 = vsel %vm535_vm0, %v3008_v45, 0.0  ;;  %v3057_v45 = vsel %vm535_vm0, %v2997_v5, 0.0 }
 0x9a0   : > { %3076 = vadd.xlane.f32.xlu1 %v3075_v28  ;;  %v4823_v35 = vpop.f32.mrb[194].mxu0  ;;  %v3087_v31 = vsel %vm535_vm0, %v3007_v10, 0.0 }
 0x9a1   : > { %v3010_v30 = vmul.f32 %v4823_v35, %v6330_v17  ;;  %3091 = vadd.xlane.f32.xlu0 %v3090_v60  ;;  %v2954_v1 = vpop.f32.mrb[195].mxu0 }
 0x9a2   : > { %v3009_v38 = vmul.f32 %v2954_v1, %v6325_v7 }
 0x9a3   : > { %v3096_v19 = vsel %vm535_vm0, %v3010_v30, 0.0 }
 0x9a4   : > { %3082 = vadd.xlane.f32.xlu1 %v3081_v16  ;;  %v4826_v24 = vpop.f32.mrb[196].mxu0  ;;  %v3093_v49 = vsel %vm535_vm0, %v3009_v38, 0.0 }
 0x9a5   : > { %v3012_v33 = vmul.f32 %v4826_v24, %v6340_v26  ;;  %3097 = vadd.xlane.f32.xlu0 %v3096_v19  ;;  %v2964_v34 = vpop.f32.mrb[197].mxu0 }
 0x9a6   : > { %v3011_v46 = vmul.f32 %v2964_v34, %v6335_v21 }
 0x9a7   : > { %v3102_v44 = vsel %vm535_vm0, %v3012_v33, 0.0 }
 0x9a8   : > { %3088 = vadd.xlane.f32.xlu1 %v3087_v31  ;;  %v4829_v39 = vpop.f32.mrb[198].mxu0  ;;  %v3099_v63 = vsel %vm535_vm0, %v3011_v46, 0.0 }
 0x9a9   : > { %v3014_v41 = vmul.f32 %v4829_v39, %v6350_v27  ;;  %3103 = vadd.xlane.f32.xlu0 %v3102_v44  ;;  %v2974_v42 = vpop.f32.mrb[199].mxu0 }
 0x9aa   : > { %v3013_v61 = vmul.f32 %v2974_v42, %v6345_v23 }
 0x9ab   : > { %v3108_v54 = vsel %vm535_vm0, %v3014_v41, 0.0 }
 0x9ac   : > { %3094 = vadd.xlane.f32.xlu1 %v3093_v49  ;;  %v3105_v15 = vsel %vm535_vm0, %v3013_v61, 0.0 }
 0x9ad   : > { %3109 = vadd.xlane.f32.xlu0 %v3108_v54 }
 0x9b0   : > { %3100 = vadd.xlane.f32.xlu1 %v3099_v63 }
 0x9b1   : > { %3061 = vadd.xlane.f32.xlu0 %v3060_v4 }
 0x9b4   : > { %3106 = vadd.xlane.f32.xlu1 %v3105_v15 }
 0x9b8   : > { %3058 = vadd.xlane.f32.xlu1 %v3057_v45 }
 0x9fd   : > { %v3020_v20 = vpop.xlane.xlu1 %3019 }
 0x9fe   : > { %v4208_v60 = vmul.f32 -1.442695, %v3020_v20 }
 0xa00   : > { %5212 = vpow2.f32 %v4208_v60 }
 0xa01   : > { %v3017_v22 = vpop.xlane.xlu1 %3016 }
 0xa02   : > { %v4207_v35 = vmul.f32 -1.442695, %v3017_v22 }
 0xa04   : > { %5214 = vpow2.f32 %v4207_v35 }
 0xa05   : > { %v3026_v11 = vpop.xlane.xlu1 %3025  ;;  %v3032_v28 = vpop.xlane.xlu0 %3031 }
 0xa06   : > { %v4210_v1 = vmul.f32 -1.442695, %v3026_v11  ;;  %v4212_v10 = vmul.f32 -1.442695, %v3032_v28 }
 0xa08   : > { %5216 = vpow2.f32 %v4210_v1 }
 0xa09   : > { %v3023_v30 = vpop.xlane.xlu1 %3022  ;;  %v3038_v16 = vpop.xlane.xlu0 %3037  ;;  %5218 = vpow2.f32 %v4212_v10 }
 0xa0a   : > { %v4209_v50 = vmul.f32 -1.442695, %v3023_v30  ;;  %v4214_v24 = vmul.f32 -1.442695, %v3038_v16  ;;  %v5213_v31 = vpop.eup %5212 }
 0xa0b   : > { %v3208_v42 = vadd.f32 1.0, %v5213_v31 }
 0xa0c   : > { %5220 = vpow2.f32 %v4209_v50 }
 0xa0d   : > { %v3029_v19 = vpop.xlane.xlu1 %3028  ;;  %v3044_v33 = vpop.xlane.xlu0 %3043  ;;  %5222 = vpow2.f32 %v4214_v24 }
 0xa0e   : > { %v4211_v38 = vmul.f32 -1.442695, %v3029_v19  ;;  %v4216_v44 = vmul.f32 -1.442695, %v3044_v33  ;;  %v5215_v41 = vpop.eup %5214 }
 0xa0f   : > { %v3207_v61 = vadd.f32 1.0, %v5215_v41 }
 0xa10   : > { %5224 = vpow2.f32 %v4211_v38 }
 0xa11   : > { %v3035_v34 = vpop.xlane.xlu1 %3034  ;;  %v3050_v46 = vpop.xlane.xlu0 %3049  ;;  %5226 = vpow2.f32 %v4216_v44 }
 0xa12   : > { %v5217_v49 = vpop.eup %5216  ;;  %v4213_v54 = vmul.f32 -1.442695, %v3035_v34  ;;  %v4218_v4 = vmul.f32 -1.442695, %v3050_v46  ;;  %5228 = vrcp.f32 %v3208_v42 }
 0xa13   : > { %v5219_v55 = vpop.eup %5218  ;;  %v3210_v5 = vadd.f32 1.0, %v5217_v49 }
 0xa14   : > { %v3212_v45 = vadd.f32 1.0, %v5219_v55  ;;  %5230 = vpow2.f32 %v4213_v54 }
 0xa15   : > { %v3041_v39 = vpop.xlane.xlu1 %3040  ;;  %5232 = vrcp.f32 %v3207_v61 }
 0xa16   : > { %v5221_v15 = vpop.eup %5220  ;;  %v4215_v22 = vmul.f32 -1.442695, %v3041_v39  ;;  %5234 = vpow2.f32 %v4218_v4 }
 0xa17   : > { %v5223_v20 = vpop.eup %5222  ;;  %5236 = vrcp.f32 %v3210_v5  ;;  %v3209_v60 = vadd.f32 1.0, %v5221_v15 }
 0xa18   : > { %5238 = vrcp.f32 %v3212_v45  ;;  %v3214_v1 = vadd.f32 1.0, %v5223_v20 }
 0xa19   : > { %v3047_v63 = vpop.xlane.xlu1 %3046  ;;  %5240 = vpow2.f32 %v4215_v22 }
 0xa1a   : > { %v5225_v30 = vpop.eup %5224  ;;  %v4217_v10 = vmul.f32 -1.442695, %v3047_v63 }
 0xa1b   : > { %v5227_v19 = vpop.eup %5226  ;;  %v3211_v33 = vadd.f32 1.0, %v5225_v30 }
 0xa1c   : > { %v6517_v34 = vpop.eup %5228  ;;  %v3216_v38 = vadd.f32 1.0, %v5227_v19 }
 0xa1d   : > { %v3053_v11 = vpop.xlane.xlu1 %3052 }
 0xa1e   : > { %v3065_v28 = vpop.xlane.xlu0 %3064  ;;  %v5231_v44 = vpop.eup %5230  ;;  %v4219_v46 = vmul.f32 -1.442695, %v3053_v11 }
 0xa1f   : > { %v4223_v35 = vmul.f32 -1.442695, %v3065_v28  ;;  %v6519_v42 = vpop.eup %5232  ;;  %v3213_v61 = vadd.f32 1.0, %v5231_v44 }
 0xa20   : > { %v5235_v54 = vpop.eup %5234 }
 0xa21   : > { %v3068_v16 = vpop.xlane.xlu1 %3067  ;;  %5242 = vpow2.f32 %v4223_v35  ;;  %v6521_v55 = vpop.eup %5236  ;;  %v3218_v20 = vadd.f32 1.0, %v5235_v54 }
 0xa22   : > { %v4224_v50 = vmul.f32 -1.442695, %v3068_v16  ;;  %v3056_v24 = vpop.xlane.xlu0 %3055  ;;  %5244 = vrcp.f32 %v3209_v60  ;;  %v6523_v4 = vpop.eup %5238 }
 0xa23   : > { %5246 = vrcp.f32 %v3214_v1  ;;  %v5241_v45 = vpop.eup %5240  ;;  %v4220_v44 = vmul.f32 -1.442695, %v3056_v24 }
 0xa24   : > { %5248 = vpow2.f32 %v4217_v10  ;;  %v3215_v1 = vadd.f32 1.0, %v5241_v45 }
 0xa25   : > { %v3074_v31 = vpop.xlane.xlu1 %3073  ;;  %5250 = vpow2.f32 %v4224_v50 }
 0xa26   : > { %v4226_v39 = vmul.f32 -1.442695, %v3074_v31  ;;  %v3080_v41 = vpop.xlane.xlu0 %3079  ;;  %5252 = vrcp.f32 %v3211_v33 }
 0xa27   : > { %v4228_v49 = vmul.f32 -1.442695, %v3080_v41 }
 0xa28   : > { %5254 = vpow2.f32 %v4226_v39 }
 0xa29   : > { %5256 = vrcp.f32 %v3216_v38  ;;  %v3071_v63 = vpop.xlane.xlu1 %3070 }
 0xa2a   : > { %5258 = vpow2.f32 %v4228_v49  ;;  %v4225_v5 = vmul.f32 -1.442695, %v3071_v63  ;;  %v3086_v15 = vpop.xlane.xlu0 %3085 }
 0xa2b   : > { %5260 = vpow2.f32 %v4219_v46  ;;  %v4230_v22 = vmul.f32 -1.442695, %v3086_v15  ;;  %v5243_v28 = vpop.eup %5242 }
 0xa2c   : > { %5262 = vpow2.f32 %v4225_v5  ;;  %v6525_v11 = vpop.eup %5244  ;;  %v3223_v60 = vadd.f32 1.0, %v5243_v28 }
 0xa2d   : > { %5264 = vrcp.f32 %v3213_v61  ;;  %v3077_v35 = vpop.xlane.xlu1 %3076  ;;  %v6527_v30 = vpop.eup %5246 }
 0xa2e   : > { %5266 = vpow2.f32 %v4230_v22  ;;  %v4227_v10 = vmul.f32 -1.442695, %v3077_v35  ;;  %v3092_v16 = vpop.xlane.xlu0 %3091  ;;  %v6529_v19 = vpop.eup %5248 }
 0xa2f   : > { %5268 = vrcp.f32 %v3218_v20  ;;  %v5251_v50 = vpop.eup %5250  ;;  %v4232_v33 = vmul.f32 -1.442695, %v3092_v16 }
 0xa30   : > { %5270 = vpow2.f32 %v4227_v10  ;;  %v6531_v38 = vpop.eup %5252  ;;  %v3224_v31 = vadd.f32 1.0, %v5251_v50 }
 0xa31   : > { %5272 = vrcp.f32 %v3223_v60  ;;  %v3083_v39 = vpop.xlane.xlu1 %3082 }
 0xa32   : > { %v5255_v41 = vpop.eup %5254  ;;  %5274 = vrcp.f32 %v3215_v1  ;;  %v4229_v46 = vmul.f32 -1.442695, %v3083_v39  ;;  %v3098_v49 = vpop.xlane.xlu0 %3097 }
 0xa33   : > { %v6533_v54 = vpop.eup %5256  ;;  %5276 = vrcp.f32 %v3224_v31  ;;  %v3226_v61 = vadd.f32 1.0, %v5255_v41  ;;  %v4234_v5 = vmul.f32 -1.442695, %v3098_v49 }
 0xa34   : > { %v5259_v63 = vpop.eup %5258  ;;  %5278 = vpow2.f32 %v4232_v33 }
 0xa35   : > { %v6535_v15 = vpop.eup %5260  ;;  %5280 = vpow2.f32 %v4220_v44  ;;  %v3089_v45 = vpop.xlane.xlu1 %3088  ;;  %v3228_v60 = vadd.f32 1.0, %v5259_v63 }
 0xa36   : > { %v5263_v20 = vpop.eup %5262  ;;  %5282 = vpow2.f32 %v4229_v46  ;;  %v4231_v22 = vmul.f32 -1.442695, %v3089_v45  ;;  %v3104_v24 = vpop.xlane.xlu0 %3103  ;;  %v3303_v45 = vmul.f32 %v6519_v42, %v6195_v48 }
 0xa37   : > { %v6537_v28 = vpop.eup %5264  ;;  %5284 = vrcp.f32 %v3226_v61  ;;  %v3225_v35 = vadd.f32 1.0, %v5263_v20  ;;  %v4236_v10 = vmul.f32 -1.442695, %v3104_v24 }
 0xa38   : > { %v5267_v1 = vpop.eup %5266  ;;  %5286 = vpow2.f32 %v4234_v5 }
 0xa39   : > { %v6539_v16 = vpop.eup %5268  ;;  %5288 = vrcp.f32 %v3225_v35  ;;  %v3095_v50 = vpop.xlane.xlu1 %3094  ;;  %v3230_v31 = vadd.f32 1.0, %v5267_v1 }
 0xa3a   : > { %v5271_v33 = vpop.eup %5270  ;;  %5290 = vpow2.f32 %v4231_v22  ;;  %v3110_v44 = vpop.xlane.xlu0 %3109  ;;  %v4233_v46 = vmul.f32 -1.442695, %v3095_v50 }
 0xa3b   : > { %v5273_v39 = vpop.eup %5272  ;;  %5292 = vrcp.f32 %v3228_v60  ;;  %v3227_v41 = vadd.f32 1.0, %v5271_v33  ;;  %v4238_v61 = vmul.f32 -1.442695, %v3110_v44 }
 0xa3c   : > { %v6541_v49 = vpop.eup %5274  ;;  %5294 = vpow2.f32 %v4236_v10  ;;  %v3319_v22 = vmul.f32 %v5273_v39, %v6275_v29  ;;  %v3304_v10 = vmul.f32 %v6517_v34, %v6200_v53  ;;  %v3217_v29 = vadd.f32 1.0, %v6529_v19 }
 0xa3d   : > { %v5277_v63 = vpop.eup %5276  ;;  %5296 = vrcp.f32 %v3227_v41  ;;  %v3101_v5 = vpop.xlane.xlu1 %3100  ;;  %v3305_v53 = vmul.f32 %v6525_v11, %v6203_v56 }
 0xa3e   : > { %v5279_v20 = vpop.eup %5278  ;;  %5298 = vrcp.f32 %v3230_v31  ;;  %v4235_v24 = vmul.f32 -1.442695, %v3101_v5  ;;  %v3062_v35 = vpop.xlane.xlu0 %3061  ;;  %v3320_v60 = vmul.f32 %v5277_v63, %v6280_v32  ;;  %v5072_v42 = vpack.c.bf16 %v3304_v10, %v3303_v45 }
 0xa3f   : > { %v5281_v1 = vpop.eup %5280  ;;  %5300 = vpow2.f32 %v4233_v46  ;;  %v4222_v50 = vmul.f32 -1.442695, %v3062_v35  ;;  %v3232_v14 = vadd.f32 1.0, %v5279_v20  ;;  %v3219_v45 = vadd.f32 1.0, %v6535_v15 }
 0xa40   : > { %v5283_v33 = vpop.eup %5282  ;;  %5302 = vpow2.f32 %v4238_v61  ;;  %v5070_v44 = vpack.c.bf16 %v3320_v60, %v3319_v22 }
 0xa41   : > { %v5285_v41 = vpop.eup %5284  ;;  %v3229_v48 = vadd.f32 1.0, %v5283_v33  ;;  %5304 = vpow2.f32 %v4235_v24  ;;  %v3107_v31 = vpop.xlane.xlu1 %3106  ;;  %v3306_v24 = vmul.f32 %v6521_v55, %v6210_v58  ;;  %v3220_v55 = vadd.f32 1.0, %v5281_v1 }
 0xa42   : > { %v5287_v5 = vpop.eup %5286  ;;  %5306 = vpow2.f32 %v4222_v50  ;;  %5071 = vmatprep.subr.bf16.mxu1 %v5070_v44  ;;  %v4237_v32 = vmul.f32 -1.442695, %v3107_v31  ;;  %v3322_v61 = vmul.f32 %v5285_v41, %v6290_v40  ;;  %v3307_v40 = vmul.f32 %v6531_v38, %v6213_v59 }
 0xa43   : > { %v5289_v39 = vpop.eup %5288  ;;  %5308 = vrcp.f32 %v3229_v48  ;;  %5073 = vmatpush3.bf16.msra.mxu1 %v5072_v42  ;;  %v3234_v22 = vadd.f32 1.0, %v5287_v5  ;;  %v3308_v33 = vmul.f32 %v6523_v4, %v6220_v51  ;;  %v3309_v1 = vmul.f32 %v6537_v28, %v6225_v0 }
 0xa44   : > { %v5291_v34 = vpop.eup %5290  ;;  %5310 = vpow2.f32 %v4237_v32  ;;  %v3321_v46 = vmul.f32 %v5289_v39, %v6285_v37  ;;  %v5076_v37 = vpack.c.bf16 %v3306_v24, %v3305_v53  ;;  %v3310_v53 = vmul.f32 %v6527_v30, %v6230_v3 }
 0xa45   : > { %v5293_v63 = vpop.eup %5292  ;;  %5312 = vrcp.f32 %v3232_v14  ;;  %v3231_v19 = vadd.f32 1.0, %v5291_v34  ;;  %v3059_v20 = vpop.xlane.xlu1 %3058  ;;  %v5080_v38 = vpack.c.bf16 %v3308_v33, %v3307_v40  ;;  %v3311_v0 = vmul.f32 %v6541_v49, %v6235_v6  ;;  %v396_v33 = vld [vmem:[%s6774_s6 + $0x18] sm:$0xff] }
 0xa46   : > { %v5295_v35 = vpop.eup %5294  ;;  %5314 = vrcp.f32 %v3217_v29  ;;  %v4221_v60 = vmul.f32 -1.442695, %v3059_v20  ;;  %v5074_v56 = vpack.c.bf16 %v3322_v61, %v3321_v46  ;;  %v3324_v15 = vmul.f32 %v5293_v63, %v6300_v47 }
 0xa47   : > { %v5297_v11 = vpop.eup %5296  ;;  %5316 = vrcp.f32 %v3231_v19  ;;  %v3236_v50 = vadd.f32 1.0, %v5295_v35  ;;  %v5084_v63 = vpack.c.bf16 %v3310_v53, %v3309_v1  ;;  %v3312_v3 = vmul.f32 %v6533_v54, %v6240_v12 }
 0xa48   : > { %v5299_v10 = vpop.eup %5298  ;;  %5318 = vpow2.f32 %v4221_v60  ;;  %5075 = vmatprep.subr.bf16.mxu1 %v5074_v56  ;;  %v3323_v14 = vmul.f32 %v5297_v11, %v6295_v43  ;;  %v3314_v56 = vmul.f32 %v6539_v16, %v6250_v8  ;;  %v5424_v1 = vmov 0.0  }
 0xa49   : > { %v5301_v58 = vpop.eup %5300  ;;  %5320 = vrcp.f32 %v3219_v45  ;;  %5077 = vmatpush3.bf16.msra.mxu1 %v5076_v37  ;;  %v3326_v4 = vmul.f32 %v5299_v10, %v6310_v57  ;;  %v5088_v35 = vpack.c.bf16 %v3312_v3, %v3311_v0  ;;  %3551 = vmatprep.mubr.f32.mxu0 %v5424_v1  ;;  %v353_v0 = vld [vmem:[%s6772_s4 + $0x80] sm:$0xff] }
 0xa4a   : > { %v5303_v44 = vpop.eup %5302  ;;  %5322 = vrcp.f32 %v3234_v22  ;;  %v3233_v41 = vadd.f32 1.0, %v5301_v58  ;;  %v5078_v48 = vpack.c.bf16 %v3324_v15, %v3323_v14 }
 0xa4b   : > { %v5305_v42 = vpop.eup %5304  ;;  %5324 = vrcp.f32 %v3236_v50  ;;  %v3238_v59 = vadd.f32 1.0, %v5303_v44  ;;  %v395_v44 = vld [vmem:[%s6774_s6 + $0x10] sm:$0xff] }
 0xa4c   : > { %v5307_v31 = vpop.eup %5306  ;;  %5326 = vrcp.f32 %v3233_v41  ;;  %v3235_v43 = vadd.f32 1.0, %v5305_v42  ;;  %5079 = vmatprep.subr.bf16.mxu1 %v5078_v48  ;;  %v398_v48 = vld [vmem:[%s6774_s6 + $0x28] sm:$0xff]  ;;  %v400_v42 = vld [vmem:[%s6774_s6 + $0x38] sm:$0xff] }
 0xa4d   : > { %v5309_v47 = vpop.eup %5308  ;;  %5328 = vrcp.f32 %v3220_v55  ;;  %5081 = vmatpush3.bf16.msra.mxu1 %v5080_v38  ;;  %v3222_v32 = vadd.f32 1.0, %v5307_v31  ;;  %v5410_v55 = vld [vmem:[%s6358_s12 + $0x18] sm:$0xff]  ;;  %v397_v38 = vld [vmem:[%s6774_s6 + $0x20] sm:$0xff]  ;;  %v399_v31 = vld [vmem:[%s6774_s6 + $0x30] sm:$0xff] }
 0xa4e   : > { %v5311_v5 = vpop.eup %5310  ;;  %5330 = vrcp.f32 %v3235_v43  ;;  %v3325_v51 = vmul.f32 %v5309_v47, %v6305_v52  ;;  %v6825_v43 = vmov 0.0|0.0   ;;  %v5108_v47 = vpack.c.bf16 %v399_v31, %v397_v38  ;;  %v5412_v31 = vld [vmem:[%s6773_s5] ss:$0 sm:$0xff] }
 0xa4f   : > { %v5313_v29 = vpop.eup %5312  ;;  %5332 = vrcp.f32 %v3238_v59  ;;  %v3237_v39 = vadd.f32 1.0, %v5311_v5  ;;  %v5106_v59 = vpack.c.bf16 %v400_v42, %v398_v48  ;;  %v387_v5 = vld [vmem:[%s6772_s4 + $0x190] sm:$0xff]  ;;  %3770 = vrot.lane.b32.xlu1 %v5412_v31, %s5426_s22 }
 0xa50   : > { %v5315_v34 = vpop.eup %5314  ;;  %v5082_v46 = vpack.c.bf16 %v3326_v4, %v3325_v51  ;;  %v3328_v57 = vmul.f32 %v5313_v29, %v6320_v2  ;;  %v388_v51 = vld [vmem:[%s6772_s4 + $0x198] sm:$0xff]  ;;  %v369_v4 = vld [vmem:[%s6772_s4 + $0x100] sm:$0xff]  ;;  %v370_v29 = vld [vmem:[%s6772_s4 + $0x108] sm:$0xff] }
 0xa51   : > { %v5317_v61 = vpop.eup %5316  ;;  %5334 = vrcp.f32 %v3237_v39  ;;  %v3313_v6 = vmul.f32 %v5315_v34, %v6245_v18  ;;  %5107 = vmatprep.subr.bf16.mxu0 %v5106_v59  ;;  %v5111_v53 = vpack.c.bf16 %v388_v51, %v387_v5  ;;  %v367_v42 = vld [vmem:[%s6772_s4 + $0xf0] sm:$0xff]  ;;  %v368_v59 = vld [vmem:[%s6772_s4 + $0xf8] sm:$0xff] }
 0xa52   : > { %v5319_v28 = vpop.eup %5318  ;;  %5083 = vmatprep.subr.bf16.mxu1 %v5082_v46  ;;  %v3327_v52 = vmul.f32 %v5317_v61, %v6315_v62  ;;  %5336 = vrcp.f32 %v3222_v32  ;;  %5109 = vmatpush1.bf16.msra.mxu0 %v5108_v47  ;;  %v385_v46 = vld [vmem:[%s6772_s4 + $0x180] sm:$0xff]  ;;  %v386_v61 = vld [vmem:[%s6772_s4 + $0x188] sm:$0xff]  ;;  %v5146_v38 = vpack.c.bf16 %v368_v59, %v367_v42 }
 0xa53   : > { %v5321_v45 = vpop.eup %5320  ;;  %v3221_v19 = vadd.f32 1.0, %v5319_v28  ;;  %5085 = vmatpush3.bf16.msra.mxu1 %v5084_v63  ;;  %v5092_v37 = vpack.c.bf16 %v3314_v56, %v3313_v6  ;;  %5113 = vmatprep.subr.bf16.mxu0 %v6825_v43  ;;  %v5116_v63 = vpack.c.bf16 %v370_v29, %v369_v4  ;;  %v354_v28 = vld [vmem:[%s6772_s4 + $0x88] sm:$0xff]  ;;  %v5114_v3 = vpack.c.bf16 %v386_v61, %v385_v46  ;;  %v373_v6 = vld [vmem:[%s6772_s4 + $0x120] sm:$0xff] }
 0xa54   : > { %v5323_v30 = vpop.eup %5322  ;;  %v5086_v20 = vpack.c.bf16 %v3328_v57, %v3327_v52  ;;  %v371_v57 = vld [vmem:[%s6772_s4 + $0x110] sm:$0xff]  ;;  %v358_v56 = vld [vmem:[%s6772_s4 + $0xa8] sm:$0xff] }
 0xa55   : > { %v5325_v24 = vpop.eup %5324  ;;  %5338 = vrcp.f32 %v3221_v19  ;;  %v3330_v2 = vmul.f32 %v5323_v30, %v6330_v17 }
 0xa56   : > { %v5327_v22 = vpop.eup %5326  ;;  %5087 = vmatprep.subr.bf16.mxu1 %v5086_v20  ;;  %v3332_v50 = vmul.f32 %v5325_v24, %v6340_v26  ;;  %v5118_v20 = vpack.c.bf16 %v354_v28, %v353_v0  ;;  %v390_v0 = vld [vmem:[%s6772_s4 + $0x1a8] sm:$0xff] }
 0xa57   : > { %v5329_v49 = vpop.eup %5328  ;;  %5089 = vmatpush3.bf16.msra.mxu1 %v5088_v35  ;;  %v3329_v62 = vmul.f32 %v5327_v22, %v6325_v7  ;;  %v3315_v7 = vmul.f32 %v5321_v45, %v6255_v36  ;;  %v5409_v36 = vld [vmem:[%s6358_s12] sm:$0xff]  ;;  %v372_v45 = vld [vmem:[%s6772_s4 + $0x118] sm:$0xff]  ;;  %v355_v35 = vld [vmem:[%s6772_s4 + $0x90] sm:$0xff] }
 0xa58   : > { %v5331_v60 = vpop.eup %5330  ;;  %v3316_v40 = vmul.f32 %v5329_v49, %v6260_v13  ;;  %v5120_v24 = vpack.c.bf16 %v372_v45, %v371_v57  ;;  %v356_v22 = vld [vmem:[%s6772_s4 + $0x98] sm:$0xff]  ;;  %v374_v49 = vld [vmem:[%s6772_s4 + $0x128] sm:$0xff] }
 0xa59   : > { %v5333_v12 = vpop.eup %5332  ;;  %v5090_v54 = vpack.c.bf16 %v3330_v2, %v3329_v62  ;;  %v3331_v11 = vmul.f32 %v5331_v60, %v6335_v21  ;;  %v5122_v62 = vpack.c.bf16 %v356_v22, %v355_v35  ;;  %v5124_v2 = vpack.c.bf16 %v374_v49, %v373_v6  ;;  %v357_v60 = vld [vmem:[%s6772_s4 + $0xa0] sm:$0xff] }
 0xa5a   : > { %v3334_v8 = vmul.f32 %v5333_v12, %v6350_v27  ;;  %v5096_v21 = vpack.c.bf16 %v3316_v40, %v3315_v7  ;;  %v394_v27 = vld [vmem:[%s6774_s6 + $0x8] sm:$0xff]  ;;  %v375_v12 = vld [vmem:[%s6772_s4 + $0x130] sm:$0xff]  ;;  %v360_v40 = vld [vmem:[%s6772_s4 + $0xb8] sm:$0xff] }
 0xa5b   : > { %v5335_v18 = vpop.eup %5334  ;;  %5091 = vmatprep.subr.bf16.mxu1 %v5090_v54  ;;  %v5094_v10 = vpack.c.bf16 %v3332_v50, %v3331_v11  ;;  %v376_v54 = vld [vmem:[%s6772_s4 + $0x138] sm:$0xff]  ;;  %v5126_v11 = vpack.c.bf16 %v358_v56, %v357_v60  ;;  %v4243_v22 = vld [vmem:[%s6773_s5 + $0x1] ss:$0 sm:$0xff] }
 0xa5c   : > { %5093 = vmatpush3.bf16.msra.mxu1 %v5092_v37  ;;  %v3333_v17 = vmul.f32 %v5335_v18, %v6345_v23  ;;  %v5337_v16 = vpop.eup %5336  ;;  %v5411_v23 = vld [vmem:[%s6358_s12 + $0x10] sm:$0xff]  ;;  %v5128_v50 = vpack.c.bf16 %v376_v54, %v375_v12  ;;  %v377_v18 = vld [vmem:[%s6772_s4 + $0x140] sm:$0xff]  ;;  %s5427_s12 = smov 112  }
 0xa5d   : > { %5095 = vmatprep.subr.bf16.mxu1 %v5094_v10  ;;  %v3318_v15 = vmul.f32 %v5337_v16, %v6270_v9  ;;  %v393_v9 = vld [vmem:[%s6774_s6] sm:$0xff]  ;;  %v359_v37 = vld [vmem:[%s6772_s4 + $0xb0] sm:$0xff]  ;;  %v378_v10 = vld [vmem:[%s6772_s4 + $0x148] sm:$0xff]  ;;  %3855 = vrot.lane.b32.xlu0 %v4243_v22, %s5427_s12 }
 0xa5e   : > { %v5098_v26 = vpack.c.bf16 %v3334_v8, %v3333_v17  ;;  %v5104_v41 = vpack.c.bf16 %v395_v44, %v393_v9  ;;  %v5130_v7 = vpack.c.bf16 %v360_v40, %v359_v37  ;;  %v5132_v17 = vpack.c.bf16 %v378_v10, %v377_v18  ;;  %v361_v8 = vld [vmem:[%s6772_s4 + $0xc0] sm:$0xff]  ;;  %v362_v16 = vld [vmem:[%s6772_s4 + $0xc8] sm:$0xff]  ;;  %v383_v44 = vld [vmem:[%s6772_s4 + $0x170] sm:$0xff] }
 0xa5f   : > { %v5339_v14 = vpop.eup %5338 }
 0xa60   : > { %5097 = vmatpush3.bf16.msra.mxu1 %v5096_v21  ;;  %v3317_v13 = vmul.f32 %v5339_v14, %v6265_v25  ;;  %v5102_v25 = vpack.c.bf16 %v396_v33, %v394_v27  ;;  %v379_v21 = vld [vmem:[%s6772_s4 + $0x150] sm:$0xff]  ;;  %v5134_v14 = vpack.c.bf16 %v362_v16, %v361_v8  ;;  %v365_v33 = vld [vmem:[%s6772_s4 + $0xe0] sm:$0xff] }
 0xa61   : > { %5099 = vmatprep.subr.bf16.mxu1 %v5098_v26  ;;  %v380_v26 = vld [vmem:[%s6772_s4 + $0x158] sm:$0xff] }
 0xa62   : > { %v5100_v58 = vpack.c.bf16 %v3318_v15, %v3317_v13  ;;  %v5136_v13 = vpack.c.bf16 %v380_v26, %v379_v21  ;;  %v363_v15 = vld [vmem:[%s6772_s4 + $0xd0] sm:$0xff] }
 0xa64   : > { %5101 = vmatpush3.bf16.msra.mxu1 %v5100_v58  ;;  %v364_v58 = vld [vmem:[%s6772_s4 + $0xd8] sm:$0xff] }
 0xa65   : > { %5103 = vmatprep.subr.bf16.mxu1 %v5102_v25  ;;  %v366_v25 = vld [vmem:[%s6772_s4 + $0xe8] sm:$0xff] }
 0xa66   : > { %v5142_v9 = vpack.c.bf16 %v366_v25, %v365_v33 }
 0xa67   : > { %3400 = vmatmul.mubr.f32.vlgmr.msra.gmra.mrb[156].mxu1 %v5409_v36  ;;  %v381_v36 = vld [vmem:[%s6772_s4 + $0x160] sm:$0xff] }
 0xa68   : > { %3404 = vmatprep.mubr.f32.mxu1 %v5410_v55  ;;  %5105 = vmatpush1.bf16.msra.mxu1 %v5104_v41  ;;  %v382_v55 = vld [vmem:[%s6772_s4 + $0x168] sm:$0xff]  ;;  %v384_v41 = vld [vmem:[%s6772_s4 + $0x178] sm:$0xff] }
 0xa69   : > { %5110 = vmatprep.subr.bf16.mxu1 %v6825_v43  ;;  %v5140_v27 = vpack.c.bf16 %v382_v55, %v381_v36  ;;  %v5144_v48 = vpack.c.bf16 %v384_v41, %v383_v44 }
 0xa6b   : > { %3405 = vmatmul.mubr.f32.gmra.mrb[158].mxu1 %v5411_v23  ;;  %v5138_v23 = vpack.c.bf16 %v364_v58, %v363_v15 }
 0xa6c   : > { %3477 = vmatprep.mubr.f32.mxu1 %v5424_v1 }
 0xacf   : > { %v3856_v60 = vpop.permute.xlu0 %3855 }
 0xb3a   : > { %v4501_v32 = vpop.f32.mrb[156].mxu1 }
 0xb3b   : > { %v4502_v39 = vpop.f32.mrb[157].mxu1 }
 0xb3c   : > { %v4503_v34 = vadd.f32 %v4502_v39, %v4501_v32 }
 0xb3e   : > { %v4504_v52 = vpop.f32.mrb[158].mxu1  ;;  %4239 = vmatmul.mubr.msk.f32.vlgmr.msra.gmra.mrb[160].mxu1 %vm535_vm0, %v4503_v34 }
 0xb3f   : > { %v4505_v19 = vpop.f32.mrb[159].mxu1  ;;  %5112 = vmatpush3.bf16.msra.mxu1 %v5111_v53  ;;  %4834 = vmatprep.mubr.msk.f32.mxu1 %vm5425_vm3, %v5424_v1 }
 0xb40   : > { %v4506_v30 = vadd.f32 %v4505_v19, %v4504_v52  ;;  %5117 = vmatprep.subr.bf16.mxu1 %v5116_v63  ;;  %v389_v63 = vld [vmem:[%s6772_s4 + $0x1a0] sm:$0xff]  ;;  %v3771_v19 = vpop.permute.xlu1 %3770 }
 0xb41   : > { %v5149_v28 = vpack.c.bf16 %v390_v0, %v389_v63 }
 0xb42   : > { %4240 = vmatmul.mubr.msk.f32.vlgmr.msra.gmra.mrb[200].mxu0 %vm535_vm0, %v4506_v30  ;;  %4835 = vmatmul.mubr.msk.f32.vlgmr.msra.gmra.mrb[162].mxu1 %vm535_vm0, %v4506_v30 }
 0xb43   : > { %5115 = vmatpush3.bf16.msra.mxu0 %v5114_v3  ;;  %4841 = vmatprep.mubr.msk.f32.mxu0 %vm5425_vm3, %v5424_v1 }
 0xb44   : > { %5119 = vmatpush3.bf16.msra.mxu1 %v5118_v20  ;;  %5148 = vmatprep.subr.bf16.mxu0 %v6825_v43 }
 0xb45   : > { %5121 = vmatprep.subr.bf16.mxu1 %v5120_v24  ;;  %v391_v24 = vld [vmem:[%s6772_s4 + $0x1b0] sm:$0xff] }
 0xb46   : > { %4842 = vmatmul.mubr.msk.f32.vlgmr.msra.gmra.mrb[202].mxu0 %vm535_vm0, %v4503_v34 }
 0xb47   : > { %4848 = vmatprep.mubr.msk.f32.mxu0 %vm5425_vm3, %v5424_v1  ;;  %5150 = vmatpush3.bf16.msra.mxu0 %v5149_v28 }
 0xb48   : > { %5123 = vmatpush3.bf16.msra.mxu1 %v5122_v62  ;;  %5151 = vmatprep.subr.bf16.mxu0 %v6825_v43  ;;  %v392_v43 = vld [vmem:[%s6772_s4 + $0x1b8] sm:$0xff] }
 0xb49   : > { %5125 = vmatprep.subr.bf16.mxu1 %v5124_v2  ;;  %v5152_v35 = vpack.c.bf16 %v392_v43, %v391_v24  ;;  %v5428_v2 = vmov 0  }
 0xb4a   : > { %5202 = vset.pattern.permute.xlu1 %v5428_v2  ;;  %5203 = vset.pattern.permute.xlu0 %v5428_v2 }
 0xb4c   : > { %5127 = vmatpush3.bf16.msra.mxu1 %v5126_v11 }
 0xb4d   : > { %5129 = vmatprep.subr.bf16.mxu1 %v5128_v50 }
 0xb50   : > { %5131 = vmatpush3.bf16.msra.mxu1 %v5130_v7 }
 0xb51   : > { %5133 = vmatprep.subr.bf16.mxu1 %v5132_v17 }
 0xb54   : > { %5135 = vmatpush3.bf16.msra.mxu1 %v5134_v14 }
 0xb55   : > { %5137 = vmatprep.subr.bf16.mxu1 %v5136_v13 }
 0xb58   : > { %5139 = vmatpush3.bf16.msra.mxu1 %v5138_v23 }
 0xb59   : > { %5141 = vmatprep.subr.bf16.mxu1 %v5140_v27 }
 0xb5c   : > { %5143 = vmatpush3.bf16.msra.mxu1 %v5142_v9 }
 0xb5d   : > { %5145 = vmatprep.subr.bf16.mxu1 %v5144_v48 }
 0xb60   : > { %5147 = vmatpush3.bf16.msra.mxu1 %v5146_v38 }
 0xc11   : > { %v3479_v47 = vpop.f32.mrb[160].mxu1 }
 0xc12   : > { %v3481_v5 = vpop.f32.mrb[161].mxu1 }
 0xc15   : > { %v3553_v51 = vpop.f32.mrb[200].mxu0  ;;  %v3626_v4 = vpop.f32.mrb[162].mxu1 }
 0xc16   : > { %v3558_v29 = vmul.f32 %v3553_v51, %v3479_v47  ;;  %v3555_v32 = vpop.f32.mrb[201].mxu0  ;;  %v4836_v39 = vpop.f32.mrb[163].mxu1 }
 0xc17   : > { %v3559_v53 = vmul.f32 %v3555_v32, %v3481_v5 }
 0xc19   : > { %3764 = vmatprep.mubr.f32.mxu1 %v3559_v53  ;;  %v3696_v34 = vpop.f32.mrb[202].mxu0 }
 0xc1a   : > { %3765 = vmatmul.mubr.f32.vlgmr.msra.gmra.mrb[164].mxu1 %v3558_v29  ;;  %v3697_v46 = vadd.f32 %v3696_v34, %v3626_v4  ;;  %v4843_v61 = vpop.f32.mrb[203].mxu0 }
 0xced   : > { %v4545_v52 = vpop.f32.mrb[164].mxu1 }
 0xcee   : > { %v4546_v57 = vpop.f32.mrb[165].mxu1 }
 0xcef   : > { %v4547_v45 = vadd.f32 %v4546_v57, %v4545_v52 }
 0xcf1   : > { %v3767_v3 = vadd.f32 %v4547_v45, %v3697_v46 }
 0xcf3   : > { %v3773_v30 = vadd.f32 %v3771_v19, %v3767_v3 }
 0xcf5   : > { %v3774_v20 = vmax.f32 %v3773_v30, 0.0 }
 0xcf7   : > { %4849 = vmatmul.mubr.msk.f32.vlgmr.msra.gmra.mrb[204].mxu0 %vm535_vm0, %v3774_v20 }
 0xcf8   : > { %4855 = vmatprep.mubr.msk.f32.mxu0 %vm5425_vm3, %v5424_v1  ;;  %5153 = vmatpush3.bf16.msra.mxu0 %v5152_v35 }
 0xdca   : > { %v3850_v6 = vpop.f32.mrb[204].mxu0 }
 0xdcb   : > { %v3851_v49 = vadd.f32 %v4243_v22, %v3850_v6  ;;  %v4850_v62 = vpop.f32.mrb[205].mxu0 }
 0xdcd   : > { %v3854_v1 = vmax.f32 %v3851_v49, 0.0 }
 0xdcf   : > { %4856 = vmatmul.mubr.msk.f32.vlgmr.msra.gmra.mrb[206].mxu0 %vm535_vm0, %v3854_v1 }
 0xea2   : > { %v3927_v56 = vpop.f32.mrb[206].mxu0 }
 0xea3   : > { %v3928_v12 = vadd.f32 %v3927_v56, %v3856_v60  ;;  %v4857_v54 = vpop.f32.mrb[207].mxu0 }
 0xea5   : > { %v4246_v11 = vmul.f32 -1.442695, %v3928_v12 }
 0xea7   : > { %5340 = vpow2.f32 %v4246_v11 }
 0xeb1   : > { %v5341_v50 = vpop.eup %5340 }
 0xeb2   : > { %v3934_v37 = vadd.f32 1.0, %v5341_v50 }
 0xeb4   : > { %5342 = vrcp.f32 %v3934_v37 }
 0xebe   : > { %v5343_v40 = vpop.eup %5342 }
 0xebf   : > { %3939 = vperm.xlu1 %5202, %v5343_v40  }
 0xf3e   : > { %v3940_v18 = vpop.permute.xlu1 %3939 }
 0xf3f   : > { %3942 = vst [vmem:[%s336_s30] sm:$0xff] %v3940_v18 }
 0xf40 PF: > { %s17_s24 = sadd.s32 1, %s5419_s24  }
 0xf41   : > { %p14_p4 = scmp.ge.s32.totalorder %s17_s24, 4  }
 0xf43   :  { %16 = sbr.rel (!%p14_p4) target bundleno = 1 (0x1), region = 87 }

</bundles_post_ra>
